<compile_context>
chip_gen: v7x
topology: tpu7x:2x2x1
jax: 0.10.0
libtpu: 0.0.40
codegen_flags: <defaults>
</compile_context>

<pallas_src>
import functools

import jax
import jax.numpy as jnp
from jax.experimental import pallas as pl
from jax.experimental.pallas import tpu as pltpu


# ------------------------------------------------------------------ kernel

def _decoder_layer_kernel(
    tgt_ref, qpos_ref, mem_ref, mpos_ref,
    # self-attention
    sa_wq, sa_bq, sa_wk, sa_bk, sa_wv, sa_bv, sa_wo, sa_bo, n1_g, n1_b,
    # cross-attention
    ca_wq, ca_bq, ca_wk, ca_bk, ca_wv, ca_bv, ca_wo, ca_bo, n2_g, n2_b,
    # FFN
    w1_ref, b1_ref, w2_ref, b2_ref, n3_g, n3_b,
    o_ref, *, nhead, scale, eps):
  """One batch element of the full decoder layer (post-norm)."""
  f32, bf16 = jnp.float32, jnp.bfloat16

  def layer_norm(y, g_ref, b_ref):
    mean = jnp.mean(y, axis=-1, keepdims=True)
    var = jnp.mean((y - mean) ** 2, axis=-1, keepdims=True)
    return (y - mean) * jax.lax.rsqrt(var + eps) * g_ref[...] + b_ref[...]

  def mha(q_in, k_in, v_in, wq, bq, wk, bk, wv, bv, wo, bo):
    # q_in: (L, D) f32; k_in / v_in: (S, D) f32.  bf16 MXU, f32 accumulate.
    q = (jnp.dot(q_in.astype(bf16), wq[...], preferred_element_type=f32)
         + bq[...]) * scale                                          # (L, D) f32
    k = jnp.dot(k_in.astype(bf16), wk[...], preferred_element_type=f32) + bk[...]
    v = jnp.dot(v_in.astype(bf16), wv[...], preferred_element_type=f32) + bv[...]

    L, D = q.shape
    hd = D // nhead
    wo_m = wo[...]                                                   # (D, D) bf16

    # Per-head attention with the out-projection folded per head, so the
    # running output stays a lane-dense (L, D) f32 accumulator.
    out = jnp.zeros((L, D), f32)
    for h in range(nhead):
      sl = slice(h * hd, (h + 1) * hd)
      qh = q[:, sl].astype(bf16)                                     # (L, hd)
      kh = k[:, sl].astype(bf16)                                     # (S, hd)
      vh = v[:, sl].astype(bf16)                                     # (S, hd)
      # scores = qh @ kh^T  (contract over hd; no transpose materialized)
      s = jax.lax.dot_general(qh, kh, (((1,), (1,)), ((), ())),
                              preferred_element_type=f32)            # (L, S)
      s = s - jnp.max(s, axis=-1, keepdims=True)
      p = jnp.exp(s)
      inv = pl.reciprocal(jnp.sum(p, axis=-1, keepdims=True), approx=True)
      oh = jnp.dot(p.astype(bf16), vh, preferred_element_type=f32) * inv
      out = out + jnp.dot(oh.astype(bf16), wo_m[sl, :],
                          preferred_element_type=f32)                # (L, D)
    return out + bo[...]

  tgt = tgt_ref[0]            # (L, D) f32 residual stream
  qpos = qpos_ref[0]          # (L, D)
  mem = mem_ref[0]            # (S, D)
  mpos = mpos_ref[0]          # (S, D)

  # 1) self-attention (q = k = tgt + query_pos, v = tgt) + residual + norm1
  qk_in = tgt + qpos
  sa = mha(qk_in, qk_in, tgt,
           sa_wq, sa_bq, sa_wk, sa_bk, sa_wv, sa_bv, sa_wo, sa_bo)
  t1 = layer_norm(tgt + sa, n1_g, n1_b)

  # 2) cross-attention (q = t1 + query_pos, k = memory + pos, v = memory)
  ca = mha(t1 + qpos, mem + mpos, mem,
           ca_wq, ca_bq, ca_wk, ca_bk, ca_wv, ca_bv, ca_wo, ca_bo)
  t2 = layer_norm(t1 + ca, n2_g, n2_b)

  # 3) FFN: linear1 -> relu -> linear2 (+ residual + norm3); dropout = identity
  h = jnp.dot(t2.astype(bf16), w1_ref[...], preferred_element_type=f32) + b1_ref[...]
  h = jnp.maximum(h, 0.0)
  y = jnp.dot(h.astype(bf16), w2_ref[...], preferred_element_type=f32) + b2_ref[...]
  t3 = layer_norm(t2 + y, n3_g, n3_b)

  o_ref[0] = t3.astype(o_ref.dtype)


# ---------------------------------------------------------------- wrapper

@functools.partial(jax.jit, static_argnames=("nhead",))
def decoder_layer_forward(params, tgt, memory, pos, query_pos, *, nhead):
  """TransformerDecoderLayer.forward_post (normalize_before=False, eval mode).

  tgt: (L, B, D); memory: (S, B, D); pos: (S, B, D)|None; query_pos: (L, B, D)|None.
  Returns (L, B, D).
  """
  L, B, D = tgt.shape
  S = memory.shape[0]
  if query_pos is None:
    query_pos = jnp.zeros_like(tgt)
  if pos is None:
    pos = jnp.zeros_like(memory)

  # Batch-major internal layout: one transpose in / one out for the whole layer.
  tgt_b = jnp.transpose(tgt, (1, 0, 2))          # (B, L, D)
  qpos_b = jnp.transpose(query_pos, (1, 0, 2))   # (B, L, D)
  mem_b = jnp.transpose(memory, (1, 0, 2))       # (B, S, D)
  pos_b = jnp.transpose(pos, (1, 0, 2))          # (B, S, D)

  hd = D // nhead
  scale = float(hd) ** -0.5
  eps = 1e-5
  kern = functools.partial(_decoder_layer_kernel, nhead=nhead, scale=scale, eps=eps)

  def seq_blk(l):
    return pl.BlockSpec((1, l, D), lambda b: (b, 0, 0))

  def w_blk(shape):
    return pl.BlockSpec(shape, lambda b: (0, 0))

  sa = params["self_attn"]
  ca = params["cross_attn"]
  F = params["lin1_w"].shape[1]

  out = pl.pallas_call(
      kern,
      out_shape=jax.ShapeDtypeStruct((B, L, D), tgt.dtype),
      grid=(B,),
      in_specs=[
          seq_blk(L), seq_blk(L), seq_blk(S), seq_blk(S),
          # self-attn weights
          w_blk((D, D)), w_blk((1, D)), w_blk((D, D)), w_blk((1, D)),
          w_blk((D, D)), w_blk((1, D)), w_blk((D, D)), w_blk((1, D)),
          w_blk((1, D)), w_blk((1, D)),
          # cross-attn weights
          w_blk((D, D)), w_blk((1, D)), w_blk((D, D)), w_blk((1, D)),
          w_blk((D, D)), w_blk((1, D)), w_blk((D, D)), w_blk((1, D)),
          w_blk((1, D)), w_blk((1, D)),
          # FFN weights + norm3
          w_blk((D, F)), w_blk((1, F)), w_blk((F, D)), w_blk((1, D)),
          w_blk((1, D)), w_blk((1, D)),
      ],
      out_specs=seq_blk(L),
      compiler_params=pltpu.CompilerParams(dimension_semantics=("parallel",)),
  )(tgt_b, qpos_b, mem_b, pos_b,
    sa["wq"], sa["bq"], sa["wk"], sa["bk"], sa["wv"], sa["bv"], sa["wo"], sa["bo"],
    params["norm1_g"], params["norm1_b"],
    ca["wq"], ca["bq"], ca["wk"], ca["bk"], ca["wv"], ca["bv"], ca["wo"], ca["bo"],
    params["norm2_g"], params["norm2_b"],
    params["lin1_w"], params["lin1_b"], params["lin2_w"], params["lin2_b"],
    params["norm3_g"], params["norm3_b"])

  return jnp.transpose(out, (1, 0, 2))


# --------------------------------------------------------------- parameters

def init_decoder_layer_params(key, d_model, nhead, dim_feedforward):
  assert d_model % nhead == 0
  keys = iter(jax.random.split(key, 16))
  bf = jnp.bfloat16

  def xavier(shape):  # torch (out, in) convention, xavier_uniform
    fan_out, fan_in = shape
    a = (6.0 / (fan_in + fan_out)) ** 0.5
    return jax.random.uniform(next(keys), shape, jnp.float32, -a, a)

  def attn_params():
    in_w = xavier((3 * d_model, d_model))       # torch in_proj_weight
    in_b = jnp.zeros((3 * d_model,), jnp.float32)
    out_w = xavier((d_model, d_model))
    out_b = jnp.zeros((d_model,), jnp.float32)
    # pre-split, pre-transpose to (in, out), pre-cast matmul weights to bf16
    return dict(
        wq=in_w[:d_model].T.astype(bf),
        wk=in_w[d_model:2 * d_model].T.astype(bf),
        wv=in_w[2 * d_model:].T.astype(bf),
        bq=in_b[:d_model].reshape(1, -1),
        bk=in_b[d_model:2 * d_model].reshape(1, -1),
        bv=in_b[2 * d_model:].reshape(1, -1),
        wo=out_w.T.astype(bf),
        bo=out_b.reshape(1, -1),
    )

  lin1_w = xavier((dim_feedforward, d_model))
  lin2_w = xavier((d_model, dim_feedforward))
  bound1 = 1.0 / (d_model ** 0.5)
  bound2 = 1.0 / (dim_feedforward ** 0.5)
  return dict(
      self_attn=attn_params(),
      cross_attn=attn_params(),
      lin1_w=lin1_w.T.astype(bf),
      lin1_b=jax.random.uniform(next(keys), (1, dim_feedforward), jnp.float32,
                                -bound1, bound1),
      lin2_w=lin2_w.T.astype(bf),
      lin2_b=jax.random.uniform(next(keys), (1, d_model), jnp.float32,
                                -bound2, bound2),
      norm1_g=jnp.ones((1, d_model), jnp.float32),
      norm1_b=jnp.zeros((1, d_model), jnp.float32),
      norm2_g=jnp.ones((1, d_model), jnp.float32),
      norm2_b=jnp.zeros((1, d_model), jnp.float32),
      norm3_g=jnp.ones((1, d_model), jnp.float32),
      norm3_b=jnp.zeros((1, d_model), jnp.float32),
  )


# --------------------------------------------------------------------- main

if __name__ == "__main__":
  # Small but lane-friendly shapes: d_model = 128 keeps every tile lane-dense
  # (full 128-lane vregs for matmuls, LayerNorm and stores).
  d_model, nhead, dim_feedforward = 128, 8, 256
  num_queries, mem_len, batch = 16, 64, 2

  root = jax.random.PRNGKey(0)
  k_t, k_m, k_p, k_q, k_par = jax.random.split(root, 5)

  tgt = jax.random.normal(k_t, (num_queries, batch, d_model), jnp.float32)
  memory = jax.random.normal(k_m, (mem_len, batch, d_model), jnp.float32)
  pos = jax.random.normal(k_p, (mem_len, batch, d_model), jnp.float32)
  query_pos = jax.random.normal(k_q, (num_queries, batch, d_model), jnp.float32)

  params = init_decoder_layer_params(k_par, d_model, nhead, dim_feedforward)

  out = decoder_layer_forward(params, tgt, memory, pos, query_pos, nhead=nhead)
  out = jax.block_until_ready(out)

  assert out.shape == (num_queries, batch, d_model), out.shape
  assert bool(jnp.all(jnp.isfinite(out)))
  print("KERNEL_OK")
</pallas_src>

<mosaic_0001>
module attributes {stable_mosaic.version = 11 : i64} {
  func.func @_decoder_layer_kernel(%arg0: i32, %arg1: memref<1x16x128xf32, #tpu.memory_space<vmem>>, %arg2: memref<1x16x128xf32, #tpu.memory_space<vmem>>, %arg3: memref<1x64x128xf32, #tpu.memory_space<vmem>>, %arg4: memref<1x64x128xf32, #tpu.memory_space<vmem>>, %arg5: memref<128x128xbf16, #tpu.memory_space<vmem>>, %arg6: memref<1x128xf32, #tpu.memory_space<vmem>>, %arg7: memref<128x128xbf16, #tpu.memory_space<vmem>>, %arg8: memref<1x128xf32, #tpu.memory_space<vmem>>, %arg9: memref<128x128xbf16, #tpu.memory_space<vmem>>, %arg10: memref<1x128xf32, #tpu.memory_space<vmem>>, %arg11: memref<128x128xbf16, #tpu.memory_space<vmem>>, %arg12: memref<1x128xf32, #tpu.memory_space<vmem>>, %arg13: memref<1x128xf32, #tpu.memory_space<vmem>>, %arg14: memref<1x128xf32, #tpu.memory_space<vmem>>, %arg15: memref<128x128xbf16, #tpu.memory_space<vmem>>, %arg16: memref<1x128xf32, #tpu.memory_space<vmem>>, %arg17: memref<128x128xbf16, #tpu.memory_space<vmem>>, %arg18: memref<1x128xf32, #tpu.memory_space<vmem>>, %arg19: memref<128x128xbf16, #tpu.memory_space<vmem>>, %arg20: memref<1x128xf32, #tpu.memory_space<vmem>>, %arg21: memref<128x128xbf16, #tpu.memory_space<vmem>>, %arg22: memref<1x128xf32, #tpu.memory_space<vmem>>, %arg23: memref<1x128xf32, #tpu.memory_space<vmem>>, %arg24: memref<1x128xf32, #tpu.memory_space<vmem>>, %arg25: memref<128x256xbf16, #tpu.memory_space<vmem>>, %arg26: memref<1x256xf32, #tpu.memory_space<vmem>>, %arg27: memref<256x128xbf16, #tpu.memory_space<vmem>>, %arg28: memref<1x128xf32, #tpu.memory_space<vmem>>, %arg29: memref<1x128xf32, #tpu.memory_space<vmem>>, %arg30: memref<1x128xf32, #tpu.memory_space<vmem>>, %arg31: memref<1x16x128xf32, #tpu.memory_space<vmem>>) attributes {dimension_semantics = [#tpu.dimension_semantics<parallel>], iteration_bounds = array<i64: 2>, scalar_prefetch = 0 : i64, scratch_operands = 0 : i64, tpu.core_type = #tpu.core_type<tc>, window_params = [{transform_indices = @transform_0, window_bounds = array<i64: 1, 16, 128>}, {transform_indices = @transform_1, window_bounds = array<i64: 1, 16, 128>}, {transform_indices = @transform_2, window_bounds = array<i64: 1, 64, 128>}, {transform_indices = @transform_3, window_bounds = array<i64: 1, 64, 128>}, {pipeline_mode = #tpu.pipeline_mode<synchronous>, transform_indices = @transform_4, window_bounds = array<i64: 128, 128>}, {pipeline_mode = #tpu.pipeline_mode<synchronous>, transform_indices = @transform_5, window_bounds = array<i64: 1, 128>}, {pipeline_mode = #tpu.pipeline_mode<synchronous>, transform_indices = @transform_6, window_bounds = array<i64: 128, 128>}, {pipeline_mode = #tpu.pipeline_mode<synchronous>, transform_indices = @transform_7, window_bounds = array<i64: 1, 128>}, {pipeline_mode = #tpu.pipeline_mode<synchronous>, transform_indices = @transform_8, window_bounds = array<i64: 128, 128>}, {pipeline_mode = #tpu.pipeline_mode<synchronous>, transform_indices = @transform_9, window_bounds = array<i64: 1, 128>}, {pipeline_mode = #tpu.pipeline_mode<synchronous>, transform_indices = @transform_10, window_bounds = array<i64: 128, 128>}, {pipeline_mode = #tpu.pipeline_mode<synchronous>, transform_indices = @transform_11, window_bounds = array<i64: 1, 128>}, {pipeline_mode = #tpu.pipeline_mode<synchronous>, transform_indices = @transform_12, window_bounds = array<i64: 1, 128>}, {pipeline_mode = #tpu.pipeline_mode<synchronous>, transform_indices = @transform_13, window_bounds = array<i64: 1, 128>}, {pipeline_mode = #tpu.pipeline_mode<synchronous>, transform_indices = @transform_14, window_bounds = array<i64: 128, 128>}, {pipeline_mode = #tpu.pipeline_mode<synchronous>, transform_indices = @transform_15, window_bounds = array<i64: 1, 128>}, {pipeline_mode = #tpu.pipeline_mode<synchronous>, transform_indices = @transform_16, window_bounds = array<i64: 128, 128>}, {pipeline_mode = #tpu.pipeline_mode<synchronous>, transform_indices = @transform_17, window_bounds = array<i64: 1, 128>}, {pipeline_mode = #tpu.pipeline_mode<synchronous>, transform_indices = @transform_18, window_bounds = array<i64: 128, 128>}, {pipeline_mode = #tpu.pipeline_mode<synchronous>, transform_indices = @transform_19, window_bounds = array<i64: 1, 128>}, {pipeline_mode = #tpu.pipeline_mode<synchronous>, transform_indices = @transform_20, window_bounds = array<i64: 128, 128>}, {pipeline_mode = #tpu.pipeline_mode<synchronous>, transform_indices = @transform_21, window_bounds = array<i64: 1, 128>}, {pipeline_mode = #tpu.pipeline_mode<synchronous>, transform_indices = @transform_22, window_bounds = array<i64: 1, 128>}, {pipeline_mode = #tpu.pipeline_mode<synchronous>, transform_indices = @transform_23, window_bounds = array<i64: 1, 128>}, {pipeline_mode = #tpu.pipeline_mode<synchronous>, transform_indices = @transform_24, window_bounds = array<i64: 128, 256>}, {pipeline_mode = #tpu.pipeline_mode<synchronous>, transform_indices = @transform_25, window_bounds = array<i64: 1, 256>}, {pipeline_mode = #tpu.pipeline_mode<synchronous>, transform_indices = @transform_26, window_bounds = array<i64: 256, 128>}, {pipeline_mode = #tpu.pipeline_mode<synchronous>, transform_indices = @transform_27, window_bounds = array<i64: 1, 128>}, {pipeline_mode = #tpu.pipeline_mode<synchronous>, transform_indices = @transform_28, window_bounds = array<i64: 1, 128>}, {pipeline_mode = #tpu.pipeline_mode<synchronous>, transform_indices = @transform_29, window_bounds = array<i64: 1, 128>}, {transform_indices = @transform_30, window_bounds = array<i64: 1, 16, 128>}]} {
    %c0 = arith.constant 0 : index
    %c0_0 = arith.constant 0 : index
    %c0_1 = arith.constant 0 : index
    %0 = vector.load %arg1[%c0, %c0_0, %c0_1] : memref<1x16x128xf32, #tpu.memory_space<vmem>>, vector<1x16x128xf32>
    %1 = vector.shape_cast %0 : vector<1x16x128xf32> to vector<16x128xf32>
    %c0_2 = arith.constant 0 : index
    %c0_3 = arith.constant 0 : index
    %c0_4 = arith.constant 0 : index
    %2 = vector.load %arg2[%c0_2, %c0_3, %c0_4] : memref<1x16x128xf32, #tpu.memory_space<vmem>>, vector<1x16x128xf32>
    %3 = vector.shape_cast %2 : vector<1x16x128xf32> to vector<16x128xf32>
    %c0_5 = arith.constant 0 : index
    %c0_6 = arith.constant 0 : index
    %c0_7 = arith.constant 0 : index
    %4 = vector.load %arg3[%c0_5, %c0_6, %c0_7] : memref<1x64x128xf32, #tpu.memory_space<vmem>>, vector<1x64x128xf32>
    %5 = vector.shape_cast %4 : vector<1x64x128xf32> to vector<64x128xf32>
    %c0_8 = arith.constant 0 : index
    %c0_9 = arith.constant 0 : index
    %c0_10 = arith.constant 0 : index
    %6 = vector.load %arg4[%c0_8, %c0_9, %c0_10] : memref<1x64x128xf32, #tpu.memory_space<vmem>>, vector<1x64x128xf32>
    %7 = vector.shape_cast %6 : vector<1x64x128xf32> to vector<64x128xf32>
    %8 = arith.addf %1, %3 : vector<16x128xf32>
    %9 = arith.truncf %8 : vector<16x128xf32> to vector<16x128xbf16>
    %c0_11 = arith.constant 0 : index
    %c0_12 = arith.constant 0 : index
    %10 = vector.load %arg5[%c0_11, %c0_12] : memref<128x128xbf16, #tpu.memory_space<vmem>>, vector<128x128xbf16>
    %cst = arith.constant dense<0.000000e+00> : vector<16x128xf32>
    %11 = tpu.matmul %9, %10, %cst {dimension_numbers = #tpu.dot_dimension_numbers<[1], [0], [0], [1], [0, 0, 1, 1], [], []>} : vector<16x128xbf16>, vector<128x128xbf16>, vector<16x128xf32> -> vector<16x128xf32>
    %c0_13 = arith.constant 0 : index
    %c0_14 = arith.constant 0 : index
    %12 = vector.load %arg6[%c0_13, %c0_14] : memref<1x128xf32, #tpu.memory_space<vmem>>, vector<1x128xf32>
    %13 = vector.broadcast %12 : vector<1x128xf32> to vector<16x128xf32>
    %14 = arith.addf %11, %13 : vector<16x128xf32>
    %cst_15 = arith.constant 2.500000e-01 : f32
    %15 = vector.broadcast %cst_15 : f32 to vector<16x128xf32>
    %16 = arith.mulf %14, %15 : vector<16x128xf32>
    %17 = arith.truncf %8 : vector<16x128xf32> to vector<16x128xbf16>
    %c0_16 = arith.constant 0 : index
    %c0_17 = arith.constant 0 : index
    %18 = vector.load %arg7[%c0_16, %c0_17] : memref<128x128xbf16, #tpu.memory_space<vmem>>, vector<128x128xbf16>
    %cst_18 = arith.constant dense<0.000000e+00> : vector<16x128xf32>
    %19 = tpu.matmul %17, %18, %cst_18 {dimension_numbers = #tpu.dot_dimension_numbers<[1], [0], [0], [1], [0, 0, 1, 1], [], []>} : vector<16x128xbf16>, vector<128x128xbf16>, vector<16x128xf32> -> vector<16x128xf32>
    %c0_19 = arith.constant 0 : index
    %c0_20 = arith.constant 0 : index
    %20 = vector.load %arg8[%c0_19, %c0_20] : memref<1x128xf32, #tpu.memory_space<vmem>>, vector<1x128xf32>
    %21 = vector.broadcast %20 : vector<1x128xf32> to vector<16x128xf32>
    %22 = arith.addf %19, %21 : vector<16x128xf32>
    %23 = arith.truncf %1 : vector<16x128xf32> to vector<16x128xbf16>
    %c0_21 = arith.constant 0 : index
    %c0_22 = arith.constant 0 : index
    %24 = vector.load %arg9[%c0_21, %c0_22] : memref<128x128xbf16, #tpu.memory_space<vmem>>, vector<128x128xbf16>
    %cst_23 = arith.constant dense<0.000000e+00> : vector<16x128xf32>
    %25 = tpu.matmul %23, %24, %cst_23 {dimension_numbers = #tpu.dot_dimension_numbers<[1], [0], [0], [1], [0, 0, 1, 1], [], []>} : vector<16x128xbf16>, vector<128x128xbf16>, vector<16x128xf32> -> vector<16x128xf32>
    %c0_24 = arith.constant 0 : index
    %c0_25 = arith.constant 0 : index
    %26 = vector.load %arg10[%c0_24, %c0_25] : memref<1x128xf32, #tpu.memory_space<vmem>>, vector<1x128xf32>
    %27 = vector.broadcast %26 : vector<1x128xf32> to vector<16x128xf32>
    %28 = arith.addf %25, %27 : vector<16x128xf32>
    %c0_26 = arith.constant 0 : index
    %c0_27 = arith.constant 0 : index
    %29 = vector.load %arg11[%c0_26, %c0_27] : memref<128x128xbf16, #tpu.memory_space<vmem>>, vector<128x128xbf16>
    %cst_28 = arith.constant 0.000000e+00 : f32
    %30 = vector.broadcast %cst_28 : f32 to vector<16x128xf32>
    %31 = vector.extract_strided_slice %16 {offsets = [0, 0], sizes = [16, 16], strides = [1, 1]} : vector<16x128xf32> to vector<16x16xf32>
    %32 = arith.truncf %31 : vector<16x16xf32> to vector<16x16xbf16>
    %33 = vector.extract_strided_slice %22 {offsets = [0, 0], sizes = [16, 16], strides = [1, 1]} : vector<16x128xf32> to vector<16x16xf32>
    %34 = arith.truncf %33 : vector<16x16xf32> to vector<16x16xbf16>
    %35 = vector.extract_strided_slice %28 {offsets = [0, 0], sizes = [16, 16], strides = [1, 1]} : vector<16x128xf32> to vector<16x16xf32>
    %36 = arith.truncf %35 : vector<16x16xf32> to vector<16x16xbf16>
    %cst_29 = arith.constant dense<0.000000e+00> : vector<16x16xf32>
    %37 = tpu.matmul %32, %34, %cst_29 {dimension_numbers = #tpu.dot_dimension_numbers<[1], [1], [0], [0], [0, 0, 1, 0], [], []>} : vector<16x16xbf16>, vector<16x16xbf16>, vector<16x16xf32> -> vector<16x16xf32>
    %cst_30 = arith.constant dense<0xFF800000> : vector<16xf32>
    %38 = vector.multi_reduction <maximumf>, %37, %cst_30 [1] : vector<16x16xf32> to vector<16xf32>
    %39 = vector.shape_cast %38 : vector<16xf32> to vector<16x1xf32>
    %40 = vector.broadcast %39 : vector<16x1xf32> to vector<16x16xf32>
    %41 = arith.subf %37, %40 : vector<16x16xf32>
    %42 = math.exp %41 : vector<16x16xf32>
    %cst_31 = arith.constant dense<0.000000e+00> : vector<16xf32>
    %43 = vector.multi_reduction <add>, %42, %cst_31 [1] : vector<16x16xf32> to vector<16xf32>
    %44 = vector.shape_cast %43 : vector<16xf32> to vector<16x1xf32>
    %45 = tpu.reciprocal %44 {approx = true} : vector<16x1xf32> -> vector<16x1xf32>
    %46 = arith.truncf %42 : vector<16x16xf32> to vector<16x16xbf16>
    %cst_32 = arith.constant dense<0.000000e+00> : vector<16x16xf32>
    %47 = tpu.matmul %46, %36, %cst_32 {dimension_numbers = #tpu.dot_dimension_numbers<[1], [0], [0], [1], [0, 0, 1, 1], [], []>} : vector<16x16xbf16>, vector<16x16xbf16>, vector<16x16xf32> -> vector<16x16xf32>
    %48 = vector.broadcast %45 : vector<16x1xf32> to vector<16x16xf32>
    %49 = arith.mulf %47, %48 : vector<16x16xf32>
    %50 = arith.truncf %49 : vector<16x16xf32> to vector<16x16xbf16>
    %51 = vector.extract_strided_slice %29 {offsets = [0, 0], sizes = [16, 128], strides = [1, 1]} : vector<128x128xbf16> to vector<16x128xbf16>
    %cst_33 = arith.constant dense<0.000000e+00> : vector<16x128xf32>
    %52 = tpu.matmul %50, %51, %cst_33 {dimension_numbers = #tpu.dot_dimension_numbers<[1], [0], [0], [1], [0, 0, 1, 1], [], []>} : vector<16x16xbf16>, vector<16x128xbf16>, vector<16x128xf32> -> vector<16x128xf32>
    %53 = arith.addf %30, %52 : vector<16x128xf32>
    %54 = vector.extract_strided_slice %16 {offsets = [0, 16], sizes = [16, 16], strides = [1, 1]} : vector<16x128xf32> to vector<16x16xf32>
    %55 = arith.truncf %54 : vector<16x16xf32> to vector<16x16xbf16>
    %56 = vector.extract_strided_slice %22 {offsets = [0, 16], sizes = [16, 16], strides = [1, 1]} : vector<16x128xf32> to vector<16x16xf32>
    %57 = arith.truncf %56 : vector<16x16xf32> to vector<16x16xbf16>
    %58 = vector.extract_strided_slice %28 {offsets = [0, 16], sizes = [16, 16], strides = [1, 1]} : vector<16x128xf32> to vector<16x16xf32>
    %59 = arith.truncf %58 : vector<16x16xf32> to vector<16x16xbf16>
    %cst_34 = arith.constant dense<0.000000e+00> : vector<16x16xf32>
    %60 = tpu.matmul %55, %57, %cst_34 {dimension_numbers = #tpu.dot_dimension_numbers<[1], [1], [0], [0], [0, 0, 1, 0], [], []>} : vector<16x16xbf16>, vector<16x16xbf16>, vector<16x16xf32> -> vector<16x16xf32>
    %cst_35 = arith.constant dense<0xFF800000> : vector<16xf32>
    %61 = vector.multi_reduction <maximumf>, %60, %cst_35 [1] : vector<16x16xf32> to vector<16xf32>
    %62 = vector.shape_cast %61 : vector<16xf32> to vector<16x1xf32>
    %63 = vector.broadcast %62 : vector<16x1xf32> to vector<16x16xf32>
    %64 = arith.subf %60, %63 : vector<16x16xf32>
    %65 = math.exp %64 : vector<16x16xf32>
    %cst_36 = arith.constant dense<0.000000e+00> : vector<16xf32>
    %66 = vector.multi_reduction <add>, %65, %cst_36 [1] : vector<16x16xf32> to vector<16xf32>
    %67 = vector.shape_cast %66 : vector<16xf32> to vector<16x1xf32>
    %68 = tpu.reciprocal %67 {approx = true} : vector<16x1xf32> -> vector<16x1xf32>
    %69 = arith.truncf %65 : vector<16x16xf32> to vector<16x16xbf16>
    %cst_37 = arith.constant dense<0.000000e+00> : vector<16x16xf32>
    %70 = tpu.matmul %69, %59, %cst_37 {dimension_numbers = #tpu.dot_dimension_numbers<[1], [0], [0], [1], [0, 0, 1, 1], [], []>} : vector<16x16xbf16>, vector<16x16xbf16>, vector<16x16xf32> -> vector<16x16xf32>
    %71 = vector.broadcast %68 : vector<16x1xf32> to vector<16x16xf32>
    %72 = arith.mulf %70, %71 : vector<16x16xf32>
    %73 = arith.truncf %72 : vector<16x16xf32> to vector<16x16xbf16>
    %74 = vector.extract_strided_slice %29 {offsets = [16, 0], sizes = [16, 128], strides = [1, 1]} : vector<128x128xbf16> to vector<16x128xbf16>
    %cst_38 = arith.constant dense<0.000000e+00> : vector<16x128xf32>
    %75 = tpu.matmul %73, %74, %cst_38 {dimension_numbers = #tpu.dot_dimension_numbers<[1], [0], [0], [1], [0, 0, 1, 1], [], []>} : vector<16x16xbf16>, vector<16x128xbf16>, vector<16x128xf32> -> vector<16x128xf32>
    %76 = arith.addf %53, %75 : vector<16x128xf32>
    %77 = vector.extract_strided_slice %16 {offsets = [0, 32], sizes = [16, 16], strides = [1, 1]} : vector<16x128xf32> to vector<16x16xf32>
    %78 = arith.truncf %77 : vector<16x16xf32> to vector<16x16xbf16>
    %79 = vector.extract_strided_slice %22 {offsets = [0, 32], sizes = [16, 16], strides = [1, 1]} : vector<16x128xf32> to vector<16x16xf32>
    %80 = arith.truncf %79 : vector<16x16xf32> to vector<16x16xbf16>
    %81 = vector.extract_strided_slice %28 {offsets = [0, 32], sizes = [16, 16], strides = [1, 1]} : vector<16x128xf32> to vector<16x16xf32>
    %82 = arith.truncf %81 : vector<16x16xf32> to vector<16x16xbf16>
    %cst_39 = arith.constant dense<0.000000e+00> : vector<16x16xf32>
    %83 = tpu.matmul %78, %80, %cst_39 {dimension_numbers = #tpu.dot_dimension_numbers<[1], [1], [0], [0], [0, 0, 1, 0], [], []>} : vector<16x16xbf16>, vector<16x16xbf16>, vector<16x16xf32> -> vector<16x16xf32>
    %cst_40 = arith.constant dense<0xFF800000> : vector<16xf32>
    %84 = vector.multi_reduction <maximumf>, %83, %cst_40 [1] : vector<16x16xf32> to vector<16xf32>
    %85 = vector.shape_cast %84 : vector<16xf32> to vector<16x1xf32>
    %86 = vector.broadcast %85 : vector<16x1xf32> to vector<16x16xf32>
    %87 = arith.subf %83, %86 : vector<16x16xf32>
    %88 = math.exp %87 : vector<16x16xf32>
    %cst_41 = arith.constant dense<0.000000e+00> : vector<16xf32>
    %89 = vector.multi_reduction <add>, %88, %cst_41 [1] : vector<16x16xf32> to vector<16xf32>
    %90 = vector.shape_cast %89 : vector<16xf32> to vector<16x1xf32>
    %91 = tpu.reciprocal %90 {approx = true} : vector<16x1xf32> -> vector<16x1xf32>
    %92 = arith.truncf %88 : vector<16x16xf32> to vector<16x16xbf16>
    %cst_42 = arith.constant dense<0.000000e+00> : vector<16x16xf32>
    %93 = tpu.matmul %92, %82, %cst_42 {dimension_numbers = #tpu.dot_dimension_numbers<[1], [0], [0], [1], [0, 0, 1, 1], [], []>} : vector<16x16xbf16>, vector<16x16xbf16>, vector<16x16xf32> -> vector<16x16xf32>
    %94 = vector.broadcast %91 : vector<16x1xf32> to vector<16x16xf32>
    %95 = arith.mulf %93, %94 : vector<16x16xf32>
    %96 = arith.truncf %95 : vector<16x16xf32> to vector<16x16xbf16>
    %97 = vector.extract_strided_slice %29 {offsets = [32, 0], sizes = [16, 128], strides = [1, 1]} : vector<128x128xbf16> to vector<16x128xbf16>
    %cst_43 = arith.constant dense<0.000000e+00> : vector<16x128xf32>
    %98 = tpu.matmul %96, %97, %cst_43 {dimension_numbers = #tpu.dot_dimension_numbers<[1], [0], [0], [1], [0, 0, 1, 1], [], []>} : vector<16x16xbf16>, vector<16x128xbf16>, vector<16x128xf32> -> vector<16x128xf32>
    %99 = arith.addf %76, %98 : vector<16x128xf32>
    %100 = vector.extract_strided_slice %16 {offsets = [0, 48], sizes = [16, 16], strides = [1, 1]} : vector<16x128xf32> to vector<16x16xf32>
    %101 = arith.truncf %100 : vector<16x16xf32> to vector<16x16xbf16>
    %102 = vector.extract_strided_slice %22 {offsets = [0, 48], sizes = [16, 16], strides = [1, 1]} : vector<16x128xf32> to vector<16x16xf32>
    %103 = arith.truncf %102 : vector<16x16xf32> to vector<16x16xbf16>
    %104 = vector.extract_strided_slice %28 {offsets = [0, 48], sizes = [16, 16], strides = [1, 1]} : vector<16x128xf32> to vector<16x16xf32>
    %105 = arith.truncf %104 : vector<16x16xf32> to vector<16x16xbf16>
    %cst_44 = arith.constant dense<0.000000e+00> : vector<16x16xf32>
    %106 = tpu.matmul %101, %103, %cst_44 {dimension_numbers = #tpu.dot_dimension_numbers<[1], [1], [0], [0], [0, 0, 1, 0], [], []>} : vector<16x16xbf16>, vector<16x16xbf16>, vector<16x16xf32> -> vector<16x16xf32>
    %cst_45 = arith.constant dense<0xFF800000> : vector<16xf32>
    %107 = vector.multi_reduction <maximumf>, %106, %cst_45 [1] : vector<16x16xf32> to vector<16xf32>
    %108 = vector.shape_cast %107 : vector<16xf32> to vector<16x1xf32>
    %109 = vector.broadcast %108 : vector<16x1xf32> to vector<16x16xf32>
    %110 = arith.subf %106, %109 : vector<16x16xf32>
    %111 = math.exp %110 : vector<16x16xf32>
    %cst_46 = arith.constant dense<0.000000e+00> : vector<16xf32>
    %112 = vector.multi_reduction <add>, %111, %cst_46 [1] : vector<16x16xf32> to vector<16xf32>
    %113 = vector.shape_cast %112 : vector<16xf32> to vector<16x1xf32>
    %114 = tpu.reciprocal %113 {approx = true} : vector<16x1xf32> -> vector<16x1xf32>
    %115 = arith.truncf %111 : vector<16x16xf32> to vector<16x16xbf16>
    %cst_47 = arith.constant dense<0.000000e+00> : vector<16x16xf32>
    %116 = tpu.matmul %115, %105, %cst_47 {dimension_numbers = #tpu.dot_dimension_numbers<[1], [0], [0], [1], [0, 0, 1, 1], [], []>} : vector<16x16xbf16>, vector<16x16xbf16>, vector<16x16xf32> -> vector<16x16xf32>
    %117 = vector.broadcast %114 : vector<16x1xf32> to vector<16x16xf32>
    %118 = arith.mulf %116, %117 : vector<16x16xf32>
    %119 = arith.truncf %118 : vector<16x16xf32> to vector<16x16xbf16>
    %120 = vector.extract_strided_slice %29 {offsets = [48, 0], sizes = [16, 128], strides = [1, 1]} : vector<128x128xbf16> to vector<16x128xbf16>
    %cst_48 = arith.constant dense<0.000000e+00> : vector<16x128xf32>
    %121 = tpu.matmul %119, %120, %cst_48 {dimension_numbers = #tpu.dot_dimension_numbers<[1], [0], [0], [1], [0, 0, 1, 1], [], []>} : vector<16x16xbf16>, vector<16x128xbf16>, vector<16x128xf32> -> vector<16x128xf32>
    %122 = arith.addf %99, %121 : vector<16x128xf32>
    %123 = vector.extract_strided_slice %16 {offsets = [0, 64], sizes = [16, 16], strides = [1, 1]} : vector<16x128xf32> to vector<16x16xf32>
    %124 = arith.truncf %123 : vector<16x16xf32> to vector<16x16xbf16>
    %125 = vector.extract_strided_slice %22 {offsets = [0, 64], sizes = [16, 16], strides = [1, 1]} : vector<16x128xf32> to vector<16x16xf32>
    %126 = arith.truncf %125 : vector<16x16xf32> to vector<16x16xbf16>
    %127 = vector.extract_strided_slice %28 {offsets = [0, 64], sizes = [16, 16], strides = [1, 1]} : vector<16x128xf32> to vector<16x16xf32>
    %128 = arith.truncf %127 : vector<16x16xf32> to vector<16x16xbf16>
    %cst_49 = arith.constant dense<0.000000e+00> : vector<16x16xf32>
    %129 = tpu.matmul %124, %126, %cst_49 {dimension_numbers = #tpu.dot_dimension_numbers<[1], [1], [0], [0], [0, 0, 1, 0], [], []>} : vector<16x16xbf16>, vector<16x16xbf16>, vector<16x16xf32> -> vector<16x16xf32>
    %cst_50 = arith.constant dense<0xFF800000> : vector<16xf32>
    %130 = vector.multi_reduction <maximumf>, %129, %cst_50 [1] : vector<16x16xf32> to vector<16xf32>
    %131 = vector.shape_cast %130 : vector<16xf32> to vector<16x1xf32>
    %132 = vector.broadcast %131 : vector<16x1xf32> to vector<16x16xf32>
    %133 = arith.subf %129, %132 : vector<16x16xf32>
    %134 = math.exp %133 : vector<16x16xf32>
    %cst_51 = arith.constant dense<0.000000e+00> : vector<16xf32>
    %135 = vector.multi_reduction <add>, %134, %cst_51 [1] : vector<16x16xf32> to vector<16xf32>
    %136 = vector.shape_cast %135 : vector<16xf32> to vector<16x1xf32>
    %137 = tpu.reciprocal %136 {approx = true} : vector<16x1xf32> -> vector<16x1xf32>
    %138 = arith.truncf %134 : vector<16x16xf32> to vector<16x16xbf16>
    %cst_52 = arith.constant dense<0.000000e+00> : vector<16x16xf32>
    %139 = tpu.matmul %138, %128, %cst_52 {dimension_numbers = #tpu.dot_dimension_numbers<[1], [0], [0], [1], [0, 0, 1, 1], [], []>} : vector<16x16xbf16>, vector<16x16xbf16>, vector<16x16xf32> -> vector<16x16xf32>
    %140 = vector.broadcast %137 : vector<16x1xf32> to vector<16x16xf32>
    %141 = arith.mulf %139, %140 : vector<16x16xf32>
    %142 = arith.truncf %141 : vector<16x16xf32> to vector<16x16xbf16>
    %143 = vector.extract_strided_slice %29 {offsets = [64, 0], sizes = [16, 128], strides = [1, 1]} : vector<128x128xbf16> to vector<16x128xbf16>
    %cst_53 = arith.constant dense<0.000000e+00> : vector<16x128xf32>
    %144 = tpu.matmul %142, %143, %cst_53 {dimension_numbers = #tpu.dot_dimension_numbers<[1], [0], [0], [1], [0, 0, 1, 1], [], []>} : vector<16x16xbf16>, vector<16x128xbf16>, vector<16x128xf32> -> vector<16x128xf32>
    %145 = arith.addf %122, %144 : vector<16x128xf32>
    %146 = vector.extract_strided_slice %16 {offsets = [0, 80], sizes = [16, 16], strides = [1, 1]} : vector<16x128xf32> to vector<16x16xf32>
    %147 = arith.truncf %146 : vector<16x16xf32> to vector<16x16xbf16>
    %148 = vector.extract_strided_slice %22 {offsets = [0, 80], sizes = [16, 16], strides = [1, 1]} : vector<16x128xf32> to vector<16x16xf32>
    %149 = arith.truncf %148 : vector<16x16xf32> to vector<16x16xbf16>
    %150 = vector.extract_strided_slice %28 {offsets = [0, 80], sizes = [16, 16], strides = [1, 1]} : vector<16x128xf32> to vector<16x16xf32>
    %151 = arith.truncf %150 : vector<16x16xf32> to vector<16x16xbf16>
    %cst_54 = arith.constant dense<0.000000e+00> : vector<16x16xf32>
    %152 = tpu.matmul %147, %149, %cst_54 {dimension_numbers = #tpu.dot_dimension_numbers<[1], [1], [0], [0], [0, 0, 1, 0], [], []>} : vector<16x16xbf16>, vector<16x16xbf16>, vector<16x16xf32> -> vector<16x16xf32>
    %cst_55 = arith.constant dense<0xFF800000> : vector<16xf32>
    %153 = vector.multi_reduction <maximumf>, %152, %cst_55 [1] : vector<16x16xf32> to vector<16xf32>
    %154 = vector.shape_cast %153 : vector<16xf32> to vector<16x1xf32>
    %155 = vector.broadcast %154 : vector<16x1xf32> to vector<16x16xf32>
    %156 = arith.subf %152, %155 : vector<16x16xf32>
    %157 = math.exp %156 : vector<16x16xf32>
    %cst_56 = arith.constant dense<0.000000e+00> : vector<16xf32>
    %158 = vector.multi_reduction <add>, %157, %cst_56 [1] : vector<16x16xf32> to vector<16xf32>
    %159 = vector.shape_cast %158 : vector<16xf32> to vector<16x1xf32>
    %160 = tpu.reciprocal %159 {approx = true} : vector<16x1xf32> -> vector<16x1xf32>
    %161 = arith.truncf %157 : vector<16x16xf32> to vector<16x16xbf16>
    %cst_57 = arith.constant dense<0.000000e+00> : vector<16x16xf32>
    %162 = tpu.matmul %161, %151, %cst_57 {dimension_numbers = #tpu.dot_dimension_numbers<[1], [0], [0], [1], [0, 0, 1, 1], [], []>} : vector<16x16xbf16>, vector<16x16xbf16>, vector<16x16xf32> -> vector<16x16xf32>
    %163 = vector.broadcast %160 : vector<16x1xf32> to vector<16x16xf32>
    %164 = arith.mulf %162, %163 : vector<16x16xf32>
    %165 = arith.truncf %164 : vector<16x16xf32> to vector<16x16xbf16>
    %166 = vector.extract_strided_slice %29 {offsets = [80, 0], sizes = [16, 128], strides = [1, 1]} : vector<128x128xbf16> to vector<16x128xbf16>
    %cst_58 = arith.constant dense<0.000000e+00> : vector<16x128xf32>
    %167 = tpu.matmul %165, %166, %cst_58 {dimension_numbers = #tpu.dot_dimension_numbers<[1], [0], [0], [1], [0, 0, 1, 1], [], []>} : vector<16x16xbf16>, vector<16x128xbf16>, vector<16x128xf32> -> vector<16x128xf32>
    %168 = arith.addf %145, %167 : vector<16x128xf32>
    %169 = vector.extract_strided_slice %16 {offsets = [0, 96], sizes = [16, 16], strides = [1, 1]} : vector<16x128xf32> to vector<16x16xf32>
    %170 = arith.truncf %169 : vector<16x16xf32> to vector<16x16xbf16>
    %171 = vector.extract_strided_slice %22 {offsets = [0, 96], sizes = [16, 16], strides = [1, 1]} : vector<16x128xf32> to vector<16x16xf32>
    %172 = arith.truncf %171 : vector<16x16xf32> to vector<16x16xbf16>
    %173 = vector.extract_strided_slice %28 {offsets = [0, 96], sizes = [16, 16], strides = [1, 1]} : vector<16x128xf32> to vector<16x16xf32>
    %174 = arith.truncf %173 : vector<16x16xf32> to vector<16x16xbf16>
    %cst_59 = arith.constant dense<0.000000e+00> : vector<16x16xf32>
    %175 = tpu.matmul %170, %172, %cst_59 {dimension_numbers = #tpu.dot_dimension_numbers<[1], [1], [0], [0], [0, 0, 1, 0], [], []>} : vector<16x16xbf16>, vector<16x16xbf16>, vector<16x16xf32> -> vector<16x16xf32>
    %cst_60 = arith.constant dense<0xFF800000> : vector<16xf32>
    %176 = vector.multi_reduction <maximumf>, %175, %cst_60 [1] : vector<16x16xf32> to vector<16xf32>
    %177 = vector.shape_cast %176 : vector<16xf32> to vector<16x1xf32>
    %178 = vector.broadcast %177 : vector<16x1xf32> to vector<16x16xf32>
    %179 = arith.subf %175, %178 : vector<16x16xf32>
    %180 = math.exp %179 : vector<16x16xf32>
    %cst_61 = arith.constant dense<0.000000e+00> : vector<16xf32>
    %181 = vector.multi_reduction <add>, %180, %cst_61 [1] : vector<16x16xf32> to vector<16xf32>
    %182 = vector.shape_cast %181 : vector<16xf32> to vector<16x1xf32>
    %183 = tpu.reciprocal %182 {approx = true} : vector<16x1xf32> -> vector<16x1xf32>
    %184 = arith.truncf %180 : vector<16x16xf32> to vector<16x16xbf16>
    %cst_62 = arith.constant dense<0.000000e+00> : vector<16x16xf32>
    %185 = tpu.matmul %184, %174, %cst_62 {dimension_numbers = #tpu.dot_dimension_numbers<[1], [0], [0], [1], [0, 0, 1, 1], [], []>} : vector<16x16xbf16>, vector<16x16xbf16>, vector<16x16xf32> -> vector<16x16xf32>
    %186 = vector.broadcast %183 : vector<16x1xf32> to vector<16x16xf32>
    %187 = arith.mulf %185, %186 : vector<16x16xf32>
    %188 = arith.truncf %187 : vector<16x16xf32> to vector<16x16xbf16>
    %189 = vector.extract_strided_slice %29 {offsets = [96, 0], sizes = [16, 128], strides = [1, 1]} : vector<128x128xbf16> to vector<16x128xbf16>
    %cst_63 = arith.constant dense<0.000000e+00> : vector<16x128xf32>
    %190 = tpu.matmul %188, %189, %cst_63 {dimension_numbers = #tpu.dot_dimension_numbers<[1], [0], [0], [1], [0, 0, 1, 1], [], []>} : vector<16x16xbf16>, vector<16x128xbf16>, vector<16x128xf32> -> vector<16x128xf32>
    %191 = arith.addf %168, %190 : vector<16x128xf32>
    %192 = vector.extract_strided_slice %16 {offsets = [0, 112], sizes = [16, 16], strides = [1, 1]} : vector<16x128xf32> to vector<16x16xf32>
    %193 = arith.truncf %192 : vector<16x16xf32> to vector<16x16xbf16>
    %194 = vector.extract_strided_slice %22 {offsets = [0, 112], sizes = [16, 16], strides = [1, 1]} : vector<16x128xf32> to vector<16x16xf32>
    %195 = arith.truncf %194 : vector<16x16xf32> to vector<16x16xbf16>
    %196 = vector.extract_strided_slice %28 {offsets = [0, 112], sizes = [16, 16], strides = [1, 1]} : vector<16x128xf32> to vector<16x16xf32>
    %197 = arith.truncf %196 : vector<16x16xf32> to vector<16x16xbf16>
    %cst_64 = arith.constant dense<0.000000e+00> : vector<16x16xf32>
    %198 = tpu.matmul %193, %195, %cst_64 {dimension_numbers = #tpu.dot_dimension_numbers<[1], [1], [0], [0], [0, 0, 1, 0], [], []>} : vector<16x16xbf16>, vector<16x16xbf16>, vector<16x16xf32> -> vector<16x16xf32>
    %cst_65 = arith.constant dense<0xFF800000> : vector<16xf32>
    %199 = vector.multi_reduction <maximumf>, %198, %cst_65 [1] : vector<16x16xf32> to vector<16xf32>
    %200 = vector.shape_cast %199 : vector<16xf32> to vector<16x1xf32>
    %201 = vector.broadcast %200 : vector<16x1xf32> to vector<16x16xf32>
    %202 = arith.subf %198, %201 : vector<16x16xf32>
    %203 = math.exp %202 : vector<16x16xf32>
    %cst_66 = arith.constant dense<0.000000e+00> : vector<16xf32>
    %204 = vector.multi_reduction <add>, %203, %cst_66 [1] : vector<16x16xf32> to vector<16xf32>
    %205 = vector.shape_cast %204 : vector<16xf32> to vector<16x1xf32>
    %206 = tpu.reciprocal %205 {approx = true} : vector<16x1xf32> -> vector<16x1xf32>
    %207 = arith.truncf %203 : vector<16x16xf32> to vector<16x16xbf16>
    %cst_67 = arith.constant dense<0.000000e+00> : vector<16x16xf32>
    %208 = tpu.matmul %207, %197, %cst_67 {dimension_numbers = #tpu.dot_dimension_numbers<[1], [0], [0], [1], [0, 0, 1, 1], [], []>} : vector<16x16xbf16>, vector<16x16xbf16>, vector<16x16xf32> -> vector<16x16xf32>
    %209 = vector.broadcast %206 : vector<16x1xf32> to vector<16x16xf32>
    %210 = arith.mulf %208, %209 : vector<16x16xf32>
    %211 = arith.truncf %210 : vector<16x16xf32> to vector<16x16xbf16>
    %212 = vector.extract_strided_slice %29 {offsets = [112, 0], sizes = [16, 128], strides = [1, 1]} : vector<128x128xbf16> to vector<16x128xbf16>
    %cst_68 = arith.constant dense<0.000000e+00> : vector<16x128xf32>
    %213 = tpu.matmul %211, %212, %cst_68 {dimension_numbers = #tpu.dot_dimension_numbers<[1], [0], [0], [1], [0, 0, 1, 1], [], []>} : vector<16x16xbf16>, vector<16x128xbf16>, vector<16x128xf32> -> vector<16x128xf32>
    %214 = arith.addf %191, %213 : vector<16x128xf32>
    %c0_69 = arith.constant 0 : index
    %c0_70 = arith.constant 0 : index
    %215 = vector.load %arg12[%c0_69, %c0_70] : memref<1x128xf32, #tpu.memory_space<vmem>>, vector<1x128xf32>
    %216 = vector.broadcast %215 : vector<1x128xf32> to vector<16x128xf32>
    %217 = arith.addf %214, %216 : vector<16x128xf32>
    %218 = arith.addf %1, %217 : vector<16x128xf32>
    %cst_71 = arith.constant dense<0.000000e+00> : vector<16xf32>
    %219 = vector.multi_reduction <add>, %218, %cst_71 [1] : vector<16x128xf32> to vector<16xf32>
    %220 = vector.shape_cast %219 : vector<16xf32> to vector<16x1xf32>
    %cst_72 = arith.constant 1.280000e+02 : f32
    %221 = vector.broadcast %cst_72 : f32 to vector<16x1xf32>
    %222 = arith.divf %220, %221 : vector<16x1xf32>
    %223 = vector.broadcast %222 : vector<16x1xf32> to vector<16x128xf32>
    %224 = arith.subf %218, %223 : vector<16x128xf32>
    %225 = arith.mulf %224, %224 : vector<16x128xf32>
    %cst_73 = arith.constant dense<0.000000e+00> : vector<16xf32>
    %226 = vector.multi_reduction <add>, %225, %cst_73 [1] : vector<16x128xf32> to vector<16xf32>
    %227 = vector.shape_cast %226 : vector<16xf32> to vector<16x1xf32>
    %cst_74 = arith.constant 1.280000e+02 : f32
    %228 = vector.broadcast %cst_74 : f32 to vector<16x1xf32>
    %229 = arith.divf %227, %228 : vector<16x1xf32>
    %230 = vector.broadcast %222 : vector<16x1xf32> to vector<16x128xf32>
    %231 = arith.subf %218, %230 : vector<16x128xf32>
    %cst_75 = arith.constant 9.99999974E-6 : f32
    %232 = vector.broadcast %cst_75 : f32 to vector<16x1xf32>
    %233 = arith.addf %229, %232 : vector<16x1xf32>
    %234 = math.rsqrt %233 : vector<16x1xf32>
    %235 = vector.broadcast %234 : vector<16x1xf32> to vector<16x128xf32>
    %236 = arith.mulf %231, %235 : vector<16x128xf32>
    %c0_76 = arith.constant 0 : index
    %c0_77 = arith.constant 0 : index
    %237 = vector.load %arg13[%c0_76, %c0_77] : memref<1x128xf32, #tpu.memory_space<vmem>>, vector<1x128xf32>
    %238 = vector.broadcast %237 : vector<1x128xf32> to vector<16x128xf32>
    %239 = arith.mulf %236, %238 : vector<16x128xf32>
    %c0_78 = arith.constant 0 : index
    %c0_79 = arith.constant 0 : index
    %240 = vector.load %arg14[%c0_78, %c0_79] : memref<1x128xf32, #tpu.memory_space<vmem>>, vector<1x128xf32>
    %241 = vector.broadcast %240 : vector<1x128xf32> to vector<16x128xf32>
    %242 = arith.addf %239, %241 : vector<16x128xf32>
    %243 = arith.addf %242, %3 : vector<16x128xf32>
    %244 = arith.addf %5, %7 : vector<64x128xf32>
    %245 = arith.truncf %243 : vector<16x128xf32> to vector<16x128xbf16>
    %c0_80 = arith.constant 0 : index
    %c0_81 = arith.constant 0 : index
    %246 = vector.load %arg15[%c0_80, %c0_81] : memref<128x128xbf16, #tpu.memory_space<vmem>>, vector<128x128xbf16>
    %cst_82 = arith.constant dense<0.000000e+00> : vector<16x128xf32>
    %247 = tpu.matmul %245, %246, %cst_82 {dimension_numbers = #tpu.dot_dimension_numbers<[1], [0], [0], [1], [0, 0, 1, 1], [], []>} : vector<16x128xbf16>, vector<128x128xbf16>, vector<16x128xf32> -> vector<16x128xf32>
    %c0_83 = arith.constant 0 : index
    %c0_84 = arith.constant 0 : index
    %248 = vector.load %arg16[%c0_83, %c0_84] : memref<1x128xf32, #tpu.memory_space<vmem>>, vector<1x128xf32>
    %249 = vector.broadcast %248 : vector<1x128xf32> to vector<16x128xf32>
    %250 = arith.addf %247, %249 : vector<16x128xf32>
    %cst_85 = arith.constant 2.500000e-01 : f32
    %251 = vector.broadcast %cst_85 : f32 to vector<16x128xf32>
    %252 = arith.mulf %250, %251 : vector<16x128xf32>
    %253 = arith.truncf %244 : vector<64x128xf32> to vector<64x128xbf16>
    %c0_86 = arith.constant 0 : index
    %c0_87 = arith.constant 0 : index
    %254 = vector.load %arg17[%c0_86, %c0_87] : memref<128x128xbf16, #tpu.memory_space<vmem>>, vector<128x128xbf16>
    %cst_88 = arith.constant dense<0.000000e+00> : vector<64x128xf32>
    %255 = tpu.matmul %253, %254, %cst_88 {dimension_numbers = #tpu.dot_dimension_numbers<[1], [0], [0], [1], [0, 0, 1, 1], [], []>} : vector<64x128xbf16>, vector<128x128xbf16>, vector<64x128xf32> -> vector<64x128xf32>
    %c0_89 = arith.constant 0 : index
    %c0_90 = arith.constant 0 : index
    %256 = vector.load %arg18[%c0_89, %c0_90] : memref<1x128xf32, #tpu.memory_space<vmem>>, vector<1x128xf32>
    %257 = vector.broadcast %256 : vector<1x128xf32> to vector<64x128xf32>
    %258 = arith.addf %255, %257 : vector<64x128xf32>
    %259 = arith.truncf %5 : vector<64x128xf32> to vector<64x128xbf16>
    %c0_91 = arith.constant 0 : index
    %c0_92 = arith.constant 0 : index
    %260 = vector.load %arg19[%c0_91, %c0_92] : memref<128x128xbf16, #tpu.memory_space<vmem>>, vector<128x128xbf16>
    %cst_93 = arith.constant dense<0.000000e+00> : vector<64x128xf32>
    %261 = tpu.matmul %259, %260, %cst_93 {dimension_numbers = #tpu.dot_dimension_numbers<[1], [0], [0], [1], [0, 0, 1, 1], [], []>} : vector<64x128xbf16>, vector<128x128xbf16>, vector<64x128xf32> -> vector<64x128xf32>
    %c0_94 = arith.constant 0 : index
    %c0_95 = arith.constant 0 : index
    %262 = vector.load %arg20[%c0_94, %c0_95] : memref<1x128xf32, #tpu.memory_space<vmem>>, vector<1x128xf32>
    %263 = vector.broadcast %262 : vector<1x128xf32> to vector<64x128xf32>
    %264 = arith.addf %261, %263 : vector<64x128xf32>
    %c0_96 = arith.constant 0 : index
    %c0_97 = arith.constant 0 : index
    %265 = vector.load %arg21[%c0_96, %c0_97] : memref<128x128xbf16, #tpu.memory_space<vmem>>, vector<128x128xbf16>
    %cst_98 = arith.constant 0.000000e+00 : f32
    %266 = vector.broadcast %cst_98 : f32 to vector<16x128xf32>
    %267 = vector.extract_strided_slice %252 {offsets = [0, 0], sizes = [16, 16], strides = [1, 1]} : vector<16x128xf32> to vector<16x16xf32>
    %268 = arith.truncf %267 : vector<16x16xf32> to vector<16x16xbf16>
    %269 = vector.extract_strided_slice %258 {offsets = [0, 0], sizes = [64, 16], strides = [1, 1]} : vector<64x128xf32> to vector<64x16xf32>
    %270 = arith.truncf %269 : vector<64x16xf32> to vector<64x16xbf16>
    %271 = vector.extract_strided_slice %264 {offsets = [0, 0], sizes = [64, 16], strides = [1, 1]} : vector<64x128xf32> to vector<64x16xf32>
    %272 = arith.truncf %271 : vector<64x16xf32> to vector<64x16xbf16>
    %cst_99 = arith.constant dense<0.000000e+00> : vector<16x64xf32>
    %273 = tpu.matmul %268, %270, %cst_99 {dimension_numbers = #tpu.dot_dimension_numbers<[1], [1], [0], [0], [0, 0, 1, 0], [], []>} : vector<16x16xbf16>, vector<64x16xbf16>, vector<16x64xf32> -> vector<16x64xf32>
    %cst_100 = arith.constant dense<0xFF800000> : vector<16xf32>
    %274 = vector.multi_reduction <maximumf>, %273, %cst_100 [1] : vector<16x64xf32> to vector<16xf32>
    %275 = vector.shape_cast %274 : vector<16xf32> to vector<16x1xf32>
    %276 = vector.broadcast %275 : vector<16x1xf32> to vector<16x64xf32>
    %277 = arith.subf %273, %276 : vector<16x64xf32>
    %278 = math.exp %277 : vector<16x64xf32>
    %cst_101 = arith.constant dense<0.000000e+00> : vector<16xf32>
    %279 = vector.multi_reduction <add>, %278, %cst_101 [1] : vector<16x64xf32> to vector<16xf32>
    %280 = vector.shape_cast %279 : vector<16xf32> to vector<16x1xf32>
    %281 = tpu.reciprocal %280 {approx = true} : vector<16x1xf32> -> vector<16x1xf32>
    %282 = arith.truncf %278 : vector<16x64xf32> to vector<16x64xbf16>
    %cst_102 = arith.constant dense<0.000000e+00> : vector<16x16xf32>
    %283 = tpu.matmul %282, %272, %cst_102 {dimension_numbers = #tpu.dot_dimension_numbers<[1], [0], [0], [1], [0, 0, 1, 1], [], []>} : vector<16x64xbf16>, vector<64x16xbf16>, vector<16x16xf32> -> vector<16x16xf32>
    %284 = vector.broadcast %281 : vector<16x1xf32> to vector<16x16xf32>
    %285 = arith.mulf %283, %284 : vector<16x16xf32>
    %286 = arith.truncf %285 : vector<16x16xf32> to vector<16x16xbf16>
    %287 = vector.extract_strided_slice %265 {offsets = [0, 0], sizes = [16, 128], strides = [1, 1]} : vector<128x128xbf16> to vector<16x128xbf16>
    %cst_103 = arith.constant dense<0.000000e+00> : vector<16x128xf32>
    %288 = tpu.matmul %286, %287, %cst_103 {dimension_numbers = #tpu.dot_dimension_numbers<[1], [0], [0], [1], [0, 0, 1, 1], [], []>} : vector<16x16xbf16>, vector<16x128xbf16>, vector<16x128xf32> -> vector<16x128xf32>
    %289 = arith.addf %266, %288 : vector<16x128xf32>
    %290 = vector.extract_strided_slice %252 {offsets = [0, 16], sizes = [16, 16], strides = [1, 1]} : vector<16x128xf32> to vector<16x16xf32>
    %291 = arith.truncf %290 : vector<16x16xf32> to vector<16x16xbf16>
    %292 = vector.extract_strided_slice %258 {offsets = [0, 16], sizes = [64, 16], strides = [1, 1]} : vector<64x128xf32> to vector<64x16xf32>
    %293 = arith.truncf %292 : vector<64x16xf32> to vector<64x16xbf16>
    %294 = vector.extract_strided_slice %264 {offsets = [0, 16], sizes = [64, 16], strides = [1, 1]} : vector<64x128xf32> to vector<64x16xf32>
    %295 = arith.truncf %294 : vector<64x16xf32> to vector<64x16xbf16>
    %cst_104 = arith.constant dense<0.000000e+00> : vector<16x64xf32>
    %296 = tpu.matmul %291, %293, %cst_104 {dimension_numbers = #tpu.dot_dimension_numbers<[1], [1], [0], [0], [0, 0, 1, 0], [], []>} : vector<16x16xbf16>, vector<64x16xbf16>, vector<16x64xf32> -> vector<16x64xf32>
    %cst_105 = arith.constant dense<0xFF800000> : vector<16xf32>
    %297 = vector.multi_reduction <maximumf>, %296, %cst_105 [1] : vector<16x64xf32> to vector<16xf32>
    %298 = vector.shape_cast %297 : vector<16xf32> to vector<16x1xf32>
    %299 = vector.broadcast %298 : vector<16x1xf32> to vector<16x64xf32>
    %300 = arith.subf %296, %299 : vector<16x64xf32>
    %301 = math.exp %300 : vector<16x64xf32>
    %cst_106 = arith.constant dense<0.000000e+00> : vector<16xf32>
    %302 = vector.multi_reduction <add>, %301, %cst_106 [1] : vector<16x64xf32> to vector<16xf32>
    %303 = vector.shape_cast %302 : vector<16xf32> to vector<16x1xf32>
    %304 = tpu.reciprocal %303 {approx = true} : vector<16x1xf32> -> vector<16x1xf32>
    %305 = arith.truncf %301 : vector<16x64xf32> to vector<16x64xbf16>
    %cst_107 = arith.constant dense<0.000000e+00> : vector<16x16xf32>
    %306 = tpu.matmul %305, %295, %cst_107 {dimension_numbers = #tpu.dot_dimension_numbers<[1], [0], [0], [1], [0, 0, 1, 1], [], []>} : vector<16x64xbf16>, vector<64x16xbf16>, vector<16x16xf32> -> vector<16x16xf32>
    %307 = vector.broadcast %304 : vector<16x1xf32> to vector<16x16xf32>
    %308 = arith.mulf %306, %307 : vector<16x16xf32>
    %309 = arith.truncf %308 : vector<16x16xf32> to vector<16x16xbf16>
    %310 = vector.extract_strided_slice %265 {offsets = [16, 0], sizes = [16, 128], strides = [1, 1]} : vector<128x128xbf16> to vector<16x128xbf16>
    %cst_108 = arith.constant dense<0.000000e+00> : vector<16x128xf32>
    %311 = tpu.matmul %309, %310, %cst_108 {dimension_numbers = #tpu.dot_dimension_numbers<[1], [0], [0], [1], [0, 0, 1, 1], [], []>} : vector<16x16xbf16>, vector<16x128xbf16>, vector<16x128xf32> -> vector<16x128xf32>
    %312 = arith.addf %289, %311 : vector<16x128xf32>
    %313 = vector.extract_strided_slice %252 {offsets = [0, 32], sizes = [16, 16], strides = [1, 1]} : vector<16x128xf32> to vector<16x16xf32>
    %314 = arith.truncf %313 : vector<16x16xf32> to vector<16x16xbf16>
    %315 = vector.extract_strided_slice %258 {offsets = [0, 32], sizes = [64, 16], strides = [1, 1]} : vector<64x128xf32> to vector<64x16xf32>
    %316 = arith.truncf %315 : vector<64x16xf32> to vector<64x16xbf16>
    %317 = vector.extract_strided_slice %264 {offsets = [0, 32], sizes = [64, 16], strides = [1, 1]} : vector<64x128xf32> to vector<64x16xf32>
    %318 = arith.truncf %317 : vector<64x16xf32> to vector<64x16xbf16>
    %cst_109 = arith.constant dense<0.000000e+00> : vector<16x64xf32>
    %319 = tpu.matmul %314, %316, %cst_109 {dimension_numbers = #tpu.dot_dimension_numbers<[1], [1], [0], [0], [0, 0, 1, 0], [], []>} : vector<16x16xbf16>, vector<64x16xbf16>, vector<16x64xf32> -> vector<16x64xf32>
    %cst_110 = arith.constant dense<0xFF800000> : vector<16xf32>
    %320 = vector.multi_reduction <maximumf>, %319, %cst_110 [1] : vector<16x64xf32> to vector<16xf32>
    %321 = vector.shape_cast %320 : vector<16xf32> to vector<16x1xf32>
    %322 = vector.broadcast %321 : vector<16x1xf32> to vector<16x64xf32>
    %323 = arith.subf %319, %322 : vector<16x64xf32>
    %324 = math.exp %323 : vector<16x64xf32>
    %cst_111 = arith.constant dense<0.000000e+00> : vector<16xf32>
    %325 = vector.multi_reduction <add>, %324, %cst_111 [1] : vector<16x64xf32> to vector<16xf32>
    %326 = vector.shape_cast %325 : vector<16xf32> to vector<16x1xf32>
    %327 = tpu.reciprocal %326 {approx = true} : vector<16x1xf32> -> vector<16x1xf32>
    %328 = arith.truncf %324 : vector<16x64xf32> to vector<16x64xbf16>
    %cst_112 = arith.constant dense<0.000000e+00> : vector<16x16xf32>
    %329 = tpu.matmul %328, %318, %cst_112 {dimension_numbers = #tpu.dot_dimension_numbers<[1], [0], [0], [1], [0, 0, 1, 1], [], []>} : vector<16x64xbf16>, vector<64x16xbf16>, vector<16x16xf32> -> vector<16x16xf32>
    %330 = vector.broadcast %327 : vector<16x1xf32> to vector<16x16xf32>
    %331 = arith.mulf %329, %330 : vector<16x16xf32>
    %332 = arith.truncf %331 : vector<16x16xf32> to vector<16x16xbf16>
    %333 = vector.extract_strided_slice %265 {offsets = [32, 0], sizes = [16, 128], strides = [1, 1]} : vector<128x128xbf16> to vector<16x128xbf16>
    %cst_113 = arith.constant dense<0.000000e+00> : vector<16x128xf32>
    %334 = tpu.matmul %332, %333, %cst_113 {dimension_numbers = #tpu.dot_dimension_numbers<[1], [0], [0], [1], [0, 0, 1, 1], [], []>} : vector<16x16xbf16>, vector<16x128xbf16>, vector<16x128xf32> -> vector<16x128xf32>
    %335 = arith.addf %312, %334 : vector<16x128xf32>
    %336 = vector.extract_strided_slice %252 {offsets = [0, 48], sizes = [16, 16], strides = [1, 1]} : vector<16x128xf32> to vector<16x16xf32>
    %337 = arith.truncf %336 : vector<16x16xf32> to vector<16x16xbf16>
    %338 = vector.extract_strided_slice %258 {offsets = [0, 48], sizes = [64, 16], strides = [1, 1]} : vector<64x128xf32> to vector<64x16xf32>
    %339 = arith.truncf %338 : vector<64x16xf32> to vector<64x16xbf16>
    %340 = vector.extract_strided_slice %264 {offsets = [0, 48], sizes = [64, 16], strides = [1, 1]} : vector<64x128xf32> to vector<64x16xf32>
    %341 = arith.truncf %340 : vector<64x16xf32> to vector<64x16xbf16>
    %cst_114 = arith.constant dense<0.000000e+00> : vector<16x64xf32>
    %342 = tpu.matmul %337, %339, %cst_114 {dimension_numbers = #tpu.dot_dimension_numbers<[1], [1], [0], [0], [0, 0, 1, 0], [], []>} : vector<16x16xbf16>, vector<64x16xbf16>, vector<16x64xf32> -> vector<16x64xf32>
    %cst_115 = arith.constant dense<0xFF800000> : vector<16xf32>
    %343 = vector.multi_reduction <maximumf>, %342, %cst_115 [1] : vector<16x64xf32> to vector<16xf32>
    %344 = vector.shape_cast %343 : vector<16xf32> to vector<16x1xf32>
    %345 = vector.broadcast %344 : vector<16x1xf32> to vector<16x64xf32>
    %346 = arith.subf %342, %345 : vector<16x64xf32>
    %347 = math.exp %346 : vector<16x64xf32>
    %cst_116 = arith.constant dense<0.000000e+00> : vector<16xf32>
    %348 = vector.multi_reduction <add>, %347, %cst_116 [1] : vector<16x64xf32> to vector<16xf32>
    %349 = vector.shape_cast %348 : vector<16xf32> to vector<16x1xf32>
    %350 = tpu.reciprocal %349 {approx = true} : vector<16x1xf32> -> vector<16x1xf32>
    %351 = arith.truncf %347 : vector<16x64xf32> to vector<16x64xbf16>
    %cst_117 = arith.constant dense<0.000000e+00> : vector<16x16xf32>
    %352 = tpu.matmul %351, %341, %cst_117 {dimension_numbers = #tpu.dot_dimension_numbers<[1], [0], [0], [1], [0, 0, 1, 1], [], []>} : vector<16x64xbf16>, vector<64x16xbf16>, vector<16x16xf32> -> vector<16x16xf32>
    %353 = vector.broadcast %350 : vector<16x1xf32> to vector<16x16xf32>
    %354 = arith.mulf %352, %353 : vector<16x16xf32>
    %355 = arith.truncf %354 : vector<16x16xf32> to vector<16x16xbf16>
    %356 = vector.extract_strided_slice %265 {offsets = [48, 0], sizes = [16, 128], strides = [1, 1]} : vector<128x128xbf16> to vector<16x128xbf16>
    %cst_118 = arith.constant dense<0.000000e+00> : vector<16x128xf32>
    %357 = tpu.matmul %355, %356, %cst_118 {dimension_numbers = #tpu.dot_dimension_numbers<[1], [0], [0], [1], [0, 0, 1, 1], [], []>} : vector<16x16xbf16>, vector<16x128xbf16>, vector<16x128xf32> -> vector<16x128xf32>
    %358 = arith.addf %335, %357 : vector<16x128xf32>
    %359 = vector.extract_strided_slice %252 {offsets = [0, 64], sizes = [16, 16], strides = [1, 1]} : vector<16x128xf32> to vector<16x16xf32>
    %360 = arith.truncf %359 : vector<16x16xf32> to vector<16x16xbf16>
    %361 = vector.extract_strided_slice %258 {offsets = [0, 64], sizes = [64, 16], strides = [1, 1]} : vector<64x128xf32> to vector<64x16xf32>
    %362 = arith.truncf %361 : vector<64x16xf32> to vector<64x16xbf16>
    %363 = vector.extract_strided_slice %264 {offsets = [0, 64], sizes = [64, 16], strides = [1, 1]} : vector<64x128xf32> to vector<64x16xf32>
    %364 = arith.truncf %363 : vector<64x16xf32> to vector<64x16xbf16>
    %cst_119 = arith.constant dense<0.000000e+00> : vector<16x64xf32>
    %365 = tpu.matmul %360, %362, %cst_119 {dimension_numbers = #tpu.dot_dimension_numbers<[1], [1], [0], [0], [0, 0, 1, 0], [], []>} : vector<16x16xbf16>, vector<64x16xbf16>, vector<16x64xf32> -> vector<16x64xf32>
    %cst_120 = arith.constant dense<0xFF800000> : vector<16xf32>
    %366 = vector.multi_reduction <maximumf>, %365, %cst_120 [1] : vector<16x64xf32> to vector<16xf32>
    %367 = vector.shape_cast %366 : vector<16xf32> to vector<16x1xf32>
    %368 = vector.broadcast %367 : vector<16x1xf32> to vector<16x64xf32>
    %369 = arith.subf %365, %368 : vector<16x64xf32>
    %370 = math.exp %369 : vector<16x64xf32>
    %cst_121 = arith.constant dense<0.000000e+00> : vector<16xf32>
    %371 = vector.multi_reduction <add>, %370, %cst_121 [1] : vector<16x64xf32> to vector<16xf32>
    %372 = vector.shape_cast %371 : vector<16xf32> to vector<16x1xf32>
    %373 = tpu.reciprocal %372 {approx = true} : vector<16x1xf32> -> vector<16x1xf32>
    %374 = arith.truncf %370 : vector<16x64xf32> to vector<16x64xbf16>
    %cst_122 = arith.constant dense<0.000000e+00> : vector<16x16xf32>
    %375 = tpu.matmul %374, %364, %cst_122 {dimension_numbers = #tpu.dot_dimension_numbers<[1], [0], [0], [1], [0, 0, 1, 1], [], []>} : vector<16x64xbf16>, vector<64x16xbf16>, vector<16x16xf32> -> vector<16x16xf32>
    %376 = vector.broadcast %373 : vector<16x1xf32> to vector<16x16xf32>
    %377 = arith.mulf %375, %376 : vector<16x16xf32>
    %378 = arith.truncf %377 : vector<16x16xf32> to vector<16x16xbf16>
    %379 = vector.extract_strided_slice %265 {offsets = [64, 0], sizes = [16, 128], strides = [1, 1]} : vector<128x128xbf16> to vector<16x128xbf16>
    %cst_123 = arith.constant dense<0.000000e+00> : vector<16x128xf32>
    %380 = tpu.matmul %378, %379, %cst_123 {dimension_numbers = #tpu.dot_dimension_numbers<[1], [0], [0], [1], [0, 0, 1, 1], [], []>} : vector<16x16xbf16>, vector<16x128xbf16>, vector<16x128xf32> -> vector<16x128xf32>
    %381 = arith.addf %358, %380 : vector<16x128xf32>
    %382 = vector.extract_strided_slice %252 {offsets = [0, 80], sizes = [16, 16], strides = [1, 1]} : vector<16x128xf32> to vector<16x16xf32>
    %383 = arith.truncf %382 : vector<16x16xf32> to vector<16x16xbf16>
    %384 = vector.extract_strided_slice %258 {offsets = [0, 80], sizes = [64, 16], strides = [1, 1]} : vector<64x128xf32> to vector<64x16xf32>
    %385 = arith.truncf %384 : vector<64x16xf32> to vector<64x16xbf16>
    %386 = vector.extract_strided_slice %264 {offsets = [0, 80], sizes = [64, 16], strides = [1, 1]} : vector<64x128xf32> to vector<64x16xf32>
    %387 = arith.truncf %386 : vector<64x16xf32> to vector<64x16xbf16>
    %cst_124 = arith.constant dense<0.000000e+00> : vector<16x64xf32>
    %388 = tpu.matmul %383, %385, %cst_124 {dimension_numbers = #tpu.dot_dimension_numbers<[1], [1], [0], [0], [0, 0, 1, 0], [], []>} : vector<16x16xbf16>, vector<64x16xbf16>, vector<16x64xf32> -> vector<16x64xf32>
    %cst_125 = arith.constant dense<0xFF800000> : vector<16xf32>
    %389 = vector.multi_reduction <maximumf>, %388, %cst_125 [1] : vector<16x64xf32> to vector<16xf32>
    %390 = vector.shape_cast %389 : vector<16xf32> to vector<16x1xf32>
    %391 = vector.broadcast %390 : vector<16x1xf32> to vector<16x64xf32>
    %392 = arith.subf %388, %391 : vector<16x64xf32>
    %393 = math.exp %392 : vector<16x64xf32>
    %cst_126 = arith.constant dense<0.000000e+00> : vector<16xf32>
    %394 = vector.multi_reduction <add>, %393, %cst_126 [1] : vector<16x64xf32> to vector<16xf32>
    %395 = vector.shape_cast %394 : vector<16xf32> to vector<16x1xf32>
    %396 = tpu.reciprocal %395 {approx = true} : vector<16x1xf32> -> vector<16x1xf32>
    %397 = arith.truncf %393 : vector<16x64xf32> to vector<16x64xbf16>
    %cst_127 = arith.constant dense<0.000000e+00> : vector<16x16xf32>
    %398 = tpu.matmul %397, %387, %cst_127 {dimension_numbers = #tpu.dot_dimension_numbers<[1], [0], [0], [1], [0, 0, 1, 1], [], []>} : vector<16x64xbf16>, vector<64x16xbf16>, vector<16x16xf32> -> vector<16x16xf32>
    %399 = vector.broadcast %396 : vector<16x1xf32> to vector<16x16xf32>
    %400 = arith.mulf %398, %399 : vector<16x16xf32>
    %401 = arith.truncf %400 : vector<16x16xf32> to vector<16x16xbf16>
    %402 = vector.extract_strided_slice %265 {offsets = [80, 0], sizes = [16, 128], strides = [1, 1]} : vector<128x128xbf16> to vector<16x128xbf16>
    %cst_128 = arith.constant dense<0.000000e+00> : vector<16x128xf32>
    %403 = tpu.matmul %401, %402, %cst_128 {dimension_numbers = #tpu.dot_dimension_numbers<[1], [0], [0], [1], [0, 0, 1, 1], [], []>} : vector<16x16xbf16>, vector<16x128xbf16>, vector<16x128xf32> -> vector<16x128xf32>
    %404 = arith.addf %381, %403 : vector<16x128xf32>
    %405 = vector.extract_strided_slice %252 {offsets = [0, 96], sizes = [16, 16], strides = [1, 1]} : vector<16x128xf32> to vector<16x16xf32>
    %406 = arith.truncf %405 : vector<16x16xf32> to vector<16x16xbf16>
    %407 = vector.extract_strided_slice %258 {offsets = [0, 96], sizes = [64, 16], strides = [1, 1]} : vector<64x128xf32> to vector<64x16xf32>
    %408 = arith.truncf %407 : vector<64x16xf32> to vector<64x16xbf16>
    %409 = vector.extract_strided_slice %264 {offsets = [0, 96], sizes = [64, 16], strides = [1, 1]} : vector<64x128xf32> to vector<64x16xf32>
    %410 = arith.truncf %409 : vector<64x16xf32> to vector<64x16xbf16>
    %cst_129 = arith.constant dense<0.000000e+00> : vector<16x64xf32>
    %411 = tpu.matmul %406, %408, %cst_129 {dimension_numbers = #tpu.dot_dimension_numbers<[1], [1], [0], [0], [0, 0, 1, 0], [], []>} : vector<16x16xbf16>, vector<64x16xbf16>, vector<16x64xf32> -> vector<16x64xf32>
    %cst_130 = arith.constant dense<0xFF800000> : vector<16xf32>
    %412 = vector.multi_reduction <maximumf>, %411, %cst_130 [1] : vector<16x64xf32> to vector<16xf32>
    %413 = vector.shape_cast %412 : vector<16xf32> to vector<16x1xf32>
    %414 = vector.broadcast %413 : vector<16x1xf32> to vector<16x64xf32>
    %415 = arith.subf %411, %414 : vector<16x64xf32>
    %416 = math.exp %415 : vector<16x64xf32>
    %cst_131 = arith.constant dense<0.000000e+00> : vector<16xf32>
    %417 = vector.multi_reduction <add>, %416, %cst_131 [1] : vector<16x64xf32> to vector<16xf32>
    %418 = vector.shape_cast %417 : vector<16xf32> to vector<16x1xf32>
    %419 = tpu.reciprocal %418 {approx = true} : vector<16x1xf32> -> vector<16x1xf32>
    %420 = arith.truncf %416 : vector<16x64xf32> to vector<16x64xbf16>
    %cst_132 = arith.constant dense<0.000000e+00> : vector<16x16xf32>
    %421 = tpu.matmul %420, %410, %cst_132 {dimension_numbers = #tpu.dot_dimension_numbers<[1], [0], [0], [1], [0, 0, 1, 1], [], []>} : vector<16x64xbf16>, vector<64x16xbf16>, vector<16x16xf32> -> vector<16x16xf32>
    %422 = vector.broadcast %419 : vector<16x1xf32> to vector<16x16xf32>
    %423 = arith.mulf %421, %422 : vector<16x16xf32>
    %424 = arith.truncf %423 : vector<16x16xf32> to vector<16x16xbf16>
    %425 = vector.extract_strided_slice %265 {offsets = [96, 0], sizes = [16, 128], strides = [1, 1]} : vector<128x128xbf16> to vector<16x128xbf16>
    %cst_133 = arith.constant dense<0.000000e+00> : vector<16x128xf32>
    %426 = tpu.matmul %424, %425, %cst_133 {dimension_numbers = #tpu.dot_dimension_numbers<[1], [0], [0], [1], [0, 0, 1, 1], [], []>} : vector<16x16xbf16>, vector<16x128xbf16>, vector<16x128xf32> -> vector<16x128xf32>
    %427 = arith.addf %404, %426 : vector<16x128xf32>
    %428 = vector.extract_strided_slice %252 {offsets = [0, 112], sizes = [16, 16], strides = [1, 1]} : vector<16x128xf32> to vector<16x16xf32>
    %429 = arith.truncf %428 : vector<16x16xf32> to vector<16x16xbf16>
    %430 = vector.extract_strided_slice %258 {offsets = [0, 112], sizes = [64, 16], strides = [1, 1]} : vector<64x128xf32> to vector<64x16xf32>
    %431 = arith.truncf %430 : vector<64x16xf32> to vector<64x16xbf16>
    %432 = vector.extract_strided_slice %264 {offsets = [0, 112], sizes = [64, 16], strides = [1, 1]} : vector<64x128xf32> to vector<64x16xf32>
    %433 = arith.truncf %432 : vector<64x16xf32> to vector<64x16xbf16>
    %cst_134 = arith.constant dense<0.000000e+00> : vector<16x64xf32>
    %434 = tpu.matmul %429, %431, %cst_134 {dimension_numbers = #tpu.dot_dimension_numbers<[1], [1], [0], [0], [0, 0, 1, 0], [], []>} : vector<16x16xbf16>, vector<64x16xbf16>, vector<16x64xf32> -> vector<16x64xf32>
    %cst_135 = arith.constant dense<0xFF800000> : vector<16xf32>
    %435 = vector.multi_reduction <maximumf>, %434, %cst_135 [1] : vector<16x64xf32> to vector<16xf32>
    %436 = vector.shape_cast %435 : vector<16xf32> to vector<16x1xf32>
    %437 = vector.broadcast %436 : vector<16x1xf32> to vector<16x64xf32>
    %438 = arith.subf %434, %437 : vector<16x64xf32>
    %439 = math.exp %438 : vector<16x64xf32>
    %cst_136 = arith.constant dense<0.000000e+00> : vector<16xf32>
    %440 = vector.multi_reduction <add>, %439, %cst_136 [1] : vector<16x64xf32> to vector<16xf32>
    %441 = vector.shape_cast %440 : vector<16xf32> to vector<16x1xf32>
    %442 = tpu.reciprocal %441 {approx = true} : vector<16x1xf32> -> vector<16x1xf32>
    %443 = arith.truncf %439 : vector<16x64xf32> to vector<16x64xbf16>
    %cst_137 = arith.constant dense<0.000000e+00> : vector<16x16xf32>
    %444 = tpu.matmul %443, %433, %cst_137 {dimension_numbers = #tpu.dot_dimension_numbers<[1], [0], [0], [1], [0, 0, 1, 1], [], []>} : vector<16x64xbf16>, vector<64x16xbf16>, vector<16x16xf32> -> vector<16x16xf32>
    %445 = vector.broadcast %442 : vector<16x1xf32> to vector<16x16xf32>
    %446 = arith.mulf %444, %445 : vector<16x16xf32>
    %447 = arith.truncf %446 : vector<16x16xf32> to vector<16x16xbf16>
    %448 = vector.extract_strided_slice %265 {offsets = [112, 0], sizes = [16, 128], strides = [1, 1]} : vector<128x128xbf16> to vector<16x128xbf16>
    %cst_138 = arith.constant dense<0.000000e+00> : vector<16x128xf32>
    %449 = tpu.matmul %447, %448, %cst_138 {dimension_numbers = #tpu.dot_dimension_numbers<[1], [0], [0], [1], [0, 0, 1, 1], [], []>} : vector<16x16xbf16>, vector<16x128xbf16>, vector<16x128xf32> -> vector<16x128xf32>
    %450 = arith.addf %427, %449 : vector<16x128xf32>
    %c0_139 = arith.constant 0 : index
    %c0_140 = arith.constant 0 : index
    %451 = vector.load %arg22[%c0_139, %c0_140] : memref<1x128xf32, #tpu.memory_space<vmem>>, vector<1x128xf32>
    %452 = vector.broadcast %451 : vector<1x128xf32> to vector<16x128xf32>
    %453 = arith.addf %450, %452 : vector<16x128xf32>
    %454 = arith.addf %242, %453 : vector<16x128xf32>
    %cst_141 = arith.constant dense<0.000000e+00> : vector<16xf32>
    %455 = vector.multi_reduction <add>, %454, %cst_141 [1] : vector<16x128xf32> to vector<16xf32>
    %456 = vector.shape_cast %455 : vector<16xf32> to vector<16x1xf32>
    %cst_142 = arith.constant 1.280000e+02 : f32
    %457 = vector.broadcast %cst_142 : f32 to vector<16x1xf32>
    %458 = arith.divf %456, %457 : vector<16x1xf32>
    %459 = vector.broadcast %458 : vector<16x1xf32> to vector<16x128xf32>
    %460 = arith.subf %454, %459 : vector<16x128xf32>
    %461 = arith.mulf %460, %460 : vector<16x128xf32>
    %cst_143 = arith.constant dense<0.000000e+00> : vector<16xf32>
    %462 = vector.multi_reduction <add>, %461, %cst_143 [1] : vector<16x128xf32> to vector<16xf32>
    %463 = vector.shape_cast %462 : vector<16xf32> to vector<16x1xf32>
    %cst_144 = arith.constant 1.280000e+02 : f32
    %464 = vector.broadcast %cst_144 : f32 to vector<16x1xf32>
    %465 = arith.divf %463, %464 : vector<16x1xf32>
    %466 = vector.broadcast %458 : vector<16x1xf32> to vector<16x128xf32>
    %467 = arith.subf %454, %466 : vector<16x128xf32>
    %cst_145 = arith.constant 9.99999974E-6 : f32
    %468 = vector.broadcast %cst_145 : f32 to vector<16x1xf32>
    %469 = arith.addf %465, %468 : vector<16x1xf32>
    %470 = math.rsqrt %469 : vector<16x1xf32>
    %471 = vector.broadcast %470 : vector<16x1xf32> to vector<16x128xf32>
    %472 = arith.mulf %467, %471 : vector<16x128xf32>
    %c0_146 = arith.constant 0 : index
    %c0_147 = arith.constant 0 : index
    %473 = vector.load %arg23[%c0_146, %c0_147] : memref<1x128xf32, #tpu.memory_space<vmem>>, vector<1x128xf32>
    %474 = vector.broadcast %473 : vector<1x128xf32> to vector<16x128xf32>
    %475 = arith.mulf %472, %474 : vector<16x128xf32>
    %c0_148 = arith.constant 0 : index
    %c0_149 = arith.constant 0 : index
    %476 = vector.load %arg24[%c0_148, %c0_149] : memref<1x128xf32, #tpu.memory_space<vmem>>, vector<1x128xf32>
    %477 = vector.broadcast %476 : vector<1x128xf32> to vector<16x128xf32>
    %478 = arith.addf %475, %477 : vector<16x128xf32>
    %479 = arith.truncf %478 : vector<16x128xf32> to vector<16x128xbf16>
    %c0_150 = arith.constant 0 : index
    %c0_151 = arith.constant 0 : index
    %480 = vector.load %arg25[%c0_150, %c0_151] : memref<128x256xbf16, #tpu.memory_space<vmem>>, vector<128x256xbf16>
    %cst_152 = arith.constant dense<0.000000e+00> : vector<16x256xf32>
    %481 = tpu.matmul %479, %480, %cst_152 {dimension_numbers = #tpu.dot_dimension_numbers<[1], [0], [0], [1], [0, 0, 1, 1], [], []>} : vector<16x128xbf16>, vector<128x256xbf16>, vector<16x256xf32> -> vector<16x256xf32>
    %c0_153 = arith.constant 0 : index
    %c0_154 = arith.constant 0 : index
    %482 = vector.load %arg26[%c0_153, %c0_154] : memref<1x256xf32, #tpu.memory_space<vmem>>, vector<1x256xf32>
    %483 = vector.broadcast %482 : vector<1x256xf32> to vector<16x256xf32>
    %484 = arith.addf %481, %483 : vector<16x256xf32>
    %cst_155 = arith.constant 0.000000e+00 : f32
    %485 = vector.broadcast %cst_155 : f32 to vector<16x256xf32>
    %486 = arith.maximumf %484, %485 : vector<16x256xf32>
    %487 = arith.truncf %486 : vector<16x256xf32> to vector<16x256xbf16>
    %c0_156 = arith.constant 0 : index
    %c0_157 = arith.constant 0 : index
    %488 = vector.load %arg27[%c0_156, %c0_157] : memref<256x128xbf16, #tpu.memory_space<vmem>>, vector<256x128xbf16>
    %cst_158 = arith.constant dense<0.000000e+00> : vector<16x128xf32>
    %489 = tpu.matmul %487, %488, %cst_158 {dimension_numbers = #tpu.dot_dimension_numbers<[1], [0], [0], [1], [0, 0, 1, 1], [], []>} : vector<16x256xbf16>, vector<256x128xbf16>, vector<16x128xf32> -> vector<16x128xf32>
    %c0_159 = arith.constant 0 : index
    %c0_160 = arith.constant 0 : index
    %490 = vector.load %arg28[%c0_159, %c0_160] : memref<1x128xf32, #tpu.memory_space<vmem>>, vector<1x128xf32>
    %491 = vector.broadcast %490 : vector<1x128xf32> to vector<16x128xf32>
    %492 = arith.addf %489, %491 : vector<16x128xf32>
    %493 = arith.addf %478, %492 : vector<16x128xf32>
    %cst_161 = arith.constant dense<0.000000e+00> : vector<16xf32>
    %494 = vector.multi_reduction <add>, %493, %cst_161 [1] : vector<16x128xf32> to vector<16xf32>
    %495 = vector.shape_cast %494 : vector<16xf32> to vector<16x1xf32>
    %cst_162 = arith.constant 1.280000e+02 : f32
    %496 = vector.broadcast %cst_162 : f32 to vector<16x1xf32>
    %497 = arith.divf %495, %496 : vector<16x1xf32>
    %498 = vector.broadcast %497 : vector<16x1xf32> to vector<16x128xf32>
    %499 = arith.subf %493, %498 : vector<16x128xf32>
    %500 = arith.mulf %499, %499 : vector<16x128xf32>
    %cst_163 = arith.constant dense<0.000000e+00> : vector<16xf32>
    %501 = vector.multi_reduction <add>, %500, %cst_163 [1] : vector<16x128xf32> to vector<16xf32>
    %502 = vector.shape_cast %501 : vector<16xf32> to vector<16x1xf32>
    %cst_164 = arith.constant 1.280000e+02 : f32
    %503 = vector.broadcast %cst_164 : f32 to vector<16x1xf32>
    %504 = arith.divf %502, %503 : vector<16x1xf32>
    %505 = vector.broadcast %497 : vector<16x1xf32> to vector<16x128xf32>
    %506 = arith.subf %493, %505 : vector<16x128xf32>
    %cst_165 = arith.constant 9.99999974E-6 : f32
    %507 = vector.broadcast %cst_165 : f32 to vector<16x1xf32>
    %508 = arith.addf %504, %507 : vector<16x1xf32>
    %509 = math.rsqrt %508 : vector<16x1xf32>
    %510 = vector.broadcast %509 : vector<16x1xf32> to vector<16x128xf32>
    %511 = arith.mulf %506, %510 : vector<16x128xf32>
    %c0_166 = arith.constant 0 : index
    %c0_167 = arith.constant 0 : index
    %512 = vector.load %arg29[%c0_166, %c0_167] : memref<1x128xf32, #tpu.memory_space<vmem>>, vector<1x128xf32>
    %513 = vector.broadcast %512 : vector<1x128xf32> to vector<16x128xf32>
    %514 = arith.mulf %511, %513 : vector<16x128xf32>
    %c0_168 = arith.constant 0 : index
    %c0_169 = arith.constant 0 : index
    %515 = vector.load %arg30[%c0_168, %c0_169] : memref<1x128xf32, #tpu.memory_space<vmem>>, vector<1x128xf32>
    %516 = vector.broadcast %515 : vector<1x128xf32> to vector<16x128xf32>
    %517 = arith.addf %514, %516 : vector<16x128xf32>
    %c0_170 = arith.constant 0 : index
    %c0_171 = arith.constant 0 : index
    %c0_172 = arith.constant 0 : index
    %518 = vector.load %arg31[%c0_170, %c0_171, %c0_172] : memref<1x16x128xf32, #tpu.memory_space<vmem>>, vector<1x16x128xf32>
    %519 = vector.shape_cast %518 : vector<1x16x128xf32> to vector<16x128xf32>
    %520 = vector.shape_cast %517 : vector<16x128xf32> to vector<1x16x128xf32>
    tpu.vector_store %arg31[%c0_170, %c0_171, %c0_172], %520 {strides = array<i32>} : memref<1x16x128xf32, #tpu.memory_space<vmem>>, vector<1x16x128xf32>,
    return
  }
  func.func @transform_0(%arg0: i32) -> (i32, i32, i32) {
    %c0_i32 = arith.constant 0 : i32
    %c0_i32_0 = arith.constant 0 : i32
    %c0_i32_1 = arith.constant 0 : i32
    return %arg0, %c0_i32, %c0_i32_0 : i32, i32, i32
  }
  func.func @transform_1(%arg0: i32) -> (i32, i32, i32) {
    %c0_i32 = arith.constant 0 : i32
    %c0_i32_0 = arith.constant 0 : i32
    %c0_i32_1 = arith.constant 0 : i32
    return %arg0, %c0_i32, %c0_i32_0 : i32, i32, i32
  }
  func.func @transform_2(%arg0: i32) -> (i32, i32, i32) {
    %c0_i32 = arith.constant 0 : i32
    %c0_i32_0 = arith.constant 0 : i32
    %c0_i32_1 = arith.constant 0 : i32
    return %arg0, %c0_i32, %c0_i32_0 : i32, i32, i32
  }
  func.func @transform_3(%arg0: i32) -> (i32, i32, i32) {
    %c0_i32 = arith.constant 0 : i32
    %c0_i32_0 = arith.constant 0 : i32
    %c0_i32_1 = arith.constant 0 : i32
    return %arg0, %c0_i32, %c0_i32_0 : i32, i32, i32
  }
  func.func @transform_4(%arg0: i32) -> (i32, i32) {
    %c0_i32 = arith.constant 0 : i32
    %c0_i32_0 = arith.constant 0 : i32
    %c0_i32_1 = arith.constant 0 : i32
    return %c0_i32, %c0_i32_0 : i32, i32
  }
  func.func @transform_5(%arg0: i32) -> (i32, i32) {
    %c0_i32 = arith.constant 0 : i32
    %c0_i32_0 = arith.constant 0 : i32
    %c0_i32_1 = arith.constant 0 : i32
    return %c0_i32, %c0_i32_0 : i32, i32
  }
  func.func @transform_6(%arg0: i32) -> (i32, i32) {
    %c0_i32 = arith.constant 0 : i32
    %c0_i32_0 = arith.constant 0 : i32
    %c0_i32_1 = arith.constant 0 : i32
    return %c0_i32, %c0_i32_0 : i32, i32
  }
  func.func @transform_7(%arg0: i32) -> (i32, i32) {
    %c0_i32 = arith.constant 0 : i32
    %c0_i32_0 = arith.constant 0 : i32
    %c0_i32_1 = arith.constant 0 : i32
    return %c0_i32, %c0_i32_0 : i32, i32
  }
  func.func @transform_8(%arg0: i32) -> (i32, i32) {
    %c0_i32 = arith.constant 0 : i32
    %c0_i32_0 = arith.constant 0 : i32
    %c0_i32_1 = arith.constant 0 : i32
    return %c0_i32, %c0_i32_0 : i32, i32
  }
  func.func @transform_9(%arg0: i32) -> (i32, i32) {
    %c0_i32 = arith.constant 0 : i32
    %c0_i32_0 = arith.constant 0 : i32
    %c0_i32_1 = arith.constant 0 : i32
    return %c0_i32, %c0_i32_0 : i32, i32
  }
  func.func @transform_10(%arg0: i32) -> (i32, i32) {
    %c0_i32 = arith.constant 0 : i32
    %c0_i32_0 = arith.constant 0 : i32
    %c0_i32_1 = arith.constant 0 : i32
    return %c0_i32, %c0_i32_0 : i32, i32
  }
  func.func @transform_11(%arg0: i32) -> (i32, i32) {
    %c0_i32 = arith.constant 0 : i32
    %c0_i32_0 = arith.constant 0 : i32
    %c0_i32_1 = arith.constant 0 : i32
    return %c0_i32, %c0_i32_0 : i32, i32
  }
  func.func @transform_12(%arg0: i32) -> (i32, i32) {
    %c0_i32 = arith.constant 0 : i32
    %c0_i32_0 = arith.constant 0 : i32
    %c0_i32_1 = arith.constant 0 : i32
    return %c0_i32, %c0_i32_0 : i32, i32
  }
  func.func @transform_13(%arg0: i32) -> (i32, i32) {
    %c0_i32 = arith.constant 0 : i32
    %c0_i32_0 = arith.constant 0 : i32
    %c0_i32_1 = arith.constant 0 : i32
    return %c0_i32, %c0_i32_0 : i32, i32
  }
  func.func @transform_14(%arg0: i32) -> (i32, i32) {
    %c0_i32 = arith.constant 0 : i32
    %c0_i32_0 = arith.constant 0 : i32
    %c0_i32_1 = arith.constant 0 : i32
    return %c0_i32, %c0_i32_0 : i32, i32
  }
  func.func @transform_15(%arg0: i32) -> (i32, i32) {
    %c0_i32 = arith.constant 0 : i32
    %c0_i32_0 = arith.constant 0 : i32
    %c0_i32_1 = arith.constant 0 : i32
    return %c0_i32, %c0_i32_0 : i32, i32
  }
  func.func @transform_16(%arg0: i32) -> (i32, i32) {
    %c0_i32 = arith.constant 0 : i32
    %c0_i32_0 = arith.constant 0 : i32
    %c0_i32_1 = arith.constant 0 : i32
    return %c0_i32, %c0_i32_0 : i32, i32
  }
  func.func @transform_17(%arg0: i32) -> (i32, i32) {
    %c0_i32 = arith.constant 0 : i32
    %c0_i32_0 = arith.constant 0 : i32
    %c0_i32_1 = arith.constant 0 : i32
    return %c0_i32, %c0_i32_0 : i32, i32
  }
  func.func @transform_18(%arg0: i32) -> (i32, i32) {
    %c0_i32 = arith.constant 0 : i32
    %c0_i32_0 = arith.constant 0 : i32
    %c0_i32_1 = arith.constant 0 : i32
    return %c0_i32, %c0_i32_0 : i32, i32
  }
  func.func @transform_19(%arg0: i32) -> (i32, i32) {
    %c0_i32 = arith.constant 0 : i32
    %c0_i32_0 = arith.constant 0 : i32
    %c0_i32_1 = arith.constant 0 : i32
    return %c0_i32, %c0_i32_0 : i32, i32
  }
  func.func @transform_20(%arg0: i32) -> (i32, i32) {
    %c0_i32 = arith.constant 0 : i32
    %c0_i32_0 = arith.constant 0 : i32
    %c0_i32_1 = arith.constant 0 : i32
    return %c0_i32, %c0_i32_0 : i32, i32
  }
  func.func @transform_21(%arg0: i32) -> (i32, i32) {
    %c0_i32 = arith.constant 0 : i32
    %c0_i32_0 = arith.constant 0 : i32
    %c0_i32_1 = arith.constant 0 : i32
    return %c0_i32, %c0_i32_0 : i32, i32
  }
  func.func @transform_22(%arg0: i32) -> (i32, i32) {
    %c0_i32 = arith.constant 0 : i32
    %c0_i32_0 = arith.constant 0 : i32
    %c0_i32_1 = arith.constant 0 : i32
    return %c0_i32, %c0_i32_0 : i32, i32
  }
  func.func @transform_23(%arg0: i32) -> (i32, i32) {
    %c0_i32 = arith.constant 0 : i32
    %c0_i32_0 = arith.constant 0 : i32
    %c0_i32_1 = arith.constant 0 : i32
    return %c0_i32, %c0_i32_0 : i32, i32
  }
  func.func @transform_24(%arg0: i32) -> (i32, i32) {
    %c0_i32 = arith.constant 0 : i32
    %c0_i32_0 = arith.constant 0 : i32
    %c0_i32_1 = arith.constant 0 : i32
    return %c0_i32, %c0_i32_0 : i32, i32
  }
  func.func @transform_25(%arg0: i32) -> (i32, i32) {
    %c0_i32 = arith.constant 0 : i32
    %c0_i32_0 = arith.constant 0 : i32
    %c0_i32_1 = arith.constant 0 : i32
    return %c0_i32, %c0_i32_0 : i32, i32
  }
  func.func @transform_26(%arg0: i32) -> (i32, i32) {
    %c0_i32 = arith.constant 0 : i32
    %c0_i32_0 = arith.constant 0 : i32
    %c0_i32_1 = arith.constant 0 : i32
    return %c0_i32, %c0_i32_0 : i32, i32
  }
  func.func @transform_27(%arg0: i32) -> (i32, i32) {
    %c0_i32 = arith.constant 0 : i32
    %c0_i32_0 = arith.constant 0 : i32
    %c0_i32_1 = arith.constant 0 : i32
    return %c0_i32, %c0_i32_0 : i32, i32
  }
  func.func @transform_28(%arg0: i32) -> (i32, i32) {
    %c0_i32 = arith.constant 0 : i32
    %c0_i32_0 = arith.constant 0 : i32
    %c0_i32_1 = arith.constant 0 : i32
    return %c0_i32, %c0_i32_0 : i32, i32
  }
  func.func @transform_29(%arg0: i32) -> (i32, i32) {
    %c0_i32 = arith.constant 0 : i32
    %c0_i32_0 = arith.constant 0 : i32
    %c0_i32_1 = arith.constant 0 : i32
    return %c0_i32, %c0_i32_0 : i32, i32
  }
  func.func @transform_30(%arg0: i32) -> (i32, i32, i32) {
    %c0_i32 = arith.constant 0 : i32
    %c0_i32_0 = arith.constant 0 : i32
    %c0_i32_1 = arith.constant 0 : i32
    return %arg0, %c0_i32, %c0_i32_0 : i32, i32, i32
  }
}

</mosaic_0001>

<bundles_post_ra>
// kernel: decoder_layer_forward.1
= control target key start
LH: loop header
LB: loop body
LE: loop exit
PB: predicated region body
PF: predicated region fallthrough
CT: control target
= control target key end

     0   :  { %s6787_s6 = smov 1   ;;  %s6788_s10 = smov 2   ;;  %s7921_s0 = inlined_call_operand.smem [shape: u32[31], index: -1, kind: input, shape index: {}] }
   0x1   :  { %s6840_s5 = sld [smem:[%s7921_s0]]   ;;  %s6789_s14 = smov 3  }
   0x2   :  { %s6845_s9 = sld [smem:[%s7921_s0 + %s6787_s6]]   ;;  %s6790_s18 = smov 4  }
   0x3   :  { %s6850_s13 = sld [smem:[%s7921_s0 + %s6788_s10]]   ;;  %s6791_s22 = smov 5  }
   0x4   :  { %s6855_s17 = sld [smem:[%s7921_s0 + %s6789_s14]]   ;;  %s6792_s26 = smov 6  }
   0x5   :  { %s6860_s21 = sld [smem:[%s7921_s0 + %s6790_s18]]   ;;  %s6793_s30 = smov 7  }
   0x6   :  { %s6865_s25 = sld [smem:[%s7921_s0 + %s6791_s22]]   ;;  %s6794_s4 = smov 8  }
   0x7   :  { %s6870_s29 = sld [smem:[%s7921_s0 + %s6792_s26]]   ;;  %s6795_s10 = smov 9  }
   0x8   :  { %s6875_s3 = sld [smem:[%s7921_s0 + %s6793_s30]]   ;;  %s6796_s15 = smov 10  }
   0x9   :  { %s6880_s8 = sld [smem:[%s7921_s0 + %s6794_s4]]   ;;  %s6797_s20 = smov 11  }
   0xa   :  { %7935 = sst [smem:[#allocation9_spill]] %s6855_s17  ;;  %s6798_s26 = smov 12  }
   0xb   :  { %s6885_s14 = sld [smem:[%s7921_s0 + %s6795_s10]]   ;;  %s6799_s1 = smov 13  }
   0xc   :  { %s6890_s19 = sld [smem:[%s7921_s0 + %s6796_s15]]   ;;  %s6800_s7 = smov 14  }
   0xd   :  { %s6895_s24 = sld [smem:[%s7921_s0 + %s6797_s20]]   ;;  %s6801_s15 = smov 15  }
   0xe   :  { %s6900_s30 = sld [smem:[%s7921_s0 + %s6798_s26]]   ;;  %s6802_s22 = smov 16  }
   0xf   :  { %s6905_s6 = sld [smem:[%s7921_s0 + %s6799_s1]]   ;;  %s6803_s28 = smov 17  }
  0x10   :  { %s6910_s12 = sld [smem:[%s7921_s0 + %s6800_s7]]   ;;  %s6804_s7 = smov 18  }
  0x11   :  { %s6915_s20 = sld [smem:[%s7921_s0 + %s6801_s15]]   ;;  %s6805_s15 = smov 19  }
  0x12   :  { %s6920_s27 = sld [smem:[%s7921_s0 + %s6802_s22]]   ;;  %s6806_s22 = smov 20  }
  0x13   :  { %s6925_s4 = sld [smem:[%s7921_s0 + %s6803_s28]]   ;;  %s6807_s28 = smov 21  }
  0x14   :  { %7936 = sst [smem:[#allocation10_spill]] %s6900_s30 }
  0x15   :  { %7937 = sst [smem:[#allocation11_spill]] %s6905_s6 }
  0x16   :  { %7938 = sst [smem:[#allocation12_spill]] %s6910_s12 }
  0x17   :  { %7939 = sst [smem:[#allocation13_spill]] %s6915_s20 }
  0x18   :  { %s6930_s6 = sld [smem:[%s7921_s0 + %s6804_s7]]   ;;  %s6808_s7 = smov 22  }
  0x19   :  { %7940 = sst [smem:[#allocation14_spill]] %s6925_s4 }
  0x1a   :  { %s6935_s20 = sld [smem:[%s7921_s0 + %s6805_s15]]   ;;  %s6809_s15 = smov 23  }
  0x1b   :  { %s6940_s30 = sld [smem:[%s7921_s0 + %s6806_s22]]   ;;  %s6810_s22 = smov 24  }
  0x1c   :  { %s6945_s4 = sld [smem:[%s7921_s0 + %s6807_s28]]   ;;  %s6811_s28 = smov 25  }
  0x1d   :  { %s6950_s12 = sld [smem:[%s7921_s0 + %s6808_s7]]   ;;  %s6812_s7 = smov 26  }
  0x1e   :  { %s6960_s17 = sld [smem:[%s7921_s0 + %s6810_s22]]   ;;  %s6814_s22 = smov 28  }
  0x20   :  { %7941 = sst [smem:[#allocation15_spill]] %s6935_s20 }
  0x21   :  { %s6955_s20 = sld [smem:[%s7921_s0 + %s6809_s15]]   ;;  %s6813_s15 = smov 27  }
  0x22   :  { %7942 = sst [smem:[#allocation16_spill]] %s6945_s4 }
  0x23   :  { %7943 = sst [smem:[#allocation17_spill]] %s6950_s12 }
  0x24   :  { %7945 = sst [smem:[#allocation19_spill]] %s6960_s17 }
  0x25   :  { %s6965_s4 = sld [smem:[%s7921_s0 + %s6811_s28]]   ;;  %s6815_s28 = smov 29  }
  0x26   :  { %s6970_s12 = sld [smem:[%s7921_s0 + %s6812_s7]]   ;;  %s6816_s7 = smov 30  }
  0x27   :  { %7944 = sst [smem:[#allocation18_spill]] %s6955_s20 }
  0x28   :  { %s6975_s20 = sld [smem:[%s7921_s0 + %s6813_s15]]  }
  0x29   :  { %s6980_s17 = sld [smem:[%s7921_s0 + %s6814_s22]]  }
  0x2b   :  { %7946 = sst [smem:[#allocation20_spill]] %s6965_s4 }
  0x2c   :  { %7947 = sst [smem:[#allocation21_spill]] %s6970_s12 }
  0x2d   :  { %s6985_s4 = sld [smem:[%s7921_s0 + %s6815_s28]]  }
  0x2e   :  { %s6990_s12 = sld [smem:[%s7921_s0 + %s6816_s7]]  }
  0x2f   :  { %66 = vsyncpa [#allocation3], 0 }
  0x30   :  { %67 = vsyncpa [#allocation5], 0  ;;  %s6992_s15 = smov 0  }
  0x31 LB: > { %s6998_s16 = sadd.s32 4294967295, %s6785_s15   ;;  %p5435_p0 = scmp.ge.s32.totalorder %s6785_s15, 1  ;;  %s6785_s15 = sphi %s6992_s15, %s73_s15  }
  0x32   : > { %p754_p1 = scmp.lt.s32.totalorder %s6785_s15, 3  ;;  %p7925_p2 = scmp.eq.s32.totalorder %s6998_s16, 0 }
  0x33   : > { %s6817_s18 = smov [#allocation4]   ;;  %s6818_s23 = smov [#allocation2]  }
  0x34   : > { %p7003_p3 = pnand %p5435_p0, %p754_p1  ;;  %s818_s22 = sshll.u32 %s6817_s18, 4  ;;  %s819_s22 = int_to_ptr.vmem [resolvable:$true] %s818_s22 }
  0x35   : > { %s802_s26 = sshll.u32 %s6818_s23, 4  ;;  %s6819_s1 = smov [#allocation6]   ;;  %s7015_s26 = int_to_ptr.vmem [resolvable:$true] %s802_s26 }
  0x36   : > { %s7948_s0 = scalar_select %p7003_p3, 1, 0 }
  0x37   : > { %p6370_p4 = pneg %p7003_p3  ;;  %s834_s2 = sshll.u32 %s6819_s1, 4  ;;  %s7017_s2 = int_to_ptr.vmem [resolvable:$true] %s834_s2 }
  0x38   : > { %s6687_s7 = scalar_lea.hbm %s6930_s6, 1024 }
  0x39   : > { %p7011_p5 = pnand %p7925_p2, %p6370_p4  ;;  %p6688_p6 = scmp.ne.s32.totalorder %s6930_s6, %s6687_s7 }
  0x3a   : > { %p6694_p10 = scmp.lt.u32.totalorder %s6687_s7, %s6930_s6 }
  0x3b   : > { %p7023_p7 = pneg %p7011_p5 }
  0x3d   : > { %p6690_p8 = pnand %p7023_p7, %p6688_p6 }
  0x3f   : > { %p6691_p9 = pneg %p6690_p8 }
  0x41   : > { %p6696_p11 = pnand %p6694_p10, %p6691_p9 }
  0x43   : > { %6699 = shalt.err (!%p6696_p11)
}
  0x44   : > { %s6700_s11 = scalar_lea.vmem %s819_s22, 1024  ;;  %p6708_p1 = scmp.lt.s32.totalorder %s819_s22, %s819_s22 }
  0x45   : > { %p6701_p12 = scmp.ne.s32.totalorder %s819_s22, %s6700_s11  ;;  %p6709_p4 = scmp.lt.s32.totalorder %s6700_s11, %s6700_s11 }
  0x47   : > { %p6703_p13 = pnand %p6701_p12, %p7023_p7  ;;  %p6710_p2 = por %p6709_p4, %p6708_p1 }
  0x49   : > { %p6704_p0 = pneg %p6703_p13 }
  0x4b   : > { %p6711_p3 = pnand %p6710_p2, %p6704_p0 }
  0x4d   : > { %6714 = shalt.err (!%p6711_p3)
}
  0x4e   : > { %s6820_s18 = smov 64   ;;  %s6821_s23 = smov 4  }
  0x4f   : > { %6376 = dma.hbm_to_vmem [thread:$0]  (!%p7011_p5), %s6930_s6, 1024, %s819_s22, [#allocation5], %s6820_s18, %s6820_s18, %s6821_s23  }
  0x50   : > { %s6715_s1 = scalar_lea.hbm %s6920_s27, 1024 }
  0x51   : > { %p6716_p6 = scmp.ne.s32.totalorder %s6920_s27, %s6715_s1  ;;  %p6722_p2 = scmp.lt.u32.totalorder %s6715_s1, %s6920_s27 }
  0x53   : > { %p6718_p8 = pnand %p6716_p6, %p7023_p7 }
  0x55   : > { %p6719_p9 = pneg %p6718_p8 }
  0x57   : > { %p6724_p3 = pnand %p6722_p2, %p6719_p9 }
  0x59   : > { %6727 = shalt.err (!%p6724_p3)
}
  0x5a   : > { %s6728_s7 = scalar_lea.vmem %s7015_s26, 1024  ;;  %p6736_p13 = scmp.lt.s32.totalorder %s7015_s26, %s7015_s26 }
  0x5b   : > { %p6729_p10 = scmp.ne.s32.totalorder %s7015_s26, %s6728_s7  ;;  %p6737_p0 = scmp.lt.s32.totalorder %s6728_s7, %s6728_s7 }
  0x5d   : > { %p6731_p11 = pnand %p6729_p10, %p7023_p7  ;;  %p6738_p1 = por %p6737_p0, %p6736_p13 }
  0x5f   : > { %p6732_p12 = pneg %p6731_p11 }
  0x61   : > { %p6739_p4 = pnand %p6738_p1, %p6732_p12 }
  0x63   : > { %6742 = shalt.err (!%p6739_p4)
}
  0x64   : > { %6373 = dma.hbm_to_vmem [thread:$0]  (!%p7011_p5), %s6920_s27, 1024, %s7015_s26, [#allocation3], %s6820_s18, %s6820_s18, %s6821_s23  }
  0x65   : > { %s6743_s22 = scalar_lea.hbm %s6940_s30, 1024 }
  0x66   : > { %p6744_p6 = scmp.ne.s32.totalorder %s6940_s30, %s6743_s22  ;;  %p6750_p2 = scmp.lt.u32.totalorder %s6743_s22, %s6940_s30 }
  0x68   : > { %p6746_p8 = pnand %p6744_p6, %p7023_p7 }
  0x6a   : > { %p6747_p9 = pneg %p6746_p8 }
  0x6c   : > { %p6752_p3 = pnand %p6750_p2, %p6747_p9 }
  0x6e   : > { %6755 = shalt.err (!%p6752_p3)
}
  0x6f   : > { %s6756_s11 = scalar_lea.vmem %s7017_s2, 1024  ;;  %p6764_p13 = scmp.lt.s32.totalorder %s7017_s2, %s7017_s2 }
  0x70   : > { %p6757_p10 = scmp.ne.s32.totalorder %s7017_s2, %s6756_s11  ;;  %p6765_p0 = scmp.lt.s32.totalorder %s6756_s11, %s6756_s11 }
  0x72   : > { %p6759_p11 = pnand %p6757_p10, %p7023_p7  ;;  %p6766_p1 = por %p6765_p0, %p6764_p13 }
  0x74   : > { %p6760_p12 = pneg %p6759_p11 }
  0x76   : > { %p6767_p4 = pnand %p6766_p1, %p6760_p12 }
  0x78   : > { %6770 = shalt.err (!%p6767_p4)
}
  0x79   : > { %6379 = dma.hbm_to_vmem [thread:$0]  (!%p7011_p5), %s6940_s30, 1024, %s7017_s2, [#allocation5], %s6820_s18, %s6820_s18, %s6821_s23  }
  0x7a   : > { %p7951_p6 = scmp.ne.s32.totalorder %s7948_s0, 0 }
  0x7b   : > { %p7952_p7 = scmp.eq.s32.totalorder (!%p7951_p6), %s6998_s16, 0 }
  0x7c   : > { %909 = sbr.rel (%p7951_p6) target bundleno = 10389 (0x2895), region = 140 }
  0x83   : > { %6776 = dma.done.wait (%p7952_p7), [#allocation3], 1024   ;;  %p7953_p8 = pmov %p7952_p7 }
  0x84   : > { %p7954_p9 = pmov %p7952_p7 }
  0x85   : > { %6778 = vsyncadd (%p7953_p8), [#allocation3], 4294966272 }
  0x86   : > { %6780 = dma.done.wait (%p7954_p9), [#allocation5], 2048   ;;  %p7955_p2 = pmov %p7952_p7 }
  0x87   : > { %v6822_v0 = vmov 0.0   ;;  %vm6823_vm0 = vmmov 0   ;;  %v6439_v1 = vld [vmem:[%s6870_s29] sm:$0xff]   ;;  %v6441_v3 = vld [vmem:[%s6870_s29 + $0x8] sm:$0xff]   ;;  %v6443_v5 = vld [vmem:[%s6870_s29 + $0x10] sm:$0xff]   ;;  %p1010_p5 = scmp.lt.s32.totalorder %s6998_s16, 1 }
  0x88   : > { %6782 = vsyncadd (%p7955_p2), [#allocation5], 4294965248  ;;  %5866 = vmatprep.subr.bf16.mxu1 %v6822_v0  ;;  %5846 = vmatprep.subr.bf16.mxu0 %v6822_v0  ;;  %v6440_v2 = vld [vmem:[%s6860_s21] sm:$0xff]   ;;  %v6442_v4 = vld [vmem:[%s6860_s21 + $0x8] sm:$0xff]   ;;  %vm1417_vm1 = vcmask 130048   ;;  %s6824_s2 = smov 112  }
  0x89   : > { %5882 = vmatprep.mubr.msk.bf16.mxu1 %vm6823_vm0, %v6822_v0  ;;  %5862 = vmatprep.mubr.msk.bf16.mxu0 %vm6823_vm0, %v6822_v0  ;;  %v6444_v6 = vld [vmem:[%s6860_s21 + $0x10] sm:$0xff]   ;;  %v6445_v7 = vld [vmem:[%s6870_s29 + $0x18] sm:$0xff]   ;;  %s7974_s16 = smov (!%p1010_p5, %s6998_s16), 1  ;;  %v6447_v9 = vld [vmem:[%s6870_s29 + $0x20] sm:$0xff]   ;;  %s6825_s10 = smov 96   ;;  %vm3340_vm2 = vcmask 523264  }
  0x8a   : > { %5867 = vmatpush3.bf16.msra.mxu1 %v6439_v1  ;;  %5847 = vmatpush3.bf16.msra.mxu0 %v6440_v2  ;;  %v6446_v8 = vld [vmem:[%s6860_s21 + $0x18] sm:$0xff]   ;;  %s7110_s0 = sshll.u32 %s7974_s16, 4  ;;  %v6448_v10 = vld [vmem:[%s6860_s21 + $0x20] sm:$0xff]   ;;  %v6449_v11 = vld [vmem:[%s6870_s29 + $0x28] sm:$0xff]   ;;  %s6826_s18 = smov 80  }
  0x8b   : > { %5868 = vmatprep.subr.bf16.mxu1 %v6822_v0  ;;  %5848 = vmatprep.subr.bf16.mxu0 %v6822_v0  ;;  %v6450_v12 = vld [vmem:[%s6860_s21 + $0x28] sm:$0xff]   ;;  %s7119_s26 = scalar_lea.vmem %s6840_s5, %s7110_s0  ;;  %s7123_s28 = scalar_lea.vmem %s6845_s9, %s7110_s0  ;;  %v6451_v13 = vld [vmem:[%s6870_s29 + $0x30] sm:$0xff]   ;;  %v6453_v19 = vld [vmem:[%s6870_s29 + $0x38] sm:$0xff]  }
  0x8c   : > { %v7129_v14 = vld [vmem:[%s7119_s26] sm:$0xff]  ;;  %v7132_v15 = vld [vmem:[%s7119_s26 + $0x8] sm:$0xff]  ;;  %v6452_v18 = vld [vmem:[%s6860_s21 + $0x30] sm:$0xff]   ;;  %s7933_s23 = smov 64   ;;  %s7931_s1 = smov 48  }
  0x8d   : > { %v1038_v16 = vld [vmem:[%s7123_s28] sm:$0xff]  ;;  %v1039_v17 = vld [vmem:[%s7123_s28 + $0x8] sm:$0xff]  ;;  %v6454_v22 = vld [vmem:[%s6860_s21 + $0x38] sm:$0xff]   ;;  %v1285_v51 = vpack.c.bf16 %v7132_v15, %v7129_v14  ;;  %s7929_s7 = smov 32   ;;  %s7927_s22 = smov 16  }
  0x8e   : > { %5869 = vmatpush3.bf16.msra.mxu1 %v6441_v3  ;;  %5849 = vmatpush3.bf16.msra.mxu0 %v6442_v4  ;;  %v1056_v20 = vadd.f32 %v1038_v16, %v7129_v14  ;;  %v1057_v21 = vadd.f32 %v1039_v17, %v7132_v15  ;;  %v6455_v24 = vld [vmem:[%s6880_s8] sm:$0xff]   ;;  %v6456_v26 = vld [vmem:[%s6880_s8 + $0x8] sm:$0xff]   ;;  %v6457_v38 = vld [vmem:[%s6880_s8 + $0x10] sm:$0xff]   ;;  %s7956_s11 = sld [smem:[#allocation9_spill]] }
  0x8f   : > { %5870 = vmatprep.subr.bf16.mxu1 %v6822_v0  ;;  %5850 = vmatprep.subr.bf16.mxu0 %v6822_v0  ;;  %v5454_v25 = vld [vmem:[%s6865_s25] ss:$0 sm:$0xff]  ;;  %v6458_v45 = vld [vmem:[%s6880_s8 + $0x18] sm:$0xff]   ;;  %v6460_v48 = vld [vmem:[%s6880_s8 + $0x28] sm:$0xff]  }
  0x90   : > { %v1058_v23 = vpack.c.bf16 %v1057_v21, %v1056_v20  ;;  %v5463_v27 = vld [vmem:[%s6875_s3] ss:$0 sm:$0xff]  ;;  %v6461_v49 = vld [vmem:[%s6880_s8 + $0x30] sm:$0xff]   ;;  %v6462_v50 = vld [vmem:[%s6880_s8 + $0x38] sm:$0xff]  }
  0x91   : > { %v6459_v47 = vld [vmem:[%s6880_s8 + $0x20] sm:$0xff]  }
  0x92   : > { %5871 = vmatpush3.bf16.msra.mxu1 %v6443_v5  ;;  %5851 = vmatpush3.bf16.msra.mxu0 %v6444_v6  ;;  %v5472_v61 = vld [vmem:[%s6885_s14] ss:$0 sm:$0xff] }
  0x93   : > { %5872 = vmatprep.subr.bf16.mxu1 %v6822_v0  ;;  %5852 = vmatprep.subr.bf16.mxu0 %v6822_v0 }
  0x96   : > { %5873 = vmatpush3.bf16.msra.mxu1 %v6445_v7  ;;  %5853 = vmatpush3.bf16.msra.mxu0 %v6446_v8 }
  0x97   : > { %5874 = vmatprep.subr.bf16.mxu1 %v6822_v0  ;;  %5854 = vmatprep.subr.bf16.mxu0 %v6822_v0 }
  0x9a   : > { %5875 = vmatpush3.bf16.msra.mxu1 %v6447_v9  ;;  %5855 = vmatpush3.bf16.msra.mxu0 %v6448_v10 }
  0x9b   : > { %5876 = vmatprep.subr.bf16.mxu1 %v6822_v0  ;;  %5856 = vmatprep.subr.bf16.mxu0 %v6822_v0 }
  0x9e   : > { %5877 = vmatpush3.bf16.msra.mxu1 %v6449_v11  ;;  %5857 = vmatpush3.bf16.msra.mxu0 %v6450_v12 }
  0x9f   : > { %5878 = vmatprep.subr.bf16.mxu1 %v6822_v0  ;;  %5858 = vmatprep.subr.bf16.mxu0 %v6822_v0 }
  0xa2   : > { %5879 = vmatpush3.bf16.msra.mxu1 %v6451_v13  ;;  %5859 = vmatpush3.bf16.msra.mxu0 %v6452_v18 }
  0xa3   : > { %5880 = vmatprep.subr.bf16.mxu1 %v6822_v0  ;;  %5860 = vmatprep.subr.bf16.mxu0 %v6822_v0 }
  0xa6   : > { %5881 = vmatpush3.bf16.msra.mxu1 %v6453_v19  ;;  %5861 = vmatpush3.bf16.msra.mxu0 %v6454_v22 }
  0xa7   : > { %5906 = vmatprep.subr.bf16.mxu1 %v6822_v0  ;;  %5886 = vmatprep.subr.bf16.mxu0 %v6822_v0 }
  0xa9   : > { %5883 = vmatmul.mubr.bf16.vlgmr.msra.gmra.mrb[0].mxu1 %v1058_v23  ;;  %5863 = vmatmul.mubr.bf16.vlgmr.msra.gmra.mrb[0].mxu0 %v1058_v23 }
  0xaa   : > { %5908 = vmatprep.mubr.msk.bf16.mxu1 %vm6823_vm0, %v6822_v0  ;;  %5902 = vmatprep.mubr.msk.bf16.mxu0 %vm6823_vm0, %v6822_v0 }
  0xab   : > { %5887 = vmatpush3.bf16.msra.mxu0 %v6455_v24 }
  0xac   : > { %5888 = vmatprep.subr.bf16.mxu0 %v6822_v0 }
  0xaf   : > { %5889 = vmatpush3.bf16.msra.mxu0 %v6456_v26 }
  0xb0   : > { %5890 = vmatprep.subr.bf16.mxu0 %v6822_v0 }
  0xb3   : > { %5891 = vmatpush3.bf16.msra.mxu0 %v6457_v38 }
  0xb4   : > { %5892 = vmatprep.subr.bf16.mxu0 %v6822_v0 }
  0xb7   : > { %5893 = vmatpush3.bf16.msra.mxu0 %v6458_v45 }
  0xb8   : > { %5894 = vmatprep.subr.bf16.mxu0 %v6822_v0 }
  0xbb   : > { %5895 = vmatpush3.bf16.msra.mxu0 %v6459_v47 }
  0xbc   : > { %5896 = vmatprep.subr.bf16.mxu0 %v6822_v0 }
  0xbf   : > { %5897 = vmatpush3.bf16.msra.mxu0 %v6460_v48 }
  0xc0   : > { %5898 = vmatprep.subr.bf16.mxu0 %v6822_v0 }
  0xc3   : > { %5899 = vmatpush3.bf16.msra.mxu0 %v6461_v49 }
  0xc4   : > { %5900 = vmatprep.subr.bf16.mxu0 %v6822_v0 }
  0xc7   : > { %5901 = vmatpush3.bf16.msra.mxu0 %v6462_v50 }
  0xc8   : > { %5930 = vmatprep.subr.bf16.mxu0 %v6822_v0 }
  0xca   : > { %5903 = vmatmul.mubr.bf16.vlgmr.msra.gmra.mrb[4].mxu0 %v1285_v51 }
  0xcb   : > { %5932 = vmatprep.mubr.msk.bf16.mxu0 %vm6823_vm0, %v6822_v0 }
 0x17c   : > { %v1278_v28 = vpop.f32.mrb[0].mxu1  ;;  %v1164_v30 = vpop.f32.mrb[0].mxu0 }
 0x17d   : > { %v5884_v29 = vpop.f32.mrb[1].mxu1  ;;  %v1165_v32 = vadd.f32 %v5454_v25, %v1164_v30  ;;  %v5864_v33 = vpop.f32.mrb[1].mxu0  ;;  %v1279_v34 = vadd.f32 %v5463_v27, %v1278_v28 }
 0x17e   : > { %v1281_v31 = vpop.f32.mrb[2].mxu1  ;;  %v1167_v37 = vpop.f32.mrb[2].mxu0 }
 0x17f   : > { %v1282_v35 = vadd.f32 %v5463_v27, %v1281_v31  ;;  %v5885_v36 = vpop.f32.mrb[3].mxu1  ;;  %v1171_v39 = vmul.f32 0.25, %v1165_v32  ;;  %v1168_v40 = vadd.f32 %v5454_v25, %v1167_v37  ;;  %v5865_v41 = vpop.f32.mrb[3].mxu0 }
 0x181   : > { %v7158_v42 = vpack.c.bf16 %v1282_v35, %v1279_v34  ;;  %v1172_v43 = vmul.f32 0.25, %v1168_v40  ;;  %v6464_v40 = vld [vmem:[%s6890_s19 + $0x8] sm:$0xff]  }
 0x182   : > { %5931 = vmatpush3.bf16.msra.mxu0 %v6464_v40 }
 0x183   : > { %1537 = vrot.lane.b32.xlu1 %v7158_v42, %s6824_s2  ;;  %v1422_v44 = vsel %vm1417_vm1, %v7158_v42, 0  ;;  %v7165_v46 = vpack.c.bf16 %v1172_v43, %v1171_v39  ;;  %v6463_v39 = vld [vmem:[%s6890_s19] sm:$0xff]   ;;  %5942 = vmatprep.subr.bf16.mxu0 %v6822_v0 }
 0x184   : > { %5907 = vmatpush3.bf16.xpose.msra.mxu1 %v1422_v44 }
 0x185   : > { %5912 = vmatprep.subr.bf16.mxu1 %v6822_v0 }
 0x187   : > { %1534 = vrot.lane.b32.xlu1 %v7165_v46, %s6824_s2 }
 0x18b   : > { %5909 = vmatmul.mubr.msk.bf16.vlgmr.msra.gmra.mrb[4].mxu1 %vm1417_vm1, %v7165_v46 }
 0x18c   : > { %5914 = vmatprep.mubr.msk.bf16.mxu1 %vm6823_vm0, %v6822_v0 }
 0x19d   : > { %v1391_v58 = vpop.f32.mrb[4].mxu0 }
 0x19e   : > { %v5904_v59 = vpop.f32.mrb[5].mxu0  ;;  %v1392_v63 = vadd.f32 %v5472_v61, %v1391_v58 }
 0x19f   : > { %v1394_v60 = vpop.f32.mrb[6].mxu0 }
 0x1a0   : > { %v5905_v62 = vpop.f32.mrb[7].mxu0  ;;  %v1395_v1 = vadd.f32 %v5472_v61, %v1394_v60 }
 0x1a2   : > { %v7191_v2 = vpack.c.bf16 %v1395_v1, %v1392_v63 }
 0x1a4   : > { %5913 = vmatpush3.bf16.msra.mxu1 %v7191_v2 }
 0x1a5   : > { %5918 = vmatprep.subr.bf16.mxu1 %v6822_v0 }
 0x1f5   : > { %v1538_v11 = vpop.permute.xlu1 %1537 }
 0x1f6   : > { %v1543_v13 = vsel %vm1417_vm1, %v1538_v11, 0 }
 0x1f9   : > { %v1535_v14 = vpop.permute.xlu1 %1534 }
 0x25e   : > { %v1458_v52 = vpop.f32.mrb[4].mxu1 }
 0x25f   : > { %v5910_v53 = vpop.f32.mrb[5].mxu1  ;;  %v1465_v54 = vsel %vm1417_vm1, %v1458_v52, -inf }
 0x260   : > { %1466 = vmax.xlane.f32.xlu0 %v1465_v54  ;;  %v1461_v55 = vpop.f32.mrb[6].mxu1 }
 0x261   : > { %v5911_v56 = vpop.f32.mrb[7].mxu1  ;;  %v1468_v57 = vsel %vm1417_vm1, %v1461_v55, -inf }
 0x264   : > { %1469 = vmax.xlane.f32.xlu0 %v1468_v57 }
 0x2ed   : > { %v1467_v3 = vpop.xlane.xlu0 %1466 }
 0x2ee   : > { %v1471_v4 = vsub.f32 %v1458_v52, %v1467_v3 }
 0x2f0   : > { %v1473_v5 = vmul.f32 1.442695, %v1471_v4 }
 0x2f1   : > { %v1470_v6 = vpop.xlane.xlu0 %1469 }
 0x2f2   : > { %v1472_v7 = vsub.f32 %v1461_v55, %v1470_v6  ;;  %6543 = vpow2.f32 %v1473_v5 }
 0x2f4   : > { %v1475_v8 = vmul.f32 1.442695, %v1472_v7 }
 0x2f6   : > { %6545 = vpow2.f32 %v1475_v8 }
 0x2fc   : > { %v6544_v9 = vpop.eup %6543 }
 0x2fd   : > { %v1477_v38 = vsel %vm1417_vm1, %v6544_v9, 0.0 }
 0x300   : > { %v6546_v10 = vpop.eup %6545 }
 0x301   : > { %v1485_v12 = vpack.c.bf16 %v6546_v10, %v6544_v9  ;;  %v1480_v37 = vsel %vm1417_vm1, %v6546_v10, 0.0 }
 0x303   : > { %5915 = vmatmul.mubr.msk.bf16.vlgmr.msra.gmra.mrb[8].mxu1 %vm1417_vm1, %v1485_v12 }
 0x304   : > { %5919 = vmatpush3.bf16.xpose.msra.mxu1 %v1543_v13  ;;  %5920 = vmatprep.mubr.msk.bf16.mxu1 %vm6823_vm0, %v6822_v0 }
 0x305   : > { %5924 = vmatprep.subr.bf16.mxu1 %v6822_v0 }
 0x30b   : > { %5921 = vmatmul.mubr.msk.bf16.vlgmr.msra.gmra.mrb[12].mxu1 %vm1417_vm1, %v1535_v14 }
 0x30c   : > { %5926 = vmatprep.mubr.msk.bf16.mxu1 %vm6823_vm0, %v6822_v0 }
 0x3d6   : > { %v1523_v15 = vpop.f32.mrb[8].mxu1 }
 0x3d7   : > { %v5916_v16 = vpop.f32.mrb[9].mxu1 }
 0x3d8   : > { %v1526_v17 = vpop.f32.mrb[10].mxu1 }
 0x3d9   : > { %v5917_v18 = vpop.f32.mrb[11].mxu1 }
 0x3de   : > { %v1579_v19 = vpop.f32.mrb[12].mxu1 }
 0x3df   : > { %v5922_v20 = vpop.f32.mrb[13].mxu1  ;;  %v1586_v21 = vsel %vm1417_vm1, %v1579_v19, -inf }
 0x3e0   : > { %1587 = vmax.xlane.f32.xlu0 %v1586_v21  ;;  %v1582_v22 = vpop.f32.mrb[14].mxu1 }
 0x3e1   : > { %v5923_v23 = vpop.f32.mrb[15].mxu1  ;;  %v1589_v24 = vsel %vm1417_vm1, %v1582_v22, -inf }
 0x3e2   : > { %1590 = vmax.xlane.f32.xlu1 %v1589_v24 }
 0x3f6   : > { %1608 = vrot.lane.b32.xlu0 %v7191_v2, %s6824_s2 }
 0x46d   : > { %v1588_v25 = vpop.xlane.xlu0 %1587 }
 0x46e   : > { %v1592_v26 = vsub.f32 %v1579_v19, %v1588_v25 }
 0x46f   : > { %v1591_v27 = vpop.xlane.xlu1 %1590 }
 0x470   : > { %v1594_v28 = vmul.f32 1.442695, %v1592_v26  ;;  %v1593_v29 = vsub.f32 %v1582_v22, %v1591_v27 }
 0x471   : > { %v1609_v30 = vpop.permute.xlu0 %1608 }
 0x472   : > { %6547 = vpow2.f32 %v1594_v28  ;;  %v1596_v31 = vmul.f32 1.442695, %v1593_v29  ;;  %5925 = vmatpush3.bf16.msra.mxu1 %v1609_v30 }
 0x473   : > { %5936 = vmatprep.subr.bf16.mxu1 %v6822_v0 }
 0x474   : > { %6549 = vpow2.f32 %v1596_v31 }
 0x47c   : > { %v6548_v32 = vpop.eup %6547 }
 0x47d   : > { %v1598_v33 = vsel %vm1417_vm1, %v6548_v32, 0.0 }
 0x47e   : > { %v6550_v34 = vpop.eup %6549  ;;  %1599 = vadd.xlane.f32.xlu0 %v1598_v33  ;;  %v6465_v33 = vld [vmem:[%s6890_s19 + $0x10] sm:$0xff]  }
 0x47f   : > { %v1601_v35 = vsel %vm1417_vm1, %v6550_v34, 0.0  ;;  %v1606_v36 = vpack.c.bf16 %v6550_v34, %v6548_v32 }
 0x480   : > { %1602 = vadd.xlane.f32.xlu1 %v1601_v35 }
 0x481   : > { %5927 = vmatmul.mubr.msk.bf16.vlgmr.msra.gmra.mrb[16].mxu1 %vm1417_vm1, %v1606_v36 }
 0x482   : > { %5938 = vmatprep.mubr.msk.bf16.mxu1 %vm6823_vm0, %v6822_v0  ;;  %5937 = vmatpush3.bf16.msra.mxu1 %v6463_v39 }
 0x483   : > { %5948 = vmatprep.subr.bf16.mxu1 %v6822_v0 }
 0x491   : > { %1760 = vrot.lane.b32.xlu1 %v7158_v42, %s6825_s10 }
 0x494   : > { %1758 = vrot.lane.b32.xlu0 %v7165_v46, %s6825_s10 }
 0x4b3   : > { %1481 = vadd.xlane.f32.xlu0 %v1480_v37 }
 0x4b5   : > { %1478 = vadd.xlane.f32.xlu1 %v1477_v38 }
 0x4c9   : > { %1934 = vrot.lane.b32.xlu0 %v7158_v42, %s6826_s18 }
 0x50b   : > { %v1600_v41 = vpop.xlane.xlu0 %1599 }
 0x50d   : > { %v1603_v43 = vpop.xlane.xlu1 %1602 }
 0x50f   : > { %v1759_v44 = vpop.permute.xlu0 %1758 }
 0x511   : > { %v1761_v45 = vpop.permute.xlu1 %1760 }
 0x512   : > { %v1766_v63 = vsel %vm1417_vm1, %v1761_v45, 0 }
 0x540   : > { %v1482_v47 = vpop.xlane.xlu0 %1481 }
 0x541   : > { %6551 = vrcp.f32 %v1482_v47 }
 0x542   : > { %v1479_v48 = vpop.xlane.xlu1 %1478 }
 0x543   : > { %6553 = vrcp.f32 %v1479_v48 }
 0x544   : > { %6555 = vrcp.f32 %v1600_v41  ;;  %v1935_v28 = vpop.permute.xlu0 %1934 }
 0x545   : > { %6557 = vrcp.f32 %v1603_v43  ;;  %v1940_v31 = vsel %vm1417_vm1, %v1935_v28, 0 }
 0x54b   : > { %v6552_v49 = vpop.eup %6551 }
 0x54c   : > { %v1531_v51 = vmul.f32 %v6552_v49, %v1526_v17 }
 0x54d   : > { %v6554_v50 = vpop.eup %6553 }
 0x54e   : > { %v1530_v52 = vmul.f32 %v6554_v50, %v1523_v15  ;;  %v6556_v55 = vpop.eup %6555 }
 0x54f   : > { %v6558_v57 = vpop.eup %6557 }
 0x550   : > { %v1532_v53 = vpack.c.bf16 %v1531_v51, %v1530_v52 }
 0x552   : > { %5939 = vmatmul.mubr.msk.bf16.vlgmr.msra.gmra.mrb[20].mxu1 %vm1417_vm1, %v1532_v53 }
 0x553   : > { %5950 = vmatprep.mubr.msk.bf16.mxu1 %vm6823_vm0, %v6822_v0 }
 0x554   : > { %v1648_v54 = vpop.f32.mrb[16].mxu1 }
 0x555   : > { %v5928_v56 = vpop.f32.mrb[17].mxu1  ;;  %v1655_v59 = vmul.f32 %v6556_v55, %v1648_v54 }
 0x556   : > { %v1651_v58 = vpop.f32.mrb[18].mxu1 }
 0x557   : > { %v1656_v60 = vmul.f32 %v6558_v57, %v1651_v58  ;;  %v5929_v61 = vpop.f32.mrb[19].mxu1 }
 0x559   : > { %v1657_v62 = vpack.c.bf16 %v1656_v60, %v1655_v59 }
 0x55b   : > { %5933 = vmatmul.mubr.msk.bf16.vlgmr.msra.gmra.mrb[8].mxu0 %vm1417_vm1, %v1657_v62 }
 0x55c   : > { %5943 = vmatpush3.bf16.xpose.msra.mxu0 %v1766_v63  ;;  %5944 = vmatprep.mubr.msk.bf16.mxu0 %vm6823_vm0, %v6822_v0 }
 0x55d   : > { %5954 = vmatprep.subr.bf16.mxu0 %v6822_v0 }
 0x563   : > { %5945 = vmatmul.mubr.msk.bf16.vlgmr.msra.gmra.mrb[12].mxu0 %vm1417_vm1, %v1759_v44 }
 0x564   : > { %5956 = vmatprep.mubr.msk.bf16.mxu0 %vm6823_vm0, %v6822_v0  ;;  %5955 = vmatpush3.bf16.msra.mxu0 %v6465_v33 }
 0x565   : > { %5966 = vmatprep.subr.bf16.mxu0 %v6822_v0 }
 0x625   : > { %v1751_v1 = vpop.f32.mrb[20].mxu1 }
 0x626   : > { %v5940_v3 = vpop.f32.mrb[21].mxu1 }
 0x627   : > { %v1754_v4 = vpop.f32.mrb[22].mxu1 }
 0x628   : > { %v5941_v5 = vpop.f32.mrb[23].mxu1 }
 0x62e   : > { %v1701_v6 = vpop.f32.mrb[8].mxu0 }
 0x62f   : > { %v7236_v7 = vadd.f32 %v1751_v1, %v1701_v6  ;;  %v5934_v8 = vpop.f32.mrb[9].mxu0 }
 0x630   : > { %v1704_v9 = vpop.f32.mrb[10].mxu0 }
 0x631   : > { %v7238_v10 = vadd.f32 %v1754_v4, %v1704_v9  ;;  %v5935_v11 = vpop.f32.mrb[11].mxu0 }
 0x636   : > { %v1802_v12 = vpop.f32.mrb[12].mxu0 }
 0x637   : > { %v5946_v13 = vpop.f32.mrb[13].mxu0  ;;  %v1809_v14 = vsel %vm1417_vm1, %v1802_v12, -inf }
 0x638   : > { %1810 = vmax.xlane.f32.xlu1 %v1809_v14  ;;  %v1805_v15 = vpop.f32.mrb[14].mxu0  ;;  %v6466_v14 = vld [vmem:[%s6890_s19 + $0x18] sm:$0xff]  }
 0x639   : > { %v5947_v16 = vpop.f32.mrb[15].mxu0  ;;  %v1812_v17 = vsel %vm1417_vm1, %v1805_v15, -inf }
 0x63c   : > { %1813 = vmax.xlane.f32.xlu1 %v1812_v17 }
 0x64d   : > { %1830 = vrot.lane.b32.xlu1 %v7191_v2, %s6825_s10 }
 0x651   : > { %1932 = vrot.lane.b32.xlu1 %v7165_v46, %s6826_s18 }
 0x6c5   : > { %v1811_v18 = vpop.xlane.xlu1 %1810 }
 0x6c6   : > { %v1815_v19 = vsub.f32 %v1802_v12, %v1811_v18 }
 0x6c8   : > { %v1817_v20 = vmul.f32 1.442695, %v1815_v19 }
 0x6c9   : > { %v1814_v21 = vpop.xlane.xlu1 %1813 }
 0x6ca   : > { %6559 = vpow2.f32 %v1817_v20  ;;  %v1816_v22 = vsub.f32 %v1805_v15, %v1814_v21 }
 0x6cc   : > { %v1819_v23 = vmul.f32 1.442695, %v1816_v22 }
 0x6cd   : > { %v1831_v24 = vpop.permute.xlu1 %1830 }
 0x6ce   : > { %6561 = vpow2.f32 %v1819_v23  ;;  %5949 = vmatpush3.bf16.msra.mxu1 %v1831_v24 }
 0x6cf   : > { %5960 = vmatprep.subr.bf16.mxu1 %v6822_v0 }
 0x6d1   : > { %v1933_v32 = vpop.permute.xlu1 %1932 }
 0x6d4   : > { %v6560_v25 = vpop.eup %6559 }
 0x6d5   : > { %v1821_v26 = vsel %vm1417_vm1, %v6560_v25, 0.0 }
 0x6d6   : > { %1822 = vadd.xlane.f32.xlu1 %v1821_v26 }
 0x6d8   : > { %v6562_v27 = vpop.eup %6561 }
 0x6d9   : > { %v1824_v29 = vsel %vm1417_vm1, %v6562_v27, 0.0  ;;  %v1829_v30 = vpack.c.bf16 %v6562_v27, %v6560_v25 }
 0x6da   : > { %1825 = vadd.xlane.f32.xlu0 %v1824_v29 }
 0x6db   : > { %5951 = vmatmul.mubr.msk.bf16.vlgmr.msra.gmra.mrb[24].mxu1 %vm1417_vm1, %v1829_v30 }
 0x6dc   : > { %5961 = vmatpush3.bf16.xpose.msra.mxu1 %v1940_v31  ;;  %5962 = vmatprep.mubr.msk.bf16.mxu1 %vm6823_vm0, %v6822_v0 }
 0x6dd   : > { %5972 = vmatprep.subr.bf16.mxu1 %v6822_v0 }
 0x6e3   : > { %5963 = vmatmul.mubr.msk.bf16.vlgmr.msra.gmra.mrb[28].mxu1 %vm1417_vm1, %v1933_v32 }
 0x6e4   : > { %5974 = vmatprep.mubr.msk.bf16.mxu1 %vm6823_vm0, %v6822_v0  ;;  %5973 = vmatpush3.bf16.msra.mxu1 %v6466_v14 }
 0x6e5   : > { %5984 = vmatprep.subr.bf16.mxu1 %v6822_v0 }
 0x6f0   : > { %2004 = vrot.lane.b32.xlu0 %v7191_v2, %s6826_s18 }
 0x763   : > { %v1823_v34 = vpop.xlane.xlu1 %1822 }
 0x764   : > { %6563 = vrcp.f32 %v1823_v34 }
 0x767   : > { %v1826_v35 = vpop.xlane.xlu0 %1825 }
 0x768   : > { %6565 = vrcp.f32 %v1826_v35 }
 0x76b   : > { %v2005_v47 = vpop.permute.xlu0 %2004 }
 0x76e   : > { %v6564_v37 = vpop.eup %6563 }
 0x772   : > { %v6566_v39 = vpop.eup %6565 }
 0x7ae   : > { %v1870_v36 = vpop.f32.mrb[24].mxu1 }
 0x7af   : > { %v5952_v38 = vpop.f32.mrb[25].mxu1  ;;  %v1877_v41 = vmul.f32 %v6564_v37, %v1870_v36 }
 0x7b0   : > { %v1873_v40 = vpop.f32.mrb[26].mxu1 }
 0x7b1   : > { %v1878_v43 = vmul.f32 %v6566_v39, %v1873_v40  ;;  %v5953_v44 = vpop.f32.mrb[27].mxu1 }
 0x7b3   : > { %v1879_v45 = vpack.c.bf16 %v1878_v43, %v1877_v41 }
 0x7b5   : > { %5957 = vmatmul.mubr.msk.bf16.vlgmr.msra.gmra.mrb[16].mxu0 %vm1417_vm1, %v1879_v45 }
 0x7b6   : > { %5967 = vmatpush3.bf16.msra.mxu0 %v2005_v47  ;;  %v1976_v48 = vpop.f32.mrb[28].mxu1  ;;  %5968 = vmatprep.mubr.msk.bf16.mxu0 %vm6823_vm0, %v6822_v0 }
 0x7b7   : > { %v5964_v49 = vpop.f32.mrb[29].mxu1  ;;  %v1983_v50 = vsel %vm1417_vm1, %v1976_v48, -inf  ;;  %5978 = vmatprep.subr.bf16.mxu0 %v6822_v0 }
 0x7b8   : > { %1984 = vmax.xlane.f32.xlu1 %v1983_v50  ;;  %v1979_v51 = vpop.f32.mrb[30].mxu1 }
 0x7b9   : > { %v5965_v52 = vpop.f32.mrb[31].mxu1  ;;  %v1986_v53 = vsel %vm1417_vm1, %v1979_v51, -inf }
 0x7bc   : > { %1987 = vmax.xlane.f32.xlu1 %v1986_v53  ;;  %v6467_v53 = vld [vmem:[%s6890_s19 + $0x20] sm:$0xff]  }
 0x7cd   : > { %2108 = vrot.lane.b32.xlu1 %v7158_v42, %s7933_s23 }
 0x7d1   : > { %2106 = vrot.lane.b32.xlu1 %v7165_v46, %s7933_s23 }
 0x845   : > { %v1985_v54 = vpop.xlane.xlu1 %1984 }
 0x846   : > { %v1989_v55 = vsub.f32 %v1976_v48, %v1985_v54 }
 0x848   : > { %v1991_v56 = vmul.f32 1.442695, %v1989_v55 }
 0x849   : > { %v1988_v57 = vpop.xlane.xlu1 %1987 }
 0x84a   : > { %6567 = vpow2.f32 %v1991_v56  ;;  %v1990_v58 = vsub.f32 %v1979_v51, %v1988_v57 }
 0x84c   : > { %v1993_v59 = vmul.f32 1.442695, %v1990_v58 }
 0x84d   : > { %v2109_v63 = vpop.permute.xlu1 %2108 }
 0x84e   : > { %6569 = vpow2.f32 %v1993_v59  ;;  %v2114_v4 = vsel %vm1417_vm1, %v2109_v63, 0 }
 0x851   : > { %v2107_v5 = vpop.permute.xlu1 %2106 }
 0x854   : > { %v6568_v60 = vpop.eup %6567 }
 0x855   : > { %v1995_v61 = vsel %vm1417_vm1, %v6568_v60, 0.0 }
 0x856   : > { %1996 = vadd.xlane.f32.xlu0 %v1995_v61 }
 0x858   : > { %v6570_v62 = vpop.eup %6569 }
 0x859   : > { %v1998_v1 = vsel %vm1417_vm1, %v6570_v62, 0.0  ;;  %v2003_v3 = vpack.c.bf16 %v6570_v62, %v6568_v60 }
 0x85a   : > { %1999 = vadd.xlane.f32.xlu1 %v1998_v1 }
 0x85b   : > { %5969 = vmatmul.mubr.msk.bf16.vlgmr.msra.gmra.mrb[20].mxu0 %vm1417_vm1, %v2003_v3 }
 0x85c   : > { %5979 = vmatpush3.bf16.xpose.msra.mxu0 %v2114_v4  ;;  %5980 = vmatprep.mubr.msk.bf16.mxu0 %vm6823_vm0, %v6822_v0 }
 0x85d   : > { %5990 = vmatprep.subr.bf16.mxu0 %v6822_v0 }
 0x863   : > { %5981 = vmatmul.mubr.msk.bf16.vlgmr.msra.gmra.mrb[24].mxu0 %vm1417_vm1, %v2107_v5 }
 0x864   : > { %5992 = vmatprep.mubr.msk.bf16.mxu0 %vm6823_vm0, %v6822_v0  ;;  %5991 = vmatpush3.bf16.msra.mxu0 %v6467_v53 }
 0x865   : > { %6002 = vmatprep.subr.bf16.mxu0 %v6822_v0 }
 0x86b   : > { %2178 = vrot.lane.b32.xlu1 %v7191_v2, %s7933_s23 }
 0x86f   : > { %2280 = vrot.lane.b32.xlu1 %v7165_v46, %s7931_s1 }
 0x888   : > { %v1923_v6 = vpop.f32.mrb[16].mxu0 }
 0x889   : > { %v1930_v8 = vadd.f32 %v1923_v6, %v7236_v7  ;;  %v5958_v9 = vpop.f32.mrb[17].mxu0 }
 0x88a   : > { %v1926_v11 = vpop.f32.mrb[18].mxu0 }
 0x88b   : > { %v1931_v12 = vadd.f32 %v1926_v11, %v7238_v10  ;;  %v5959_v13 = vpop.f32.mrb[19].mxu0 }
 0x8e3   : > { %v1997_v15 = vpop.xlane.xlu0 %1996 }
 0x8e4   : > { %6571 = vrcp.f32 %v1997_v15 }
 0x8e7   : > { %v2000_v16 = vpop.xlane.xlu1 %1999 }
 0x8e8   : > { %6573 = vrcp.f32 %v2000_v16 }
 0x8eb   : > { %v2179_v25 = vpop.permute.xlu1 %2178 }
 0x8ee   : > { %v6572_v18 = vpop.eup %6571 }
 0x8ef   : > { %v2281_v45 = vpop.permute.xlu1 %2280 }
 0x8f2   : > { %v6574_v20 = vpop.eup %6573 }
 0x92e   : > { %v2044_v17 = vpop.f32.mrb[20].mxu0 }
 0x92f   : > { %v5970_v19 = vpop.f32.mrb[21].mxu0  ;;  %v2051_v22 = vmul.f32 %v6572_v18, %v2044_v17 }
 0x930   : > { %v2047_v21 = vpop.f32.mrb[22].mxu0 }
 0x931   : > { %v2052_v7 = vmul.f32 %v6574_v20, %v2047_v21  ;;  %v5971_v23 = vpop.f32.mrb[23].mxu0 }
 0x933   : > { %v2053_v24 = vpack.c.bf16 %v2052_v7, %v2051_v22 }
 0x935   : > { %5975 = vmatmul.mubr.msk.bf16.vlgmr.msra.gmra.mrb[32].mxu1 %vm1417_vm1, %v2053_v24 }
 0x936   : > { %5985 = vmatpush3.bf16.msra.mxu1 %v2179_v25  ;;  %v2150_v10 = vpop.f32.mrb[24].mxu0  ;;  %5986 = vmatprep.mubr.msk.bf16.mxu1 %vm6823_vm0, %v6822_v0 }
 0x937   : > { %v5982_v26 = vpop.f32.mrb[25].mxu0  ;;  %v2157_v27 = vsel %vm1417_vm1, %v2150_v10, -inf  ;;  %5996 = vmatprep.subr.bf16.mxu1 %v6822_v0 }
 0x938   : > { %2158 = vmax.xlane.f32.xlu0 %v2157_v27  ;;  %v2153_v28 = vpop.f32.mrb[26].mxu0 }
 0x939   : > { %v5983_v29 = vpop.f32.mrb[27].mxu0  ;;  %v2160_v30 = vsel %vm1417_vm1, %v2153_v28, -inf }
 0x93c   : > { %2161 = vmax.xlane.f32.xlu0 %v2160_v30  ;;  %v6468_v30 = vld [vmem:[%s6890_s19 + $0x28] sm:$0xff]  }
 0x952   : > { %2282 = vrot.lane.b32.xlu0 %v7158_v42, %s7931_s1 }
 0x9c5   : > { %v2159_v31 = vpop.xlane.xlu0 %2158 }
 0x9c6   : > { %v2163_v32 = vsub.f32 %v2150_v10, %v2159_v31 }
 0x9c8   : > { %v2165_v33 = vmul.f32 1.442695, %v2163_v32 }
 0x9c9   : > { %v2162_v34 = vpop.xlane.xlu0 %2161 }
 0x9ca   : > { %6575 = vpow2.f32 %v2165_v33  ;;  %v2164_v35 = vsub.f32 %v2153_v28, %v2162_v34 }
 0x9cc   : > { %v2167_v36 = vmul.f32 1.442695, %v2164_v35 }
 0x9cd   : > { %v2283_v40 = vpop.permute.xlu0 %2282 }
 0x9ce   : > { %6577 = vpow2.f32 %v2167_v36  ;;  %v2288_v44 = vsel %vm1417_vm1, %v2283_v40, 0 }
 0x9d4   : > { %v6576_v37 = vpop.eup %6575 }
 0x9d5   : > { %v2169_v38 = vsel %vm1417_vm1, %v6576_v37, 0.0 }
 0x9d6   : > { %2170 = vadd.xlane.f32.xlu1 %v2169_v38 }
 0x9d8   : > { %v6578_v39 = vpop.eup %6577 }
 0x9d9   : > { %v2172_v41 = vsel %vm1417_vm1, %v6578_v39, 0.0  ;;  %v2177_v43 = vpack.c.bf16 %v6578_v39, %v6576_v37 }
 0x9da   : > { %2173 = vadd.xlane.f32.xlu0 %v2172_v41 }
 0x9db   : > { %5987 = vmatmul.mubr.msk.bf16.vlgmr.msra.gmra.mrb[36].mxu1 %vm1417_vm1, %v2177_v43 }
 0x9dc   : > { %5997 = vmatpush3.bf16.xpose.msra.mxu1 %v2288_v44  ;;  %5998 = vmatprep.mubr.msk.bf16.mxu1 %vm6823_vm0, %v6822_v0 }
 0x9dd   : > { %6008 = vmatprep.subr.bf16.mxu1 %v6822_v0 }
 0x9e3   : > { %5999 = vmatmul.mubr.msk.bf16.vlgmr.msra.gmra.mrb[40].mxu1 %vm1417_vm1, %v2281_v45 }
 0x9e4   : > { %6010 = vmatprep.mubr.msk.bf16.mxu1 %vm6823_vm0, %v6822_v0  ;;  %6009 = vmatpush3.bf16.msra.mxu1 %v6468_v30 }
 0x9e5   : > { %6020 = vmatprep.subr.bf16.mxu1 %v6822_v0 }
 0xa08   : > { %v2097_v47 = vpop.f32.mrb[32].mxu1 }
 0xa09   : > { %v7307_v48 = vadd.f32 %v2097_v47, %v1930_v8  ;;  %v5976_v49 = vpop.f32.mrb[33].mxu1 }
 0xa0a   : > { %v2100_v50 = vpop.f32.mrb[34].mxu1 }
 0xa0b   : > { %v7309_v51 = vadd.f32 %v2100_v50, %v1931_v12  ;;  %v5977_v52 = vpop.f32.mrb[35].mxu1 }
 0xa63   : > { %v2171_v54 = vpop.xlane.xlu1 %2170 }
 0xa64   : > { %6579 = vrcp.f32 %v2171_v54 }
 0xa67   : > { %v2174_v55 = vpop.xlane.xlu0 %2173 }
 0xa68   : > { %6581 = vrcp.f32 %v2174_v55 }
 0xa6e   : > { %v6580_v57 = vpop.eup %6579 }
 0xa72   : > { %v6582_v59 = vpop.eup %6581 }
 0xaae   : > { %v2218_v56 = vpop.f32.mrb[36].mxu1 }
 0xaaf   : > { %v5988_v58 = vpop.f32.mrb[37].mxu1  ;;  %v2225_v61 = vmul.f32 %v6580_v57, %v2218_v56 }
 0xab0   : > { %v2221_v60 = vpop.f32.mrb[38].mxu1 }
 0xab1   : > { %v2226_v62 = vmul.f32 %v6582_v59, %v2221_v60  ;;  %v5989_v63 = vpop.f32.mrb[39].mxu1 }
 0xab3   : > { %v2227_v1 = vpack.c.bf16 %v2226_v62, %v2225_v61 }
 0xab5   : > { %5993 = vmatmul.mubr.msk.bf16.vlgmr.msra.gmra.mrb[28].mxu0 %vm1417_vm1, %v2227_v1 }
 0xab6   : > { %v2324_v3 = vpop.f32.mrb[40].mxu1  ;;  %6004 = vmatprep.mubr.msk.bf16.mxu0 %vm6823_vm0, %v6822_v0 }
 0xab7   : > { %v6000_v4 = vpop.f32.mrb[41].mxu1  ;;  %v2331_v5 = vsel %vm1417_vm1, %v2324_v3, -inf }
 0xab8   : > { %2332 = vmax.xlane.f32.xlu0 %v2331_v5  ;;  %v2327_v6 = vpop.f32.mrb[42].mxu1 }
 0xab9   : > { %v6001_v8 = vpop.f32.mrb[43].mxu1  ;;  %v2334_v9 = vsel %vm1417_vm1, %v2327_v6, -inf }
 0xaba   : > { %2335 = vmax.xlane.f32.xlu1 %v2334_v9  ;;  %v6469_v8 = vld [vmem:[%s6890_s19 + $0x30] sm:$0xff]  }
 0xacb   : > { %2456 = vrot.lane.b32.xlu1 %v7158_v42, %s7929_s7 }
 0xace   : > { %2352 = vrot.lane.b32.xlu0 %v7191_v2, %s7931_s1 }
 0xacf   : > { %2454 = vrot.lane.b32.xlu1 %v7165_v46, %s7929_s7 }
 0xb45   : > { %v2333_v11 = vpop.xlane.xlu0 %2332 }
 0xb46   : > { %v2337_v12 = vsub.f32 %v2324_v3, %v2333_v11 }
 0xb47   : > { %v2336_v13 = vpop.xlane.xlu1 %2335 }
 0xb48   : > { %v2339_v14 = vmul.f32 1.442695, %v2337_v12  ;;  %v2338_v15 = vsub.f32 %v2327_v6, %v2336_v13 }
 0xb49   : > { %v2353_v16 = vpop.permute.xlu0 %2352 }
 0xb4a   : > { %6583 = vpow2.f32 %v2339_v14  ;;  %v2341_v17 = vmul.f32 1.442695, %v2338_v15  ;;  %6003 = vmatpush3.bf16.msra.mxu0 %v2353_v16 }
 0xb4b   : > { %6014 = vmatprep.subr.bf16.mxu0 %v6822_v0  ;;  %v2457_v21 = vpop.permute.xlu1 %2456 }
 0xb4c   : > { %6585 = vpow2.f32 %v2341_v17  ;;  %v2462_v23 = vsel %vm1417_vm1, %v2457_v21, 0 }
 0xb4f   : > { %v2455_v24 = vpop.permute.xlu1 %2454 }
 0xb54   : > { %v6584_v18 = vpop.eup %6583 }
 0xb55   : > { %v2343_v19 = vsel %vm1417_vm1, %v6584_v18, 0.0 }
 0xb56   : > { %v6586_v20 = vpop.eup %6585  ;;  %2344 = vadd.xlane.f32.xlu0 %v2343_v19 }
 0xb57   : > { %v2346_v22 = vsel %vm1417_vm1, %v6586_v20, 0.0  ;;  %v2351_v7 = vpack.c.bf16 %v6586_v20, %v6584_v18 }
 0xb58   : > { %2347 = vadd.xlane.f32.xlu1 %v2346_v22 }
 0xb59   : > { %6005 = vmatmul.mubr.msk.bf16.vlgmr.msra.gmra.mrb[32].mxu0 %vm1417_vm1, %v2351_v7 }
 0xb5a   : > { %6015 = vmatpush3.bf16.xpose.msra.mxu0 %v2462_v23  ;;  %6016 = vmatprep.mubr.msk.bf16.mxu0 %vm6823_vm0, %v6822_v0 }
 0xb5b   : > { %6026 = vmatprep.subr.bf16.mxu0 %v6822_v0 }
 0xb61   : > { %6017 = vmatmul.mubr.msk.bf16.vlgmr.msra.gmra.mrb[36].mxu0 %vm1417_vm1, %v2455_v24 }
 0xb62   : > { %6028 = vmatprep.mubr.msk.bf16.mxu0 %vm6823_vm0, %v6822_v0  ;;  %6027 = vmatpush3.bf16.msra.mxu0 %v6469_v8 }
 0xb63   : > { %6038 = vmatprep.subr.bf16.mxu0 %v6822_v0 }
 0xb69   : > { %2526 = vrot.lane.b32.xlu1 %v7191_v2, %s7929_s7  ;;  %s5617_s7 = sshll.u32 %s7974_s16, 6  ;;  %s7958_s16 = sld [smem:[#allocation14_spill]] }
 0xb6a   : > { %s7383_s1 = scalar_lea.vmem %s6850_s13, %s5617_s7  ;;  %s7386_s23 = scalar_lea.vmem %s7956_s11, %s5617_s7 }
 0xb6b   : > { %v7389_v8 = vld [vmem:[%s7383_s1] sm:$0xff]  ;;  %s7966_s7 = smov 16   ;;  %s7967_s11 = sld [smem:[#allocation16_spill]] }
 0xb6d   : > { %2628 = vrot.lane.b32.xlu1 %v7165_v46, %s7927_s22 }
 0xb88   : > { %v2271_v25 = vpop.f32.mrb[28].mxu0 }
 0xb89   : > { %v2278_v10 = vadd.f32 %v2271_v25, %v7307_v48  ;;  %v5994_v26 = vpop.f32.mrb[29].mxu0 }
 0xb8a   : > { %v2274_v27 = vpop.f32.mrb[30].mxu0 }
 0xb8b   : > { %v2279_v28 = vadd.f32 %v2274_v27, %v7309_v51  ;;  %v5995_v29 = vpop.f32.mrb[31].mxu0 }
 0xbe3   : > { %v2345_v31 = vpop.xlane.xlu0 %2344 }
 0xbe4   : > { %6587 = vrcp.f32 %v2345_v31 }
 0xbe5   : > { %v2348_v32 = vpop.xlane.xlu1 %2347 }
 0xbe6   : > { %6589 = vrcp.f32 %v2348_v32 }
 0xbe9   : > { %v2527_v41 = vpop.permute.xlu1 %2526 }
 0xbed   : > { %v2629_v62 = vpop.permute.xlu1 %2628 }
 0xbee   : > { %v6588_v34 = vpop.eup %6587 }
 0xbf0   : > { %v6590_v46 = vpop.eup %6589 }
 0xc2c   : > { %v2392_v33 = vpop.f32.mrb[32].mxu0 }
 0xc2d   : > { %v6006_v35 = vpop.f32.mrb[33].mxu0  ;;  %v2399_v37 = vmul.f32 %v6588_v34, %v2392_v33 }
 0xc2e   : > { %v2395_v36 = vpop.f32.mrb[34].mxu0 }
 0xc2f   : > { %v2400_v38 = vmul.f32 %v6590_v46, %v2395_v36  ;;  %v6007_v39 = vpop.f32.mrb[35].mxu0 }
 0xc31   : > { %v2401_v40 = vpack.c.bf16 %v2400_v38, %v2399_v37 }
 0xc33   : > { %6011 = vmatmul.mubr.msk.bf16.vlgmr.msra.gmra.mrb[44].mxu1 %vm1417_vm1, %v2401_v40 }
 0xc34   : > { %6021 = vmatpush3.bf16.msra.mxu1 %v2527_v41  ;;  %v2498_v43 = vpop.f32.mrb[36].mxu0  ;;  %6022 = vmatprep.mubr.msk.bf16.mxu1 %vm6823_vm0, %v6822_v0  ;;  %v6470_v41 = vld [vmem:[%s6890_s19 + $0x38] sm:$0xff]  }
 0xc35   : > { %v6018_v44 = vpop.f32.mrb[37].mxu0  ;;  %v2505_v45 = vsel %vm1417_vm1, %v2498_v43, -inf  ;;  %6032 = vmatprep.subr.bf16.mxu1 %v6822_v0 }
 0xc36   : > { %2506 = vmax.xlane.f32.xlu0 %v2505_v45  ;;  %v2501_v47 = vpop.f32.mrb[38].mxu0 }
 0xc37   : > { %v6019_v48 = vpop.f32.mrb[39].mxu0  ;;  %v2508_v49 = vsel %vm1417_vm1, %v2501_v47, -inf }
 0xc3a   : > { %2509 = vmax.xlane.f32.xlu0 %v2508_v49 }
 0xc50   : > { %2630 = vrot.lane.b32.xlu0 %v7158_v42, %s7927_s22 }
 0xcc3   : > { %v2507_v50 = vpop.xlane.xlu0 %2506 }
 0xcc4   : > { %v2511_v51 = vsub.f32 %v2498_v43, %v2507_v50 }
 0xcc6   : > { %v2513_v52 = vmul.f32 1.442695, %v2511_v51 }
 0xcc7   : > { %v2510_v53 = vpop.xlane.xlu0 %2509 }
 0xcc8   : > { %6591 = vpow2.f32 %v2513_v52  ;;  %v2512_v54 = vsub.f32 %v2501_v47, %v2510_v53 }
 0xcca   : > { %v2515_v55 = vmul.f32 1.442695, %v2512_v54 }
 0xccb   : > { %v2631_v59 = vpop.permute.xlu0 %2630 }
 0xccc   : > { %6593 = vpow2.f32 %v2515_v55  ;;  %v2636_v42 = vsel %vm1417_vm1, %v2631_v59, 0 }
 0xcd2   : > { %v6592_v56 = vpop.eup %6591 }
 0xcd3   : > { %v2517_v57 = vsel %vm1417_vm1, %v6592_v56, 0.0 }
 0xcd4   : > { %2518 = vadd.xlane.f32.xlu1 %v2517_v57 }
 0xcd6   : > { %v6594_v58 = vpop.eup %6593 }
 0xcd7   : > { %v2520_v60 = vsel %vm1417_vm1, %v6594_v58, 0.0  ;;  %v2525_v61 = vpack.c.bf16 %v6594_v58, %v6592_v56  ;;  %v5513_v56 = vld [vmem:[%s6895_s24] ss:$0 sm:$0xff] }
 0xcd8   : > { %2521 = vadd.xlane.f32.xlu0 %v2520_v60 }
 0xcd9   : > { %6023 = vmatmul.mubr.msk.bf16.vlgmr.msra.gmra.mrb[48].mxu1 %vm1417_vm1, %v2525_v61 }
 0xcda   : > { %6033 = vmatpush3.bf16.xpose.msra.mxu1 %v2636_v42  ;;  %6034 = vmatprep.mubr.msk.bf16.mxu1 %vm6823_vm0, %v6822_v0 }
 0xcdb   : > { %6044 = vmatprep.subr.bf16.mxu1 %v6822_v0 }
 0xce1   : > { %6035 = vmatmul.mubr.msk.bf16.vlgmr.msra.gmra.mrb[52].mxu1 %vm1417_vm1, %v2629_v62 }
 0xce2   : > { %6046 = vmatprep.mubr.msk.bf16.mxu1 %vm6823_vm0, %v6822_v0  ;;  %6045 = vmatpush3.bf16.msra.mxu1 %v6470_v41 }
 0xd06   : > { %v2445_v63 = vpop.f32.mrb[44].mxu1 }
 0xd07   : > { %v2452_v1 = vadd.f32 %v2445_v63, %v2278_v10  ;;  %v6012_v3 = vpop.f32.mrb[45].mxu1  ;;  %v6683_v63 = vld [vmem:[%s7119_s26] sm:$0xff] }
 0xd08   : > { %v2448_v4 = vpop.f32.mrb[46].mxu1  ;;  %v6684_v3 = vld [vmem:[%s7119_s26 + $0x8] sm:$0xff]  ;;  %s7959_s26 = sld [smem:[#allocation10_spill]] }
 0xd09   : > { %v2453_v5 = vadd.f32 %v2448_v4, %v2279_v28  ;;  %v6013_v6 = vpop.f32.mrb[47].mxu1 }
 0xd0a   : > { %v6472_v6 = vld [vmem:[#allocation2 + $0x8] sm:$0xff]  }
 0xd61   : > { %v2519_v9 = vpop.xlane.xlu1 %2518 }
 0xd62   : > { %6595 = vrcp.f32 %v2519_v9  ;;  %v7392_v9 = vld [vmem:[%s7383_s1 + $0x8] sm:$0xff] }
 0xd65   : > { %v2522_v11 = vpop.xlane.xlu0 %2521 }
 0xd66   : > { %6597 = vrcp.f32 %v2522_v11  ;;  %v1048_v11 = vld [vmem:[%s7386_s23] sm:$0xff] }
 0xd6c   : > { %v6596_v13 = vpop.eup %6595 }
 0xd70   : > { %v6598_v15 = vpop.eup %6597 }
 0xdac   : > { %v2566_v12 = vpop.f32.mrb[48].mxu1 }
 0xdad   : > { %v6024_v14 = vpop.f32.mrb[49].mxu1  ;;  %v2573_v17 = vmul.f32 %v6596_v13, %v2566_v12  ;;  %v1049_v12 = vld [vmem:[%s7386_s23 + $0x8] sm:$0xff]  ;;  %v6473_v13 = vld [vmem:[#allocation2 + $0x10] sm:$0xff]  }
 0xdae   : > { %v2569_v16 = vpop.f32.mrb[50].mxu1  ;;  %v2856_v14 = vadd.f32 %v1048_v11, %v7389_v8 }
 0xdaf   : > { %v2574_v18 = vmul.f32 %v6598_v15, %v2569_v16  ;;  %v6025_v19 = vpop.f32.mrb[51].mxu1  ;;  %v2857_v15 = vadd.f32 %v1049_v12, %v7392_v9 }
 0xdb0   : > { %v6475_v19 = vld [vmem:[#allocation2 + $0x20] sm:$0xff]  }
 0xdb1   : > { %v2575_v20 = vpack.c.bf16 %v2574_v18, %v2573_v17  ;;  %v2979_v17 = vpack.c.bf16 %v2857_v15, %v2856_v14  ;;  %v6474_v18 = vld [vmem:[#allocation2 + $0x18] sm:$0xff]  }
 0xdb3   : > { %6029 = vmatmul.mubr.msk.bf16.vlgmr.msra.gmra.mrb[40].mxu0 %vm1417_vm1, %v2575_v20  ;;  %v6476_v20 = vld [vmem:[#allocation2 + $0x28] sm:$0xff]  }
 0xdb4   : > { %v2672_v21 = vpop.f32.mrb[52].mxu1  ;;  %6040 = vmatprep.mubr.msk.bf16.mxu0 %vm6823_vm0, %v6822_v0 }
 0xdb5   : > { %v6036_v22 = vpop.f32.mrb[53].mxu1  ;;  %v2679_v7 = vsel %vm1417_vm1, %v2672_v21, -inf }
 0xdb6   : > { %2680 = vmax.xlane.f32.xlu0 %v2679_v7  ;;  %v2675_v23 = vpop.f32.mrb[54].mxu1  ;;  %v7401_v22 = vld [vmem:[%s7383_s1 + $0x10] sm:$0xff]  ;;  %v7404_v7 = vld [vmem:[%s7383_s1 + $0x18] sm:$0xff] }
 0xdb7   : > { %v6037_v24 = vpop.f32.mrb[55].mxu1  ;;  %v2682_v25 = vsel %vm1417_vm1, %v2675_v23, -inf }
 0xdb8   : > { %2683 = vmax.xlane.f32.xlu1 %v2682_v25  ;;  %v1051_v24 = vld [vmem:[%s7386_s23 + $0x18] sm:$0xff] }
 0xdb9   : > { %v6478_v25 = vld [vmem:[#allocation2 + $0x38] sm:$0xff]  }
 0xdcc   : > { %2700 = vrot.lane.b32.xlu0 %v7191_v2, %s7927_s22  ;;  %s7957_s22 = sld [smem:[#allocation12_spill]] }
 0xdd2   : > { %v6479_v16 = vld [vmem:[%s7957_s22] sm:$0xff]  }
 0xe43   : > { %v2681_v10 = vpop.xlane.xlu0 %2680 }
 0xe44   : > { %v2685_v26 = vsub.f32 %v2672_v21, %v2681_v10  ;;  %v6477_v21 = vld [vmem:[#allocation2 + $0x30] sm:$0xff]  }
 0xe45   : > { %v2684_v27 = vpop.xlane.xlu1 %2683 }
 0xe46   : > { %v2687_v28 = vmul.f32 1.442695, %v2685_v26  ;;  %v2686_v29 = vsub.f32 %v2675_v23, %v2684_v27  ;;  %v1050_v23 = vld [vmem:[%s7386_s23 + $0x10] sm:$0xff]  ;;  %v2859_v26 = vadd.f32 %v1051_v24, %v7404_v7 }
 0xe47   : > { %v2701_v30 = vpop.permute.xlu0 %2700  ;;  %v2858_v10 = vadd.f32 %v1050_v23, %v7401_v22 }
 0xe48   : > { %6599 = vpow2.f32 %v2687_v28  ;;  %v2689_v31 = vmul.f32 1.442695, %v2686_v29  ;;  %6039 = vmatpush3.bf16.msra.mxu0 %v2701_v30 }
 0xe49   : > { %6050 = vmatprep.subr.bf16.mxu0 %v6822_v0  ;;  %v2980_v27 = vpack.c.bf16 %v2859_v26, %v2858_v10 }
 0xe4a   : > { %6601 = vpow2.f32 %v2689_v31 }
 0xe52   : > { %v6600_v32 = vpop.eup %6599 }
 0xe53   : > { %v2691_v33 = vsel %vm1417_vm1, %v6600_v32, 0.0 }
 0xe54   : > { %v6602_v34 = vpop.eup %6601  ;;  %2692 = vadd.xlane.f32.xlu1 %v2691_v33 }
 0xe55   : > { %v2699_v35 = vpack.c.bf16 %v6602_v34, %v6600_v32  ;;  %v2694_v2 = vsel %vm1417_vm1, %v6602_v34, 0.0 }
 0xe57   : > { %6041 = vmatmul.mubr.msk.bf16.vlgmr.msra.gmra.mrb[44].mxu0 %vm1417_vm1, %v2699_v35 }
 0xe58   : > { %2695 = vadd.xlane.f32.xlu1 %v2694_v2  ;;  %6066 = vmatprep.mubr.msk.bf16.mxu0 %vm6823_vm0, %v6822_v0  ;;  %v7420_v2 = vld [vmem:[%s7383_s1 + $0x20] sm:$0xff] }
 0xe59   : > { %6051 = vmatpush3.bf16.msra.mxu0 %v6479_v16 }
 0xe5a   : > { %6052 = vmatprep.subr.bf16.mxu0 %v6822_v0 }
 0xe86   : > { %v2619_v46 = vpop.f32.mrb[40].mxu0 }
 0xe87   : > { %v2626_v36 = vadd.f32 %v2619_v46, %v2452_v1  ;;  %v6030_v37 = vpop.f32.mrb[41].mxu0  ;;  %v7423_v46 = vld [vmem:[%s7383_s1 + $0x28] sm:$0xff] }
 0xe88   : > { %v2622_v38 = vpop.f32.mrb[42].mxu0  ;;  %v1053_v37 = vld [vmem:[%s7386_s23 + $0x28] sm:$0xff] }
 0xe89   : > { %v2627_v39 = vadd.f32 %v2622_v38, %v2453_v5  ;;  %v6031_v40 = vpop.f32.mrb[43].mxu0  ;;  %v6471_v5 = vld [vmem:[#allocation2] sm:$0xff]   ;;  %v2861_v41 = vadd.f32 %v1053_v37, %v7423_v46 }
 0xe8a   : > { %6070 = vmatprep.subr.bf16.mxu1 %v6471_v5  ;;  %v7432_v40 = vld [vmem:[%s7383_s1 + $0x38] sm:$0xff] }
 0xee1   : > { %v2693_v43 = vpop.xlane.xlu1 %2692 }
 0xee2   : > { %6603 = vrcp.f32 %v2693_v43  ;;  %v1054_v43 = vld [vmem:[%s7386_s23 + $0x30] sm:$0xff] }
 0xee5   : > { %v2696_v44 = vpop.xlane.xlu1 %2695 }
 0xee6   : > { %6605 = vrcp.f32 %v2696_v44  ;;  %v1055_v44 = vld [vmem:[%s7386_s23 + $0x38] sm:$0xff] }
 0xeec   : > { %v6604_v47 = vpop.eup %6603 }
 0xef0   : > { %v6606_v49 = vpop.eup %6605 }
 0xf2a   : > { %v2740_v45 = vpop.f32.mrb[44].mxu0 }
 0xf2b   : > { %v6042_v48 = vpop.f32.mrb[45].mxu0  ;;  %v2747_v51 = vmul.f32 %v6604_v47, %v2740_v45  ;;  %v6480_v45 = vld [vmem:[%s7957_s22 + $0x8] sm:$0xff]  }
 0xf2c   : > { %v2743_v50 = vpop.f32.mrb[46].mxu0  ;;  %v2863_v48 = vadd.f32 %v1055_v44, %v7432_v40  ;;  %6053 = vmatpush3.bf16.msra.mxu0 %v6480_v45 }
 0xf2d   : > { %v2748_v52 = vmul.f32 %v6606_v49, %v2743_v50  ;;  %v6043_v53 = vpop.f32.mrb[47].mxu0  ;;  %6054 = vmatprep.subr.bf16.mxu0 %v6822_v0 }
 0xf2e   : > { %v6483_v53 = vld [vmem:[%s7957_s22 + $0x20] sm:$0xff]  }
 0xf2f   : > { %v2749_v54 = vpack.c.bf16 %v2748_v52, %v2747_v51  ;;  %v6481_v51 = vld [vmem:[%s7957_s22 + $0x10] sm:$0xff]   ;;  %v6482_v52 = vld [vmem:[%s7957_s22 + $0x18] sm:$0xff]  }
 0xf30   : > { %6055 = vmatpush3.bf16.msra.mxu0 %v6481_v51  ;;  %v6489_v51 = vld [vmem:[#allocation4 + $0x10] sm:$0xff]  }
 0xf31   : > { %6047 = vmatmul.mubr.msk.bf16.vlgmr.msra.gmra.mrb[56].mxu1 %vm1417_vm1, %v2749_v54  ;;  %6056 = vmatprep.subr.bf16.mxu0 %v6822_v0  ;;  %v6484_v54 = vld [vmem:[%s7957_s22 + $0x28] sm:$0xff]  }
 0xf32   : > { %6071 = vmatpush3.bf16.msra.mxu1 %v6471_v5  ;;  %6086 = vmatprep.mubr.bf16.mxu1 %v2979_v17 }
 0xf33   : > { %6072 = vmatprep.subr.bf16.mxu1 %v6472_v6 }
 0xf34   : > { %6057 = vmatpush3.bf16.msra.mxu0 %v6482_v52  ;;  %v6490_v52 = vld [vmem:[#allocation4 + $0x18] sm:$0xff]  }
 0xf35   : > { %6058 = vmatprep.subr.bf16.mxu0 %v6822_v0 }
 0xf36   : > { %6073 = vmatpush3.bf16.msra.mxu1 %v6472_v6 }
 0xf37   : > { %6074 = vmatprep.subr.bf16.mxu1 %v6473_v13 }
 0xf38   : > { %6059 = vmatpush3.bf16.msra.mxu0 %v6483_v53  ;;  %v6491_v53 = vld [vmem:[#allocation4 + $0x20] sm:$0xff]  }
 0xf39   : > { %6060 = vmatprep.subr.bf16.mxu0 %v6822_v0 }
 0xf3a   : > { %6075 = vmatpush3.bf16.msra.mxu1 %v6473_v13 }
 0xf3b   : > { %6076 = vmatprep.subr.bf16.mxu1 %v6474_v18 }
 0xf3c   : > { %6061 = vmatpush3.bf16.msra.mxu0 %v6484_v54  ;;  %v6492_v54 = vld [vmem:[#allocation4 + $0x28] sm:$0xff]  }
 0xf3d   : > { %6062 = vmatprep.subr.bf16.mxu0 %v6822_v0 }
 0xf3e   : > { %6077 = vmatpush3.bf16.msra.mxu1 %v6474_v18  ;;  %v5514_v18 = vld [vmem:[%s7959_s26] ss:$0 sm:$0xff]  ;;  %s7969_s26 = sld [smem:[#allocation21_spill]] }
 0xf3f   : > { %6078 = vmatprep.subr.bf16.mxu1 %v6475_v19 }
 0xf42   : > { %6079 = vmatpush3.bf16.msra.mxu1 %v6475_v19 }
 0xf43   : > { %6080 = vmatprep.subr.bf16.mxu1 %v6476_v20 }
 0xf46   : > { %6081 = vmatpush3.bf16.msra.mxu1 %v6476_v20 }
 0xf47   : > { %6082 = vmatprep.subr.bf16.mxu1 %v6477_v21 }
 0xf4a   : > { %6083 = vmatpush3.bf16.msra.mxu1 %v6477_v21 }
 0xf4b   : > { %6084 = vmatprep.subr.bf16.mxu1 %v6478_v25 }
 0xf4e   : > { %6085 = vmatpush3.bf16.msra.mxu1 %v6478_v25 }
 0xf4f   : > { %6118 = vmatprep.subr.bf16.mxu1 %v6822_v0 }
 0xf51   : > { %6087 = vmatmul.mubr.bf16.vlgmr.msra.gmra.mrb[60].mxu1 %v2980_v27  ;;  %v6685_v27 = vld [vmem:[%s7123_s28] sm:$0xff] }
0x1004   : > { %v2793_v55 = vpop.f32.mrb[56].mxu1 }
0x1005   : > { %v2800_v57 = vadd.f32 %v2793_v55, %v2626_v36  ;;  %v6048_v58 = vpop.f32.mrb[57].mxu1  ;;  %v1052_v36 = vld [vmem:[%s7386_s23 + $0x20] sm:$0xff]  ;;  %v6485_v55 = vld [vmem:[%s7957_s22 + $0x30] sm:$0xff]   ;;  %s7960_s23 = sld [smem:[#allocation11_spill]] }
0x1006   : > { %v2796_v59 = vpop.f32.mrb[58].mxu1  ;;  %v2860_v38 = vadd.f32 %v1052_v36, %v7420_v2  ;;  %6063 = vmatpush3.bf16.msra.mxu0 %v6485_v55  ;;  %v6493_v55 = vld [vmem:[#allocation4 + $0x30] sm:$0xff]  }
0x1007   : > { %v2809_v60 = vadd.f32 %v5513_v56, %v2800_v57  ;;  %v2801_v61 = vadd.f32 %v2796_v59, %v2627_v39  ;;  %v6049_v42 = vpop.f32.mrb[59].mxu1  ;;  %v7429_v39 = vld [vmem:[%s7383_s1 + $0x30] sm:$0xff]  ;;  %6064 = vmatprep.subr.bf16.mxu0 %v6822_v0  ;;  %v5525_v57 = vld [vmem:[%s7958_s16] ss:$0 sm:$0xff]  ;;  %s7962_s1 = sld [smem:[#allocation15_spill]]  ;;  %s7968_s16 = sld [smem:[#allocation19_spill]] }
0x1008   : > { %v2862_v47 = vadd.f32 %v1054_v43, %v7429_v39  ;;  %v2981_v49 = vpack.c.bf16 %v2861_v41, %v2860_v38 }
0x1009   : > { %v2810_v62 = vadd.f32 %v5513_v56, %v2801_v61  ;;  %v2811_v1 = vadd.f32 %v6683_v63, %v2809_v60  ;;  %v6486_v56 = vld [vmem:[%s7957_s22 + $0x38] sm:$0xff]  }
0x100a   : > { %v2982_v50 = vpack.c.bf16 %v2863_v48, %v2862_v47  ;;  %6090 = vmatprep.mubr.bf16.mxu1 %v2981_v49  ;;  %6065 = vmatpush3.bf16.msra.mxu0 %v6486_v56  ;;  %v6487_v48 = vld [vmem:[#allocation4] sm:$0xff]   ;;  %v6488_v49 = vld [vmem:[#allocation4 + $0x8] sm:$0xff]   ;;  %v3121_v56 = vpack.c.bf16 %v7423_v46, %v7420_v2 }
0x100b   : > { %2813 = vadd.xlane.f32.xlu1 %v2811_v1  ;;  %v2812_v4 = vadd.f32 %v6684_v3, %v2810_v62  ;;  %v5515_v23 = vld [vmem:[%s7960_s23] ss:$0 sm:$0xff]  ;;  %6094 = vmatprep.subr.bf16.mxu0 %v6487_v48  ;;  %s7970_s23 = sld [smem:[#allocation17_spill]] }
0x100c   : > { %6091 = vmatmul.mubr.bf16.gmra.mrb[64].mxu1 %v2982_v50  ;;  %v3119_v50 = vpack.c.bf16 %v7392_v9, %v7389_v8  ;;  %v6494_v8 = vld [vmem:[#allocation4 + $0x38] sm:$0xff]   ;;  %v3120_v9 = vpack.c.bf16 %v7404_v7, %v7401_v22 }
0x100d   : > { %6126 = vmatprep.mubr.msk.bf16.mxu1 %vm6823_vm0, %v6822_v0 }
0x100f   : > { %2815 = vadd.xlane.f32.xlu1 %v2812_v4 }
0x1024   : > { %v6088_v58 = vpop.f32.mrb[60].mxu1 }
0x1025   : > { %v3097_v59 = vadd.f32 %v6088_v58, %v5525_v57  ;;  %v3088_v60 = vpop.f32.mrb[61].mxu1 }
0x1026   : > { %v3089_v61 = vadd.f32 %v5525_v57, %v3088_v60  ;;  %v6089_v42 = vpop.f32.mrb[62].mxu1 }
0x1027   : > { %v3100_v62 = vadd.f32 %v6089_v42, %v5525_v57  ;;  %v3091_v63 = vpop.f32.mrb[63].mxu1 }
0x1029   : > { %v7455_v3 = vpack.c.bf16 %v3100_v62, %v3097_v59 }
0x102b   : > { %v3291_v6 = vsel %vm1417_vm1, %v7455_v3, 0 }
0x1098   : > { %v2814_v28 = vpop.xlane.xlu1 %2813 }
0x1099   : > { %v2818_v29 = vmul.f32 0.0078125, %v2814_v28 }
0x109b   : > { %v7411_v30 = vsub.f32 %v2811_v1, %v2818_v29  ;;  %v3092_v1 = vadd.f32 %v5525_v57, %v3091_v63  ;;  %v6686_v29 = vld [vmem:[%s7123_s28 + $0x8] sm:$0xff]  ;;  %s7961_s28 = sld [smem:[#allocation13_spill]] }
0x109c   : > { %v2816_v31 = vpop.xlane.xlu1 %2815 }
0x109d   : > { %v2819_v32 = vmul.f32 0.0078125, %v2816_v31  ;;  %v2822_v33 = vmul.f32 %v7411_v30, %v7411_v30 }
0x109f   : > { %2824 = vadd.xlane.f32.xlu1 %v2822_v33  ;;  %v7415_v34 = vsub.f32 %v2812_v4, %v2819_v32  ;;  %v7457_v4 = vpack.c.bf16 %v3092_v1, %v3089_v61 }
0x10a1   : > { %v2823_v35 = vmul.f32 %v7415_v34, %v7415_v34  ;;  %v3288_v5 = vsel %vm1417_vm1, %v7457_v4, 0  ;;  %v5516_v58 = vld [vmem:[%s7961_s28] ss:$0 sm:$0xff]  ;;  %s7971_s28 = sld [smem:[#allocation18_spill]] }
0x10a2   : > { %6119 = vmatpush3.bf16.xpose.msra.mxu1 %v3288_v5 }
0x10a3   : > { %2826 = vadd.xlane.f32.xlu0 %v2823_v35  ;;  %6120 = vmatprep.subr.bf16.mxu1 %v6822_v0 }
0x10aa   : > { %6121 = vmatpush3.bf16.xpose.msra.mxu1 %v3291_v6 }
0x10ab   : > { %6122 = vmatprep.subr.bf16.mxu1 %v6822_v0 }
0x10b0   : > { %3416 = vrot.lane.b32.xlu1 %v7457_v4, %s6824_s2 }
0x10b4   : > { %3418 = vrot.lane.b32.xlu1 %v7455_v3, %s6824_s2 }
0x10df   : > { %v6092_v33 = vpop.f32.mrb[64].mxu1 }
0x10e0   : > { %v3104_v35 = vpop.f32.mrb[65].mxu1 }
0x10e1   : > { %v3105_v36 = vadd.f32 %v5525_v57, %v3104_v35  ;;  %v6093_v37 = vpop.f32.mrb[66].mxu1 }
0x10e2   : > { %v3116_v38 = vadd.f32 %v6093_v37, %v5525_v57 }
0x112c   : > { %v2825_v11 = vpop.xlane.xlu1 %2824 }
0x112d   : > { %v2828_v12 = vmul.f32 0.0078125, %v2825_v11 }
0x112f   : > { %v2830_v13 = vadd.f32 1e-05, %v2828_v12 }
0x1130   : > { %v2827_v14 = vpop.xlane.xlu0 %2826  ;;  %v3417_v62 = vpop.permute.xlu1 %3416 }
0x1131   : > { %6607 = vrsqrt.f32 %v2830_v13  ;;  %v2829_v15 = vmul.f32 0.0078125, %v2827_v14  ;;  %v3428_v2 = vsel %vm1417_vm1, %v3417_v62, 0  ;;  %v5534_v14 = vld [vmem:[%s7962_s1] ss:$0 sm:$0xff]  ;;  %s7972_s1 = sld [smem:[#allocation20_spill]] }
0x1133   : > { %v2831_v16 = vadd.f32 1e-05, %v2829_v15 }
0x1134   : > { %v3419_v46 = vpop.permute.xlu1 %3418 }
0x1135   : > { %6609 = vrsqrt.f32 %v2831_v16 }
0x113b   : > { %v6608_v17 = vpop.eup %6607 }
0x113c   : > { %v2834_v19 = vmul.f32 %v6608_v17, %v7411_v30  ;;  %v3113_v30 = vadd.f32 %v6092_v33, %v5525_v57 }
0x113e   : > { %v2843_v20 = vmul.f32 %v5514_v18, %v2834_v19  ;;  %v7481_v43 = vpack.c.bf16 %v3116_v38, %v3113_v30 }
0x113f   : > { %v6610_v21 = vpop.eup %6609 }
0x1140   : > { %v2835_v24 = vmul.f32 %v6610_v21, %v7415_v34  ;;  %v7473_v10 = vadd.f32 %v5515_v23, %v2843_v20  ;;  %v3107_v34 = vpop.f32.mrb[67].mxu1  ;;  %v3297_v47 = vsel %vm1417_vm1, %v7481_v43, 0 }
0x1141   : > { %v3108_v41 = vadd.f32 %v5525_v57, %v3107_v34  ;;  %v3122_v57 = vpack.c.bf16 %v7432_v40, %v7429_v39  ;;  %v3431_v39 = vsel %vm1417_vm1, %v3419_v46, 0 }
0x1142   : > { %v2844_v25 = vmul.f32 %v5514_v18, %v2835_v24  ;;  %v2854_v28 = vadd.f32 %v6685_v27, %v7473_v10 }
0x1143   : > { %v7483_v44 = vpack.c.bf16 %v3108_v41, %v3105_v36 }
0x1144   : > { %v7475_v26 = vadd.f32 %v5515_v23, %v2844_v25 }
0x1145   : > { %3420 = vrot.lane.b32.xlu1 %v7483_v44, %s6824_s2  ;;  %v3294_v45 = vsel %vm1417_vm1, %v7483_v44, 0 }
0x1146   : > { %v2855_v31 = vadd.f32 %v6686_v29, %v7475_v26  ;;  %6123 = vmatpush3.bf16.xpose.msra.mxu1 %v3294_v45 }
0x1147   : > { %6124 = vmatprep.subr.bf16.mxu1 %v6822_v0 }
0x1148   : > { %v2864_v32 = vpack.c.bf16 %v2855_v31, %v2854_v28 }
0x1149   : > { %3422 = vrot.lane.b32.xlu1 %v7481_v43, %s6824_s2 }
0x114a   : > { %6067 = vmatmul.mubr.bf16.vlgmr.msra.gmra.mrb[48].mxu0 %v2864_v32 }
0x114b   : > { %6110 = vmatprep.mubr.bf16.mxu0 %v3119_v50  ;;  %6095 = vmatpush3.bf16.msra.mxu0 %v6487_v48 }
0x114c   : > { %6096 = vmatprep.subr.bf16.mxu0 %v6488_v49 }
0x114e   : > { %6125 = vmatpush3.bf16.xpose.msra.mxu1 %v3297_v47 }
0x114f   : > { %6142 = vmatprep.subr.bf16.mxu1 %v6822_v0  ;;  %6097 = vmatpush3.bf16.msra.mxu0 %v6488_v49 }
0x1150   : > { %6098 = vmatprep.subr.bf16.mxu0 %v6489_v51 }
0x1153   : > { %6099 = vmatpush3.bf16.msra.mxu0 %v6489_v51 }
0x1154   : > { %6100 = vmatprep.subr.bf16.mxu0 %v6490_v52 }
0x1157   : > { %6101 = vmatpush3.bf16.msra.mxu0 %v6490_v52 }
0x1158   : > { %6102 = vmatprep.subr.bf16.mxu0 %v6491_v53 }
0x115b   : > { %6103 = vmatpush3.bf16.msra.mxu0 %v6491_v53 }
0x115c   : > { %6104 = vmatprep.subr.bf16.mxu0 %v6492_v54 }
0x115f   : > { %6105 = vmatpush3.bf16.msra.mxu0 %v6492_v54 }
0x1160   : > { %6106 = vmatprep.subr.bf16.mxu0 %v6493_v55 }
0x1163   : > { %6107 = vmatpush3.bf16.msra.mxu0 %v6493_v55 }
0x1164   : > { %6108 = vmatprep.subr.bf16.mxu0 %v6494_v8 }
0x1167   : > { %6109 = vmatpush3.bf16.msra.mxu0 %v6494_v8 }
0x1168   : > { %6130 = vmatprep.subr.bf16.mxu0 %v6822_v0 }
0x116a   : > { %6111 = vmatmul.mubr.bf16.vlgmr.msra.gmra.mrb[52].mxu0 %v3120_v9 }
0x116b   : > { %6114 = vmatprep.mubr.bf16.mxu0 %v3121_v56 }
0x1172   : > { %6115 = vmatmul.mubr.bf16.gmra.mrb[56].mxu0 %v3122_v57 }
0x1173   : > { %6138 = vmatprep.mubr.msk.bf16.mxu0 %vm6823_vm0, %v6822_v0 }
0x11b7   : > { %v3421_v40 = vpop.permute.xlu1 %3420 }
0x11b8   : > { %v3434_v6 = vsel %vm1417_vm1, %v3421_v40, 0 }
0x11bb   : > { %v3423_v11 = vpop.permute.xlu1 %3422 }
0x11bc   : > { %v3437_v12 = vsel %vm1417_vm1, %v3423_v11, 0 }
0x121d   : > { %v2970_v59 = vpop.f32.mrb[48].mxu0 }
0x121e   : > { %v2971_v60 = vadd.f32 %v5516_v58, %v2970_v59  ;;  %v6068_v61 = vpop.f32.mrb[49].mxu0 }
0x121f   : > { %v2973_v22 = vpop.f32.mrb[50].mxu0 }
0x1220   : > { %v2974_v7 = vadd.f32 %v5516_v58, %v2973_v22  ;;  %v6069_v42 = vpop.f32.mrb[51].mxu0  ;;  %v2977_v63 = vmul.f32 0.25, %v2971_v60 }
0x1222   : > { %v2978_v1 = vmul.f32 0.25, %v2974_v7 }
0x1224   : > { %v7507_v5 = vpack.c.bf16 %v2978_v1, %v2977_v63 }
0x1226   : > { %3410 = vrot.lane.b32.xlu1 %v7507_v5, %s6824_s2  ;;  %6127 = vmatmul.mubr.msk.bf16.vlgmr.msra.gmra.mrb[68].mxu1 %vm1417_vm1, %v7507_v5 }
0x1227   : > { %6143 = vmatpush3.bf16.xpose.msra.mxu1 %v3428_v2  ;;  %6150 = vmatprep.mubr.msk.bf16.mxu1 %vm6823_vm0, %v6822_v0 }
0x1228   : > { %6144 = vmatprep.subr.bf16.mxu1 %v6822_v0 }
0x122f   : > { %6145 = vmatpush3.bf16.xpose.msra.mxu1 %v3431_v39 }
0x1230   : > { %6146 = vmatprep.subr.bf16.mxu1 %v6822_v0 }
0x1237   : > { %6147 = vmatpush3.bf16.xpose.msra.mxu1 %v3434_v6 }
0x1238   : > { %6148 = vmatprep.subr.bf16.mxu1 %v6822_v0 }
0x123d   : > { %v6112_v15 = vpop.f32.mrb[52].mxu0 }
0x123e   : > { %v3237_v16 = vadd.f32 %v6112_v15, %v5534_v14  ;;  %v3228_v17 = vpop.f32.mrb[53].mxu0 }
0x123f   : > { %6149 = vmatpush3.bf16.xpose.msra.mxu1 %v3437_v12  ;;  %v3229_v18 = vadd.f32 %v5534_v14, %v3228_v17  ;;  %v6113_v19 = vpop.f32.mrb[54].mxu0  ;;  %v6495_v17 = vld [vmem:[#allocation6 + $0x8] sm:$0xff]  }
0x1240   : > { %6172 = vmatprep.subr.bf16.mxu1 %v6822_v0  ;;  %v3240_v20 = vadd.f32 %v6113_v19, %v5534_v14  ;;  %v3231_v21 = vpop.f32.mrb[55].mxu0 }
0x1241   : > { %v3232_v23 = vadd.f32 %v5534_v14, %v3231_v21 }
0x1242   : > { %v7527_v24 = vpack.c.bf16 %v3240_v20, %v3237_v16 }
0x1243   : > { %v7529_v25 = vpack.c.bf16 %v3232_v23, %v3229_v18  ;;  %v6496_v18 = vld [vmem:[#allocation6] sm:$0xff]  }
0x1245   : > { %6131 = vmatpush3.bf16.msra.mxu0 %v7529_v25  ;;  %v6116_v30 = vpop.f32.mrb[56].mxu0 }
0x1246   : > { %6132 = vmatprep.subr.bf16.mxu0 %v6822_v0  ;;  %v3244_v35 = vpop.f32.mrb[57].mxu0  ;;  %v3253_v41 = vadd.f32 %v6116_v30, %v5534_v14 }
0x1247   : > { %v6117_v36 = vpop.f32.mrb[58].mxu0  ;;  %v3245_v38 = vadd.f32 %v5534_v14, %v3244_v35 }
0x1248   : > { %v3247_v37 = vpop.f32.mrb[59].mxu0  ;;  %v3256_v47 = vadd.f32 %v6117_v36, %v5534_v14 }
0x1249   : > { %6133 = vmatpush3.bf16.msra.mxu0 %v7527_v24  ;;  %v3248_v34 = vadd.f32 %v5534_v14, %v3247_v37 }
0x124a   : > { %6134 = vmatprep.subr.bf16.mxu0 %v6822_v0  ;;  %v7543_v48 = vpack.c.bf16 %v3256_v47, %v3253_v41 }
0x124b   : > { %v7537_v45 = vpack.c.bf16 %v3248_v34, %v3245_v38 }
0x124d   : > { %6135 = vmatpush3.bf16.msra.mxu0 %v7537_v45 }
0x124e   : > { %6136 = vmatprep.subr.bf16.mxu0 %v6822_v0 }
0x1251   : > { %6137 = vmatpush3.bf16.msra.mxu0 %v7543_v48 }
0x1252   : > { %6154 = vmatprep.subr.bf16.mxu0 %v6822_v0 }
0x1298   : > { %v3411_v13 = vpop.permute.xlu1 %3410 }
0x1299   : > { %6151 = vmatmul.mubr.msk.bf16.vlgmr.msra.gmra.mrb[72].mxu1 %vm1417_vm1, %v3411_v13 }
0x129a   : > { %6174 = vmatprep.mubr.msk.bf16.mxu1 %vm6823_vm0, %v6822_v0  ;;  %6173 = vmatpush3.bf16.msra.mxu1 %v6496_v18 }
0x129b   : > { %6190 = vmatprep.subr.bf16.mxu1 %v6822_v0 }
0x12f9   : > { %v3333_v27 = vpop.f32.mrb[68].mxu1 }
0x12fa   : > { %v6128_v28 = vpop.f32.mrb[69].mxu1  ;;  %v3341_v29 = vsel %vm3340_vm2, %v3333_v27, -inf }
0x12fb   : > { %3342 = vmax.xlane.f32.xlu0 %v3341_v29  ;;  %v3336_v31 = vpop.f32.mrb[70].mxu1 }
0x12fc   : > { %v6129_v32 = vpop.f32.mrb[71].mxu1  ;;  %v3344_v33 = vsel %vm3340_vm2, %v3336_v31, -inf }
0x12fd   : > { %3345 = vmax.xlane.f32.xlu1 %v3344_v33 }
0x130e   : > { %3511 = vrot.lane.b32.xlu1 %v7543_v48, %s6824_s2 }
0x1311   : > { %3505 = vrot.lane.b32.xlu0 %v7529_v25, %s6824_s2 }
0x1315   : > { %3507 = vrot.lane.b32.xlu0 %v7527_v24, %s6824_s2 }
0x136c   : > { %v3473_v49 = vpop.f32.mrb[72].mxu1 }
0x136d   : > { %v6152_v50 = vpop.f32.mrb[73].mxu1  ;;  %v3480_v51 = vsel %vm3340_vm2, %v3473_v49, -inf }
0x136e   : > { %v3476_v52 = vpop.f32.mrb[74].mxu1  ;;  %3481 = vmax.xlane.f32.xlu0 %v3480_v51 }
0x136f   : > { %v6153_v53 = vpop.f32.mrb[75].mxu1  ;;  %v3483_v54 = vsel %vm3340_vm2, %v3476_v52, -inf }
0x1372   : > { %3484 = vmax.xlane.f32.xlu0 %v3483_v54 }
0x1388   : > { %v3343_v55 = vpop.xlane.xlu0 %3342  ;;  %3509 = vrot.lane.b32.xlu0 %v7537_v45, %s6824_s2  ;;  %s7963_s2 = smov 64  }
0x1389   : > { %v3347_v8 = vsub.f32 %v3333_v27, %v3343_v55 }
0x138a   : > { %v3346_v9 = vpop.xlane.xlu1 %3345 }
0x138b   : > { %v3349_v56 = vmul.f32 1.442695, %v3347_v8  ;;  %v3348_v57 = vsub.f32 %v3336_v31, %v3346_v9 }
0x138c   : > { %v3506_v60 = vpop.permute.xlu0 %3505 }
0x138d   : > { %v3351_v58 = vmul.f32 1.442695, %v3348_v57  ;;  %6611 = vpow2.f32 %v3349_v56 }
0x138e   : > { %v3512_v40 = vpop.permute.xlu1 %3511 }
0x138f   : > { %6613 = vpow2.f32 %v3351_v58 }
0x1390   : > { %v3508_v7 = vpop.permute.xlu0 %3507 }
0x1397   : > { %v6612_v59 = vpop.eup %6611 }
0x1398   : > { %v3353_v16 = vsel %vm3340_vm2, %v6612_v59, 0.0 }
0x1399   : > { %v6614_v61 = vpop.eup %6613 }
0x139a   : > { %v3361_v22 = vpack.c.bf16 %v6614_v61, %v6612_v59  ;;  %v3356_v15 = vsel %vm3340_vm2, %v6614_v61, 0.0 }
0x139c   : > { %6139 = vmatmul.mubr.msk.bf16.vlgmr.msra.gmra.mrb[60].mxu0 %vm3340_vm2, %v3361_v22 }
0x139d   : > { %6155 = vmatpush3.bf16.msra.mxu0 %v3506_v60  ;;  %6162 = vmatprep.mubr.msk.bf16.mxu0 %vm6823_vm0, %v6822_v0 }
0x139e   : > { %6156 = vmatprep.subr.bf16.mxu0 %v6822_v0 }
0x13a1   : > { %6157 = vmatpush3.bf16.msra.mxu0 %v3508_v7 }
0x13a2   : > { %6158 = vmatprep.subr.bf16.mxu0 %v6822_v0 }
0x13fb   : > { %v3482_v42 = vpop.xlane.xlu0 %3481 }
0x13fc   : > { %v3486_v62 = vsub.f32 %v3473_v49, %v3482_v42 }
0x13fe   : > { %v3488_v63 = vmul.f32 1.442695, %v3486_v62 }
0x13ff   : > { %v3485_v1 = vpop.xlane.xlu0 %3484 }
0x1400   : > { %6615 = vpow2.f32 %v3488_v63  ;;  %v3487_v2 = vsub.f32 %v3476_v52, %v3485_v1 }
0x1402   : > { %v3490_v46 = vmul.f32 1.442695, %v3487_v2 }
0x1403   : > { %v3510_v39 = vpop.permute.xlu0 %3509 }
0x1404   : > { %6617 = vpow2.f32 %v3490_v46  ;;  %6159 = vmatpush3.bf16.msra.mxu0 %v3510_v39 }
0x1405   : > { %6160 = vmatprep.subr.bf16.mxu0 %v6822_v0 }
0x1408   : > { %6161 = vmatpush3.bf16.msra.mxu0 %v3512_v40 }
0x1409   : > { %6166 = vmatprep.subr.bf16.mxu0 %v6822_v0 }
0x140a   : > { %v6616_v6 = vpop.eup %6615 }
0x140b   : > { %v3492_v11 = vsel %vm3340_vm2, %v6616_v6, 0.0 }
0x140c   : > { %3493 = vadd.xlane.f32.xlu0 %v3492_v11 }
0x140e   : > { %v6618_v12 = vpop.eup %6617 }
0x140f   : > { %v3495_v13 = vsel %vm3340_vm2, %v6618_v12, 0.0  ;;  %v3500_v14 = vpack.c.bf16 %v6618_v12, %v6616_v6 }
0x1410   : > { %3496 = vadd.xlane.f32.xlu1 %v3495_v13 }
0x1411   : > { %6163 = vmatmul.mubr.msk.bf16.vlgmr.msra.gmra.mrb[64].mxu0 %vm3340_vm2, %v3500_v14 }
0x1412   : > { %6168 = vmatprep.mubr.msk.bf16.mxu0 %vm6823_vm0, %v6822_v0  ;;  %6167 = vmatpush3.bf16.msra.mxu0 %v6495_v17 }
0x1413   : > { %6178 = vmatprep.subr.bf16.mxu0 %v6822_v0 }
0x1421   : > { %3668 = vrot.lane.b32.xlu1 %v7455_v3, %s6825_s10 }
0x1422   : > { %3666 = vrot.lane.b32.xlu0 %v7457_v4, %s6825_s10 }
0x1426   : > { %3670 = vrot.lane.b32.xlu0 %v7483_v44, %s6825_s10 }
0x142a   : > { %3672 = vrot.lane.b32.xlu0 %v7481_v43, %s6825_s10 }
0x142e   : > { %3664 = vrot.lane.b32.xlu0 %v7507_v5, %s6825_s10 }
0x1445   : > { %3357 = vadd.xlane.f32.xlu1 %v3356_v15 }
0x144d   : > { %3354 = vadd.xlane.f32.xlu0 %v3353_v16 }
0x1456   : > { %3751 = vrot.lane.b32.xlu1 %v7529_v25, %s6825_s10 }
0x145a   : > { %3755 = vrot.lane.b32.xlu1 %v7537_v45, %s6825_s10 }
0x145e   : > { %3757 = vrot.lane.b32.xlu1 %v7543_v48, %s6825_s10 }
0x146f   : > { %v3399_v19 = vpop.f32.mrb[60].mxu0 }
0x1470   : > { %v6140_v20 = vpop.f32.mrb[61].mxu0 }
0x1471   : > { %v3402_v21 = vpop.f32.mrb[62].mxu0 }
0x1472   : > { %v6141_v23 = vpop.f32.mrb[63].mxu0 }
0x1499   : > { %v3494_v27 = vpop.xlane.xlu0 %3493 }
0x149d   : > { %v3667_v28 = vpop.permute.xlu0 %3666  ;;  %v3497_v31 = vpop.xlane.xlu1 %3496 }
0x149e   : > { %v3678_v57 = vsel %vm1417_vm1, %v3667_v28, 0 }
0x14a1   : > { %v3671_v29 = vpop.permute.xlu0 %3670  ;;  %v3669_v33 = vpop.permute.xlu1 %3668 }
0x14a2   : > { %v3681_v58 = vsel %vm1417_vm1, %v3669_v33, 0  ;;  %v3684_v59 = vsel %vm1417_vm1, %v3671_v29, 0 }
0x14a5   : > { %v3673_v32 = vpop.permute.xlu0 %3672 }
0x14a6   : > { %v3687_v60 = vsel %vm1417_vm1, %v3673_v32, 0 }
0x14a9   : > { %v3665_v30 = vpop.permute.xlu0 %3664 }
0x14d2   : > { %v3358_v35 = vpop.xlane.xlu1 %3357 }
0x14d3   : > { %6619 = vrcp.f32 %v3358_v35 }
0x14d4   : > { %6621 = vrcp.f32 %v3494_v27 }
0x14d6   : > { %v3752_v56 = vpop.permute.xlu1 %3751 }
0x14da   : > { %v3355_v36 = vpop.xlane.xlu0 %3354  ;;  %v3756_v23 = vpop.permute.xlu1 %3755 }
0x14db   : > { %6623 = vrcp.f32 %v3355_v36 }
0x14dc   : > { %6625 = vrcp.f32 %v3497_v31 }
0x14dd   : > { %v6620_v37 = vpop.eup %6619 }
0x14de   : > { %v6622_v38 = vpop.eup %6621  ;;  %v3407_v50 = vmul.f32 %v6620_v37, %v3402_v21  ;;  %v3758_v28 = vpop.permute.xlu1 %3757 }
0x14e4   : > { %v3554_v34 = vpop.f32.mrb[64].mxu0 }
0x14e5   : > { %v6624_v41 = vpop.eup %6623  ;;  %v6164_v47 = vpop.f32.mrb[65].mxu0  ;;  %v3561_v53 = vmul.f32 %v6622_v38, %v3554_v34 }
0x14e6   : > { %v6626_v49 = vpop.eup %6625  ;;  %v3406_v51 = vmul.f32 %v6624_v41, %v3399_v19  ;;  %v3557_v52 = vpop.f32.mrb[66].mxu0 }
0x14e7   : > { %v3562_v54 = vmul.f32 %v6626_v49, %v3557_v52  ;;  %v6165_v55 = vpop.f32.mrb[67].mxu0 }
0x14e8   : > { %v3408_v8 = vpack.c.bf16 %v3407_v50, %v3406_v51 }
0x14e9   : > { %v3563_v9 = vpack.c.bf16 %v3562_v54, %v3561_v53 }
0x14ea   : > { %6175 = vmatmul.mubr.msk.bf16.vlgmr.msra.gmra.mrb[76].mxu1 %vm1417_vm1, %v3408_v8 }
0x14eb   : > { %6191 = vmatpush3.bf16.msra.mxu1 %v3752_v56  ;;  %6169 = vmatmul.mubr.msk.bf16.vlgmr.msra.gmra.mrb[68].mxu0 %vm1417_vm1, %v3563_v9 }
0x14ec   : > { %6179 = vmatpush3.bf16.xpose.msra.mxu0 %v3678_v57  ;;  %6186 = vmatprep.mubr.msk.bf16.mxu0 %vm6823_vm0, %v6822_v0 }
0x14ed   : > { %6180 = vmatprep.subr.bf16.mxu0 %v6822_v0  ;;  %6192 = vmatprep.subr.bf16.mxu1 %v6822_v0 }
0x14ee   : > { %6198 = vmatprep.mubr.msk.bf16.mxu1 %vm6823_vm0, %v6822_v0 }
0x14f4   : > { %6181 = vmatpush3.bf16.xpose.msra.mxu0 %v3681_v58 }
0x14f5   : > { %6182 = vmatprep.subr.bf16.mxu0 %v6822_v0 }
0x14fc   : > { %6183 = vmatpush3.bf16.xpose.msra.mxu0 %v3684_v59 }
0x14fd   : > { %6184 = vmatprep.subr.bf16.mxu0 %v6822_v0 }
0x1504   : > { %6185 = vmatpush3.bf16.xpose.msra.mxu0 %v3687_v60 }
0x1505   : > { %6220 = vmatprep.subr.bf16.mxu0 %v6822_v0 }
0x150b   : > { %6187 = vmatmul.mubr.msk.bf16.vlgmr.msra.gmra.mrb[72].mxu0 %vm1417_vm1, %v3665_v30  ;;  %v6497_v30 = vld [vmem:[#allocation6 + $0x10] sm:$0xff]  }
0x150c   : > { %6228 = vmatprep.mubr.msk.bf16.mxu0 %vm6823_vm0, %v6822_v0 }
0x15bd   : > { %v3657_v61 = vpop.f32.mrb[76].mxu1 }
0x15be   : > { %v3607_v22 = vpop.f32.mrb[68].mxu0  ;;  %v6176_v7 = vpop.f32.mrb[77].mxu1 }
0x15bf   : > { %v7605_v42 = vadd.f32 %v3657_v61, %v3607_v22  ;;  %v6170_v62 = vpop.f32.mrb[69].mxu0  ;;  %v3660_v63 = vpop.f32.mrb[78].mxu1 }
0x15c0   : > { %v3610_v1 = vpop.f32.mrb[70].mxu0  ;;  %v6177_v2 = vpop.f32.mrb[79].mxu1 }
0x15c1   : > { %v7607_v46 = vadd.f32 %v3660_v63, %v3610_v1  ;;  %v6171_v39 = vpop.f32.mrb[71].mxu0 }
0x15de   : > { %v3723_v40 = vpop.f32.mrb[72].mxu0 }
0x15df   : > { %v6188_v6 = vpop.f32.mrb[73].mxu0  ;;  %v3730_v11 = vsel %vm3340_vm2, %v3723_v40, -inf }
0x15e0   : > { %3731 = vmax.xlane.f32.xlu0 %v3730_v11  ;;  %v3726_v12 = vpop.f32.mrb[74].mxu0 }
0x15e1   : > { %v6189_v13 = vpop.f32.mrb[75].mxu0  ;;  %v3733_v14 = vsel %vm3340_vm2, %v3726_v12, -inf }
0x15e4   : > { %3734 = vmax.xlane.f32.xlu0 %v3733_v14 }
0x15fa   : > { %3753 = vrot.lane.b32.xlu0 %v7527_v24, %s6825_s10  ;;  %s7964_s10 = smov 48  }
0x166d   : > { %v3732_v15 = vpop.xlane.xlu0 %3731 }
0x166e   : > { %v3736_v16 = vsub.f32 %v3723_v40, %v3732_v15 }
0x1670   : > { %v3738_v17 = vmul.f32 1.442695, %v3736_v16 }
0x1671   : > { %v3735_v18 = vpop.xlane.xlu0 %3734 }
0x1672   : > { %6627 = vpow2.f32 %v3738_v17  ;;  %v3737_v19 = vsub.f32 %v3726_v12, %v3735_v18 }
0x1674   : > { %v3740_v20 = vmul.f32 1.442695, %v3737_v19 }
0x1675   : > { %v3754_v21 = vpop.permute.xlu0 %3753 }
0x1676   : > { %6629 = vpow2.f32 %v3740_v20  ;;  %6193 = vmatpush3.bf16.msra.mxu1 %v3754_v21 }
0x1677   : > { %6194 = vmatprep.subr.bf16.mxu1 %v6822_v0 }
0x167a   : > { %6195 = vmatpush3.bf16.msra.mxu1 %v3756_v23 }
0x167b   : > { %6196 = vmatprep.subr.bf16.mxu1 %v6822_v0 }
0x167c   : > { %v6628_v27 = vpop.eup %6627 }
0x167d   : > { %v3742_v29 = vsel %vm3340_vm2, %v6628_v27, 0.0 }
0x167e   : > { %3743 = vadd.xlane.f32.xlu0 %v3742_v29  ;;  %6197 = vmatpush3.bf16.msra.mxu1 %v3758_v28  ;;  %v6498_v29 = vld [vmem:[#allocation6 + $0x18] sm:$0xff]  }
0x167f   : > { %6202 = vmatprep.subr.bf16.mxu1 %v6822_v0 }
0x1680   : > { %v6630_v31 = vpop.eup %6629 }
0x1681   : > { %v3745_v32 = vsel %vm3340_vm2, %v6630_v31, 0.0  ;;  %v3750_v33 = vpack.c.bf16 %v6630_v31, %v6628_v27 }
0x1682   : > { %3746 = vadd.xlane.f32.xlu1 %v3745_v32 }
0x1683   : > { %6199 = vmatmul.mubr.msk.bf16.vlgmr.msra.gmra.mrb[80].mxu1 %vm3340_vm2, %v3750_v33 }
0x1684   : > { %6204 = vmatprep.mubr.msk.bf16.mxu1 %vm6823_vm0, %v6822_v0  ;;  %6203 = vmatpush3.bf16.msra.mxu1 %v6497_v30 }
0x1685   : > { %6208 = vmatprep.subr.bf16.mxu1 %v6822_v0 }
0x1693   : > { %3866 = vrot.lane.b32.xlu1 %v7455_v3, %s6826_s18 }
0x1694   : > { %3864 = vrot.lane.b32.xlu0 %v7457_v4, %s6826_s18 }
0x1697   : > { %3870 = vrot.lane.b32.xlu1 %v7481_v43, %s6826_s18 }
0x1698   : > { %3868 = vrot.lane.b32.xlu0 %v7483_v44, %s6826_s18 }
0x169b   : > { %3951 = vrot.lane.b32.xlu1 %v7527_v24, %s6826_s18 }
0x169c   : > { %3862 = vrot.lane.b32.xlu0 %v7507_v5, %s6826_s18 }
0x16a0   : > { %3949 = vrot.lane.b32.xlu0 %v7529_v25, %s6826_s18 }
0x170b   : > { %v3744_v35 = vpop.xlane.xlu0 %3743 }
0x170c   : > { %6631 = vrcp.f32 %v3744_v35 }
0x170f   : > { %v3747_v36 = vpop.xlane.xlu1 %3746  ;;  %v3865_v37 = vpop.permute.xlu0 %3864 }
0x1710   : > { %6633 = vrcp.f32 %v3747_v36  ;;  %v3876_v58 = vsel %vm1417_vm1, %v3865_v37, 0 }
0x1713   : > { %v3867_v38 = vpop.permute.xlu1 %3866  ;;  %v3869_v34 = vpop.permute.xlu0 %3868 }
0x1714   : > { %v3879_v59 = vsel %vm1417_vm1, %v3867_v38, 0  ;;  %v3882_v60 = vsel %vm1417_vm1, %v3869_v34, 0 }
0x1716   : > { %v6632_v51 = vpop.eup %6631 }
0x1717   : > { %v3863_v41 = vpop.permute.xlu0 %3862  ;;  %v3871_v47 = vpop.permute.xlu1 %3870 }
0x1718   : > { %v3885_v61 = vsel %vm1417_vm1, %v3871_v47, 0 }
0x171a   : > { %v6634_v55 = vpop.eup %6633 }
0x171b   : > { %v3950_v49 = vpop.permute.xlu0 %3949  ;;  %v3952_v50 = vpop.permute.xlu1 %3951 }
0x171c   : > { %6221 = vmatpush3.bf16.msra.mxu0 %v3950_v49 }
0x171d   : > { %6222 = vmatprep.subr.bf16.mxu0 %v6822_v0 }
0x1720   : > { %6223 = vmatpush3.bf16.msra.mxu0 %v3952_v50 }
0x1721   : > { %6224 = vmatprep.subr.bf16.mxu0 %v6822_v0 }
0x1756   : > { %v3800_v52 = vpop.f32.mrb[80].mxu1 }
0x1757   : > { %v3807_v53 = vmul.f32 %v6632_v51, %v3800_v52  ;;  %v6200_v54 = vpop.f32.mrb[81].mxu1 }
0x1758   : > { %v3803_v8 = vpop.f32.mrb[82].mxu1 }
0x1759   : > { %v3808_v9 = vmul.f32 %v6634_v55, %v3803_v8  ;;  %v6201_v56 = vpop.f32.mrb[83].mxu1 }
0x175b   : > { %v3809_v57 = vpack.c.bf16 %v3808_v9, %v3807_v53 }
0x175d   : > { %6205 = vmatmul.mubr.msk.bf16.vlgmr.msra.gmra.mrb[84].mxu1 %vm1417_vm1, %v3809_v57 }
0x175e   : > { %6209 = vmatpush3.bf16.xpose.msra.mxu1 %v3876_v58  ;;  %6216 = vmatprep.mubr.msk.bf16.mxu1 %vm6823_vm0, %v6822_v0 }
0x175f   : > { %6210 = vmatprep.subr.bf16.mxu1 %v6822_v0 }
0x1766   : > { %6211 = vmatpush3.bf16.xpose.msra.mxu1 %v3879_v59 }
0x1767   : > { %6212 = vmatprep.subr.bf16.mxu1 %v6822_v0 }
0x176e   : > { %6213 = vmatpush3.bf16.xpose.msra.mxu1 %v3882_v60 }
0x176f   : > { %6214 = vmatprep.subr.bf16.mxu1 %v6822_v0 }
0x1776   : > { %6215 = vmatpush3.bf16.xpose.msra.mxu1 %v3885_v61 }
0x1777   : > { %6250 = vmatprep.subr.bf16.mxu1 %v6822_v0 }
0x177d   : > { %6217 = vmatmul.mubr.msk.bf16.vlgmr.msra.gmra.mrb[88].mxu1 %vm1417_vm1, %v3863_v41 }
0x177e   : > { %6258 = vmatprep.mubr.msk.bf16.mxu1 %vm6823_vm0, %v6822_v0 }
0x1830   : > { %v3853_v22 = vpop.f32.mrb[84].mxu1 }
0x1831   : > { %v7653_v7 = vadd.f32 %v3853_v22, %v7605_v42  ;;  %v6206_v62 = vpop.f32.mrb[85].mxu1 }
0x1832   : > { %v3856_v63 = vpop.f32.mrb[86].mxu1 }
0x1833   : > { %v7656_v1 = vadd.f32 %v3856_v63, %v7607_v46  ;;  %v6207_v2 = vpop.f32.mrb[87].mxu1 }
0x1850   : > { %v3921_v39 = vpop.f32.mrb[88].mxu1 }
0x1851   : > { %v6218_v40 = vpop.f32.mrb[89].mxu1  ;;  %v3928_v6 = vsel %vm3340_vm2, %v3921_v39, -inf }
0x1852   : > { %3929 = vmax.xlane.f32.xlu1 %v3928_v6  ;;  %v3924_v11 = vpop.f32.mrb[90].mxu1 }
0x1853   : > { %v6219_v12 = vpop.f32.mrb[91].mxu1  ;;  %v3931_v13 = vsel %vm3340_vm2, %v3924_v11, -inf }
0x1854   : > { %3932 = vmax.xlane.f32.xlu0 %v3931_v13 }
0x1863   : > { %3953 = vrot.lane.b32.xlu1 %v7537_v45, %s6826_s18 }
0x186a   : > { %3955 = vrot.lane.b32.xlu0 %v7543_v48, %s6826_s18  ;;  %s7965_s18 = smov 32  }
0x18df   : > { %v3930_v42 = vpop.xlane.xlu1 %3929 }
0x18e0   : > { %v3934_v46 = vsub.f32 %v3921_v39, %v3930_v42 }
0x18e1   : > { %v3933_v14 = vpop.xlane.xlu0 %3932 }
0x18e2   : > { %v3936_v15 = vmul.f32 1.442695, %v3934_v46  ;;  %v3935_v16 = vsub.f32 %v3924_v11, %v3933_v14 }
0x18e3   : > { %v3954_v17 = vpop.permute.xlu1 %3953 }
0x18e4   : > { %6635 = vpow2.f32 %v3936_v15  ;;  %v3938_v18 = vmul.f32 1.442695, %v3935_v16  ;;  %6225 = vmatpush3.bf16.msra.mxu0 %v3954_v17 }
0x18e5   : > { %6226 = vmatprep.subr.bf16.mxu0 %v6822_v0  ;;  %v3956_v19 = vpop.permute.xlu0 %3955 }
0x18e6   : > { %6637 = vpow2.f32 %v3938_v18 }
0x18e8   : > { %6227 = vmatpush3.bf16.msra.mxu0 %v3956_v19 }
0x18e9   : > { %6232 = vmatprep.subr.bf16.mxu0 %v6822_v0 }
0x18ee   : > { %v6636_v20 = vpop.eup %6635 }
0x18ef   : > { %v3940_v21 = vsel %vm3340_vm2, %v6636_v20, 0.0 }
0x18f0   : > { %v6638_v23 = vpop.eup %6637  ;;  %3941 = vadd.xlane.f32.xlu1 %v3940_v21  ;;  %v6499_v21 = vld [vmem:[#allocation6 + $0x20] sm:$0xff]  }
0x18f1   : > { %v3943_v27 = vsel %vm3340_vm2, %v6638_v23, 0.0  ;;  %v3948_v28 = vpack.c.bf16 %v6638_v23, %v6636_v20 }
0x18f2   : > { %3944 = vadd.xlane.f32.xlu0 %v3943_v27 }
0x18f3   : > { %6229 = vmatmul.mubr.msk.bf16.vlgmr.msra.gmra.mrb[76].mxu0 %vm3340_vm2, %v3948_v28 }
0x18f4   : > { %6234 = vmatprep.mubr.msk.bf16.mxu0 %vm6823_vm0, %v6822_v0  ;;  %6233 = vmatpush3.bf16.msra.mxu0 %v6498_v29 }
0x18f5   : > { %6238 = vmatprep.subr.bf16.mxu0 %v6822_v0 }
0x1901   : > { %4064 = vrot.lane.b32.xlu1 %v7455_v3, %s7963_s2 }
0x1905   : > { %4066 = vrot.lane.b32.xlu1 %v7483_v44, %s7963_s2 }
0x1908   : > { %4062 = vrot.lane.b32.xlu0 %v7457_v4, %s7963_s2 }
0x1909   : > { %4060 = vrot.lane.b32.xlu1 %v7507_v5, %s7963_s2 }
0x190c   : > { %4068 = vrot.lane.b32.xlu0 %v7481_v43, %s7963_s2 }
0x190d   : > { %4149 = vrot.lane.b32.xlu1 %v7527_v24, %s7963_s2 }
0x1910   : > { %4147 = vrot.lane.b32.xlu0 %v7529_v25, %s7963_s2 }
0x197d   : > { %v3942_v31 = vpop.xlane.xlu1 %3941 }
0x197e   : > { %6639 = vrcp.f32 %v3942_v31 }
0x197f   : > { %v3945_v32 = vpop.xlane.xlu0 %3944 }
0x1980   : > { %6641 = vrcp.f32 %v3945_v32 }
0x1981   : > { %v4065_v33 = vpop.permute.xlu1 %4064 }
0x1982   : > { %v4077_v9 = vsel %vm1417_vm1, %v4065_v33, 0 }
0x1983   : > { %v4063_v30 = vpop.permute.xlu0 %4062 }
0x1984   : > { %v4074_v8 = vsel %vm1417_vm1, %v4063_v30, 0 }
0x1985   : > { %v4067_v35 = vpop.permute.xlu1 %4066 }
0x1986   : > { %v4080_v56 = vsel %vm1417_vm1, %v4067_v35, 0 }
0x1987   : > { %v4069_v36 = vpop.permute.xlu0 %4068 }
0x1988   : > { %v6640_v47 = vpop.eup %6639  ;;  %v4083_v57 = vsel %vm1417_vm1, %v4069_v36, 0 }
0x1989   : > { %v4061_v37 = vpop.permute.xlu1 %4060 }
0x198a   : > { %v6642_v50 = vpop.eup %6641 }
0x198b   : > { %v4148_v38 = vpop.permute.xlu0 %4147 }
0x198c   : > { %6251 = vmatpush3.bf16.msra.mxu1 %v4148_v38 }
0x198d   : > { %6252 = vmatprep.subr.bf16.mxu1 %v6822_v0  ;;  %v4150_v34 = vpop.permute.xlu1 %4149 }
0x1990   : > { %6253 = vmatpush3.bf16.msra.mxu1 %v4150_v34 }
0x1991   : > { %6254 = vmatprep.subr.bf16.mxu1 %v6822_v0 }
0x19c6   : > { %v3998_v41 = vpop.f32.mrb[76].mxu0 }
0x19c7   : > { %v6230_v49 = vpop.f32.mrb[77].mxu0  ;;  %v4005_v52 = vmul.f32 %v6640_v47, %v3998_v41 }
0x19c8   : > { %v4001_v51 = vpop.f32.mrb[78].mxu0 }
0x19c9   : > { %v4006_v53 = vmul.f32 %v6642_v50, %v4001_v51  ;;  %v6231_v54 = vpop.f32.mrb[79].mxu0 }
0x19cb   : > { %v4007_v55 = vpack.c.bf16 %v4006_v53, %v4005_v52 }
0x19cd   : > { %6235 = vmatmul.mubr.msk.bf16.vlgmr.msra.gmra.mrb[80].mxu0 %vm1417_vm1, %v4007_v55 }
0x19ce   : > { %6239 = vmatpush3.bf16.xpose.msra.mxu0 %v4074_v8  ;;  %6246 = vmatprep.mubr.msk.bf16.mxu0 %vm6823_vm0, %v6822_v0 }
0x19cf   : > { %6240 = vmatprep.subr.bf16.mxu0 %v6822_v0 }
0x19d6   : > { %6241 = vmatpush3.bf16.xpose.msra.mxu0 %v4077_v9 }
0x19d7   : > { %6242 = vmatprep.subr.bf16.mxu0 %v6822_v0 }
0x19de   : > { %6243 = vmatpush3.bf16.xpose.msra.mxu0 %v4080_v56 }
0x19df   : > { %6244 = vmatprep.subr.bf16.mxu0 %v6822_v0 }
0x19e6   : > { %6245 = vmatpush3.bf16.xpose.msra.mxu0 %v4083_v57 }
0x19e7   : > { %6280 = vmatprep.subr.bf16.mxu0 %v6822_v0 }
0x19ed   : > { %6247 = vmatmul.mubr.msk.bf16.vlgmr.msra.gmra.mrb[84].mxu0 %vm1417_vm1, %v4061_v37 }
0x19ee   : > { %6288 = vmatprep.mubr.msk.bf16.mxu0 %vm6823_vm0, %v6822_v0 }
0x1aa0   : > { %v4051_v58 = vpop.f32.mrb[80].mxu0 }
0x1aa1   : > { %v7703_v59 = vadd.f32 %v4051_v58, %v7653_v7  ;;  %v6236_v60 = vpop.f32.mrb[81].mxu0 }
0x1aa2   : > { %v4054_v61 = vpop.f32.mrb[82].mxu0 }
0x1aa3   : > { %v7706_v22 = vadd.f32 %v4054_v61, %v7656_v1  ;;  %v6237_v62 = vpop.f32.mrb[83].mxu0 }
0x1ac0   : > { %v4119_v63 = vpop.f32.mrb[84].mxu0 }
0x1ac1   : > { %v6248_v2 = vpop.f32.mrb[85].mxu0  ;;  %v4126_v39 = vsel %vm3340_vm2, %v4119_v63, -inf }
0x1ac2   : > { %4127 = vmax.xlane.f32.xlu0 %v4126_v39  ;;  %v4122_v40 = vpop.f32.mrb[86].mxu0 }
0x1ac3   : > { %v6249_v6 = vpop.f32.mrb[87].mxu0  ;;  %v4129_v11 = vsel %vm3340_vm2, %v4122_v40, -inf }
0x1ac4   : > { %4130 = vmax.xlane.f32.xlu1 %v4129_v11 }
0x1ad5   : > { %4153 = vrot.lane.b32.xlu1 %v7543_v48, %s7963_s2 }
0x1ad8   : > { %4151 = vrot.lane.b32.xlu0 %v7537_v45, %s7963_s2  ;;  %s1034_s2 = scalar_lea.vmem %s6990_s12, %s7110_s0 }
0x1b4f   : > { %v4128_v7 = vpop.xlane.xlu0 %4127 }
0x1b50   : > { %v4132_v1 = vsub.f32 %v4119_v63, %v4128_v7 }
0x1b51   : > { %v4131_v12 = vpop.xlane.xlu1 %4130 }
0x1b52   : > { %v4134_v13 = vmul.f32 1.442695, %v4132_v1  ;;  %v4133_v42 = vsub.f32 %v4122_v40, %v4131_v12 }
0x1b53   : > { %v4152_v46 = vpop.permute.xlu0 %4151 }
0x1b54   : > { %6643 = vpow2.f32 %v4134_v13  ;;  %v4136_v14 = vmul.f32 1.442695, %v4133_v42  ;;  %6255 = vmatpush3.bf16.msra.mxu1 %v4152_v46 }
0x1b55   : > { %6256 = vmatprep.subr.bf16.mxu1 %v6822_v0  ;;  %v4154_v15 = vpop.permute.xlu1 %4153 }
0x1b56   : > { %6645 = vpow2.f32 %v4136_v14 }
0x1b58   : > { %6257 = vmatpush3.bf16.msra.mxu1 %v4154_v15 }
0x1b59   : > { %6262 = vmatprep.subr.bf16.mxu1 %v6822_v0 }
0x1b5e   : > { %v6644_v16 = vpop.eup %6643 }
0x1b5f   : > { %v4138_v17 = vsel %vm3340_vm2, %v6644_v16, 0.0 }
0x1b60   : > { %v6646_v18 = vpop.eup %6645  ;;  %4139 = vadd.xlane.f32.xlu0 %v4138_v17  ;;  %v6500_v17 = vld [vmem:[#allocation6 + $0x28] sm:$0xff]  }
0x1b61   : > { %v4141_v19 = vsel %vm3340_vm2, %v6646_v18, 0.0  ;;  %v4146_v20 = vpack.c.bf16 %v6646_v18, %v6644_v16 }
0x1b62   : > { %4142 = vadd.xlane.f32.xlu1 %v4141_v19 }
0x1b63   : > { %6259 = vmatmul.mubr.msk.bf16.vlgmr.msra.gmra.mrb[92].mxu1 %vm3340_vm2, %v4146_v20 }
0x1b64   : > { %6264 = vmatprep.mubr.msk.bf16.mxu1 %vm6823_vm0, %v6822_v0  ;;  %6263 = vmatpush3.bf16.msra.mxu1 %v6499_v21 }
0x1b65   : > { %6268 = vmatprep.subr.bf16.mxu1 %v6822_v0 }
0x1b73   : > { %4262 = vrot.lane.b32.xlu1 %v7455_v3, %s7964_s10 }
0x1b76   : > { %4260 = vrot.lane.b32.xlu0 %v7457_v4, %s7964_s10 }
0x1b77   : > { %4266 = vrot.lane.b32.xlu1 %v7481_v43, %s7964_s10 }
0x1b7a   : > { %4264 = vrot.lane.b32.xlu0 %v7483_v44, %s7964_s10 }
0x1b7b   : > { %4347 = vrot.lane.b32.xlu1 %v7527_v24, %s7964_s10 }
0x1b7e   : > { %4258 = vrot.lane.b32.xlu0 %v7507_v5, %s7964_s10 }
0x1b82   : > { %4345 = vrot.lane.b32.xlu0 %v7529_v25, %s7964_s10 }
0x1bed   : > { %v4140_v23 = vpop.xlane.xlu0 %4139 }
0x1bee   : > { %6647 = vrcp.f32 %v4140_v23 }
0x1bef   : > { %v4143_v27 = vpop.xlane.xlu1 %4142 }
0x1bf0   : > { %6649 = vrcp.f32 %v4143_v27 }
0x1bf1   : > { %v4261_v28 = vpop.permute.xlu0 %4260 }
0x1bf2   : > { %v4272_v52 = vsel %vm1417_vm1, %v4261_v28, 0 }
0x1bf3   : > { %v4263_v29 = vpop.permute.xlu1 %4262 }
0x1bf4   : > { %v4275_v53 = vsel %vm1417_vm1, %v4263_v29, 0 }
0x1bf5   : > { %v4265_v31 = vpop.permute.xlu0 %4264 }
0x1bf6   : > { %v4278_v54 = vsel %vm1417_vm1, %v4265_v31, 0 }
0x1bf7   : > { %v4267_v33 = vpop.permute.xlu1 %4266 }
0x1bf8   : > { %v6648_v36 = vpop.eup %6647  ;;  %v4281_v55 = vsel %vm1417_vm1, %v4267_v33, 0 }
0x1bf9   : > { %v4259_v32 = vpop.permute.xlu0 %4258 }
0x1bfa   : > { %v6650_v41 = vpop.eup %6649 }
0x1bfb   : > { %v4348_v35 = vpop.permute.xlu1 %4347 }
0x1bfd   : > { %v4346_v30 = vpop.permute.xlu0 %4345 }
0x1bfe   : > { %6281 = vmatpush3.bf16.msra.mxu0 %v4346_v30 }
0x1bff   : > { %6282 = vmatprep.subr.bf16.mxu0 %v6822_v0 }
0x1c02   : > { %6283 = vmatpush3.bf16.msra.mxu0 %v4348_v35 }
0x1c03   : > { %6284 = vmatprep.subr.bf16.mxu0 %v6822_v0 }
0x1c36   : > { %v4196_v37 = vpop.f32.mrb[92].mxu1 }
0x1c37   : > { %v4203_v38 = vmul.f32 %v6648_v36, %v4196_v37  ;;  %v6260_v34 = vpop.f32.mrb[93].mxu1 }
0x1c38   : > { %v4199_v47 = vpop.f32.mrb[94].mxu1 }
0x1c39   : > { %v4204_v49 = vmul.f32 %v6650_v41, %v4199_v47  ;;  %v6261_v50 = vpop.f32.mrb[95].mxu1 }
0x1c3b   : > { %v4205_v51 = vpack.c.bf16 %v4204_v49, %v4203_v38 }
0x1c3d   : > { %6265 = vmatmul.mubr.msk.bf16.vlgmr.msra.gmra.mrb[96].mxu1 %vm1417_vm1, %v4205_v51 }
0x1c3e   : > { %6269 = vmatpush3.bf16.xpose.msra.mxu1 %v4272_v52  ;;  %6276 = vmatprep.mubr.msk.bf16.mxu1 %vm6823_vm0, %v6822_v0 }
0x1c3f   : > { %6270 = vmatprep.subr.bf16.mxu1 %v6822_v0 }
0x1c46   : > { %6271 = vmatpush3.bf16.xpose.msra.mxu1 %v4275_v53 }
0x1c47   : > { %6272 = vmatprep.subr.bf16.mxu1 %v6822_v0 }
0x1c4e   : > { %6273 = vmatpush3.bf16.xpose.msra.mxu1 %v4278_v54 }
0x1c4f   : > { %6274 = vmatprep.subr.bf16.mxu1 %v6822_v0 }
0x1c56   : > { %6275 = vmatpush3.bf16.xpose.msra.mxu1 %v4281_v55 }
0x1c57   : > { %6310 = vmatprep.subr.bf16.mxu1 %v6822_v0 }
0x1c5d   : > { %6277 = vmatmul.mubr.msk.bf16.vlgmr.msra.gmra.mrb[100].mxu1 %vm1417_vm1, %v4259_v32 }
0x1c5e   : > { %6318 = vmatprep.mubr.msk.bf16.mxu1 %vm6823_vm0, %v6822_v0 }
0x1d10   : > { %v4249_v8 = vpop.f32.mrb[96].mxu1 }
0x1d11   : > { %v7753_v9 = vadd.f32 %v4249_v8, %v7703_v59  ;;  %v6266_v56 = vpop.f32.mrb[97].mxu1 }
0x1d12   : > { %v4252_v57 = vpop.f32.mrb[98].mxu1 }
0x1d13   : > { %v7756_v58 = vadd.f32 %v4252_v57, %v7706_v22  ;;  %v6267_v60 = vpop.f32.mrb[99].mxu1 }
0x1d30   : > { %v4317_v61 = vpop.f32.mrb[100].mxu1 }
0x1d31   : > { %v6278_v62 = vpop.f32.mrb[101].mxu1  ;;  %v4324_v63 = vsel %vm3340_vm2, %v4317_v61, -inf }
0x1d32   : > { %4325 = vmax.xlane.f32.xlu1 %v4324_v63  ;;  %v4320_v2 = vpop.f32.mrb[102].mxu1 }
0x1d33   : > { %v6279_v39 = vpop.f32.mrb[103].mxu1  ;;  %v4327_v40 = vsel %vm3340_vm2, %v4320_v2, -inf }
0x1d34   : > { %4328 = vmax.xlane.f32.xlu0 %v4327_v40 }
0x1d43   : > { %4349 = vrot.lane.b32.xlu1 %v7537_v45, %s7964_s10 }
0x1d4a   : > { %4351 = vrot.lane.b32.xlu0 %v7543_v48, %s7964_s10 }
0x1dbf   : > { %v4326_v59 = vpop.xlane.xlu1 %4325 }
0x1dc0   : > { %v4330_v22 = vsub.f32 %v4317_v61, %v4326_v59 }
0x1dc1   : > { %v4329_v6 = vpop.xlane.xlu0 %4328 }
0x1dc2   : > { %v4332_v11 = vmul.f32 1.442695, %v4330_v22  ;;  %v4331_v7 = vsub.f32 %v4320_v2, %v4329_v6 }
0x1dc3   : > { %v4350_v1 = vpop.permute.xlu1 %4349 }
0x1dc4   : > { %6651 = vpow2.f32 %v4332_v11  ;;  %v4334_v12 = vmul.f32 1.442695, %v4331_v7  ;;  %6285 = vmatpush3.bf16.msra.mxu0 %v4350_v1 }
0x1dc5   : > { %6286 = vmatprep.subr.bf16.mxu0 %v6822_v0  ;;  %v4352_v13 = vpop.permute.xlu0 %4351 }
0x1dc6   : > { %6653 = vpow2.f32 %v4334_v12 }
0x1dc8   : > { %6287 = vmatpush3.bf16.msra.mxu0 %v4352_v13 }
0x1dc9   : > { %6292 = vmatprep.subr.bf16.mxu0 %v6822_v0 }
0x1dce   : > { %v6652_v42 = vpop.eup %6651 }
0x1dcf   : > { %v4336_v46 = vsel %vm3340_vm2, %v6652_v42, 0.0 }
0x1dd0   : > { %v6654_v14 = vpop.eup %6653  ;;  %4337 = vadd.xlane.f32.xlu1 %v4336_v46  ;;  %v6501_v46 = vld [vmem:[#allocation6 + $0x30] sm:$0xff]  }
0x1dd1   : > { %v4339_v15 = vsel %vm3340_vm2, %v6654_v14, 0.0  ;;  %v4344_v16 = vpack.c.bf16 %v6654_v14, %v6652_v42 }
0x1dd2   : > { %4340 = vadd.xlane.f32.xlu0 %v4339_v15 }
0x1dd3   : > { %6289 = vmatmul.mubr.msk.bf16.vlgmr.msra.gmra.mrb[88].mxu0 %vm3340_vm2, %v4344_v16 }
0x1dd4   : > { %6294 = vmatprep.mubr.msk.bf16.mxu0 %vm6823_vm0, %v6822_v0  ;;  %6293 = vmatpush3.bf16.msra.mxu0 %v6500_v17 }
0x1dd5   : > { %6298 = vmatprep.subr.bf16.mxu0 %v6822_v0 }
0x1de1   : > { %4460 = vrot.lane.b32.xlu1 %v7455_v3, %s7965_s18 }
0x1de5   : > { %4462 = vrot.lane.b32.xlu1 %v7483_v44, %s7965_s18 }
0x1de8   : > { %4458 = vrot.lane.b32.xlu0 %v7457_v4, %s7965_s18 }
0x1de9   : > { %4456 = vrot.lane.b32.xlu1 %v7507_v5, %s7965_s18 }
0x1dec   : > { %4464 = vrot.lane.b32.xlu0 %v7481_v43, %s7965_s18 }
0x1ded   : > { %4545 = vrot.lane.b32.xlu1 %v7527_v24, %s7965_s18 }
0x1df0   : > { %4543 = vrot.lane.b32.xlu0 %v7529_v25, %s7965_s18 }
0x1e5d   : > { %v4338_v18 = vpop.xlane.xlu1 %4337 }
0x1e5e   : > { %6655 = vrcp.f32 %v4338_v18 }
0x1e5f   : > { %v4341_v19 = vpop.xlane.xlu0 %4340 }
0x1e60   : > { %6657 = vrcp.f32 %v4341_v19 }
0x1e61   : > { %v4461_v20 = vpop.permute.xlu1 %4460 }
0x1e62   : > { %v4473_v49 = vsel %vm1417_vm1, %v4461_v20, 0 }
0x1e63   : > { %v4459_v21 = vpop.permute.xlu0 %4458 }
0x1e64   : > { %v4470_v47 = vsel %vm1417_vm1, %v4459_v21, 0 }
0x1e65   : > { %v4463_v23 = vpop.permute.xlu1 %4462 }
0x1e66   : > { %v4476_v50 = vsel %vm1417_vm1, %v4463_v23, 0 }
0x1e67   : > { %v4465_v27 = vpop.permute.xlu0 %4464 }
0x1e68   : > { %v6656_v33 = vpop.eup %6655  ;;  %v4479_v51 = vsel %vm1417_vm1, %v4465_v27, 0 }
0x1e69   : > { %v4457_v28 = vpop.permute.xlu1 %4456 }
0x1e6a   : > { %v6658_v35 = vpop.eup %6657 }
0x1e6b   : > { %v4544_v29 = vpop.permute.xlu0 %4543 }
0x1e6c   : > { %6311 = vmatpush3.bf16.msra.mxu1 %v4544_v29 }
0x1e6d   : > { %6312 = vmatprep.subr.bf16.mxu1 %v6822_v0  ;;  %v4546_v31 = vpop.permute.xlu1 %4545 }
0x1e70   : > { %6313 = vmatpush3.bf16.msra.mxu1 %v4546_v31 }
0x1e71   : > { %6314 = vmatprep.subr.bf16.mxu1 %v6822_v0 }
0x1ea6   : > { %v4394_v32 = vpop.f32.mrb[88].mxu0 }
0x1ea7   : > { %v6290_v30 = vpop.f32.mrb[89].mxu0  ;;  %v4401_v37 = vmul.f32 %v6656_v33, %v4394_v32 }
0x1ea8   : > { %v4397_v36 = vpop.f32.mrb[90].mxu0 }
0x1ea9   : > { %v4402_v38 = vmul.f32 %v6658_v35, %v4397_v36  ;;  %v6291_v34 = vpop.f32.mrb[91].mxu0 }
0x1eab   : > { %v4403_v41 = vpack.c.bf16 %v4402_v38, %v4401_v37 }
0x1ead   : > { %6295 = vmatmul.mubr.msk.bf16.vlgmr.msra.gmra.mrb[92].mxu0 %vm1417_vm1, %v4403_v41 }
0x1eae   : > { %6299 = vmatpush3.bf16.xpose.msra.mxu0 %v4470_v47  ;;  %6306 = vmatprep.mubr.msk.bf16.mxu0 %vm6823_vm0, %v6822_v0 }
0x1eaf   : > { %6300 = vmatprep.subr.bf16.mxu0 %v6822_v0 }
0x1eb6   : > { %6301 = vmatpush3.bf16.xpose.msra.mxu0 %v4473_v49 }
0x1eb7   : > { %6302 = vmatprep.subr.bf16.mxu0 %v6822_v0 }
0x1ebe   : > { %6303 = vmatpush3.bf16.xpose.msra.mxu0 %v4476_v50 }
0x1ebf   : > { %6304 = vmatprep.subr.bf16.mxu0 %v6822_v0 }
0x1ec6   : > { %6305 = vmatpush3.bf16.xpose.msra.mxu0 %v4479_v51 }
0x1ec7   : > { %6340 = vmatprep.subr.bf16.mxu0 %v6822_v0 }
0x1ecd   : > { %6307 = vmatmul.mubr.msk.bf16.vlgmr.msra.gmra.mrb[96].mxu0 %vm1417_vm1, %v4457_v28 }
0x1ece   : > { %6348 = vmatprep.mubr.msk.bf16.mxu0 %vm6823_vm0, %v6822_v0 }
0x1f80   : > { %v4447_v52 = vpop.f32.mrb[92].mxu0 }
0x1f81   : > { %v7803_v53 = vadd.f32 %v4447_v52, %v7753_v9  ;;  %v6296_v54 = vpop.f32.mrb[93].mxu0 }
0x1f82   : > { %v4450_v55 = vpop.f32.mrb[94].mxu0 }
0x1f83   : > { %v7806_v8 = vadd.f32 %v4450_v55, %v7756_v58  ;;  %v6297_v56 = vpop.f32.mrb[95].mxu0 }
0x1fa0   : > { %v4515_v57 = vpop.f32.mrb[96].mxu0 }
0x1fa1   : > { %v6308_v60 = vpop.f32.mrb[97].mxu0  ;;  %v4522_v61 = vsel %vm3340_vm2, %v4515_v57, -inf }
0x1fa2   : > { %4523 = vmax.xlane.f32.xlu0 %v4522_v61  ;;  %v4518_v62 = vpop.f32.mrb[98].mxu0 }
0x1fa3   : > { %v6309_v63 = vpop.f32.mrb[99].mxu0  ;;  %v4525_v2 = vsel %vm3340_vm2, %v4518_v62, -inf }
0x1fa4   : > { %4526 = vmax.xlane.f32.xlu1 %v4525_v2 }
0x1fb5   : > { %4549 = vrot.lane.b32.xlu1 %v7543_v48, %s7965_s18 }
0x1fb8   : > { %4547 = vrot.lane.b32.xlu0 %v7537_v45, %s7965_s18 }
0x202f   : > { %v4524_v9 = vpop.xlane.xlu0 %4523 }
0x2030   : > { %v4528_v58 = vsub.f32 %v4515_v57, %v4524_v9  ;;  %v6502_v9 = vld [vmem:[#allocation6 + $0x38] sm:$0xff]  }
0x2031   : > { %v4527_v39 = vpop.xlane.xlu1 %4526 }
0x2032   : > { %v4530_v40 = vmul.f32 1.442695, %v4528_v58  ;;  %v4529_v59 = vsub.f32 %v4518_v62, %v4527_v39 }
0x2033   : > { %v4548_v22 = vpop.permute.xlu0 %4547 }
0x2034   : > { %6659 = vpow2.f32 %v4530_v40  ;;  %v4532_v6 = vmul.f32 1.442695, %v4529_v59  ;;  %6315 = vmatpush3.bf16.msra.mxu1 %v4548_v22 }
0x2035   : > { %6316 = vmatprep.subr.bf16.mxu1 %v6822_v0  ;;  %v4550_v11 = vpop.permute.xlu1 %4549 }
0x2036   : > { %6661 = vpow2.f32 %v4532_v6 }
0x2038   : > { %6317 = vmatpush3.bf16.msra.mxu1 %v4550_v11 }
0x2039   : > { %6322 = vmatprep.subr.bf16.mxu1 %v6822_v0 }
0x203e   : > { %v6660_v7 = vpop.eup %6659 }
0x203f   : > { %v4534_v1 = vsel %vm3340_vm2, %v6660_v7, 0.0 }
0x2040   : > { %v6662_v12 = vpop.eup %6661  ;;  %4535 = vadd.xlane.f32.xlu0 %v4534_v1 }
0x2041   : > { %v4537_v13 = vsel %vm3340_vm2, %v6662_v12, 0.0  ;;  %v4542_v42 = vpack.c.bf16 %v6662_v12, %v6660_v7 }
0x2042   : > { %4538 = vadd.xlane.f32.xlu1 %v4537_v13 }
0x2043   : > { %6319 = vmatmul.mubr.msk.bf16.vlgmr.msra.gmra.mrb[104].mxu1 %vm3340_vm2, %v4542_v42  ;;  %v5575_v42 = vld [vmem:[%s7967_s11] ss:$0 sm:$0xff] }
0x2044   : > { %6324 = vmatprep.mubr.msk.bf16.mxu1 %vm6823_vm0, %v6822_v0  ;;  %6323 = vmatpush3.bf16.msra.mxu1 %v6501_v46 }
0x2045   : > { %6328 = vmatprep.subr.bf16.mxu1 %v6822_v0 }
0x2053   : > { %4658 = vrot.lane.b32.xlu1 %v7455_v3, %s7966_s7 }
0x2056   : > { %4656 = vrot.lane.b32.xlu0 %v7457_v4, %s7966_s7 }
0x2057   : > { %4662 = vrot.lane.b32.xlu1 %v7481_v43, %s7966_s7 }
0x205a   : > { %4660 = vrot.lane.b32.xlu0 %v7483_v44, %s7966_s7 }
0x205b   : > { %4743 = vrot.lane.b32.xlu1 %v7527_v24, %s7966_s7 }
0x205e   : > { %4654 = vrot.lane.b32.xlu0 %v7507_v5, %s7966_s7 }
0x2062   : > { %4741 = vrot.lane.b32.xlu0 %v7529_v25, %s7966_s7 }
0x20cd   : > { %v4536_v3 = vpop.xlane.xlu0 %4535 }
0x20ce   : > { %6663 = vrcp.f32 %v4536_v3 }
0x20cf   : > { %v4539_v4 = vpop.xlane.xlu1 %4538 }
0x20d0   : > { %6665 = vrcp.f32 %v4539_v4 }
0x20d1   : > { %v4657_v14 = vpop.permute.xlu0 %4656 }
0x20d2   : > { %v4668_v29 = vsel %vm1417_vm1, %v4657_v14, 0 }
0x20d3   : > { %v4659_v43 = vpop.permute.xlu1 %4658 }
0x20d4   : > { %v4671_v31 = vsel %vm1417_vm1, %v4659_v43, 0 }
0x20d5   : > { %v4661_v15 = vpop.permute.xlu0 %4660 }
0x20d6   : > { %v4674_v32 = vsel %vm1417_vm1, %v4661_v15, 0 }
0x20d7   : > { %v4663_v44 = vpop.permute.xlu1 %4662 }
0x20d8   : > { %v6664_v5 = vpop.eup %6663  ;;  %v4677_v33 = vsel %vm1417_vm1, %v4663_v44, 0 }
0x20d9   : > { %v4655_v16 = vpop.permute.xlu0 %4654 }
0x20da   : > { %v6666_v20 = vpop.eup %6665 }
0x20db   : > { %v4744_v24 = vpop.permute.xlu1 %4743 }
0x20dd   : > { %v4742_v17 = vpop.permute.xlu0 %4741 }
0x20de   : > { %6341 = vmatpush3.bf16.msra.mxu0 %v4742_v17 }
0x20df   : > { %6342 = vmatprep.subr.bf16.mxu0 %v6822_v0 }
0x20e2   : > { %6343 = vmatpush3.bf16.msra.mxu0 %v4744_v24  ;;  %v6503_v24 = vld [vmem:[%s7968_s16] ss:$8 sps:$4 sm:$0xff]  }
0x20e3   : > { %6344 = vmatprep.subr.bf16.mxu0 %v6822_v0 }
0x2116   : > { %v4592_v25 = vpop.f32.mrb[104].mxu1 }
0x2117   : > { %v4599_v18 = vmul.f32 %v6664_v5, %v4592_v25  ;;  %v6320_v19 = vpop.f32.mrb[105].mxu1  ;;  %v6505_v5 = vld [vmem:[%s7968_s16 + $0x4] ss:$8 sps:$4 sm:$0xff]   ;;  %v6508_v25 = vld [vmem:[%s7968_s16 + $0x14] ss:$8 sps:$4 sm:$0xff]  }
0x2118   : > { %v4595_v21 = vpop.f32.mrb[106].mxu1 }
0x2119   : > { %v4600_v23 = vmul.f32 %v6666_v20, %v4595_v21  ;;  %v6321_v27 = vpop.f32.mrb[107].mxu1 }
0x211b   : > { %v4601_v28 = vpack.c.bf16 %v4600_v23, %v4599_v18  ;;  %v6506_v18 = vld [vmem:[%s7968_s16 + $0x10] ss:$8 sps:$4 sm:$0xff]  }
0x211d   : > { %6325 = vmatmul.mubr.msk.bf16.vlgmr.msra.gmra.mrb[108].mxu1 %vm1417_vm1, %v4601_v28 }
0x211e   : > { %6329 = vmatpush3.bf16.xpose.msra.mxu1 %v4668_v29  ;;  %6336 = vmatprep.mubr.msk.bf16.mxu1 %vm6823_vm0, %v6822_v0  ;;  %v6511_v29 = vld [vmem:[%s7968_s16 + $0x24] ss:$8 sps:$4 sm:$0xff]  }
0x211f   : > { %6330 = vmatprep.subr.bf16.mxu1 %v6822_v0 }
0x2126   : > { %6331 = vmatpush3.bf16.xpose.msra.mxu1 %v4671_v31  ;;  %v6509_v31 = vld [vmem:[%s7968_s16 + $0x20] ss:$8 sps:$4 sm:$0xff]  }
0x2127   : > { %6332 = vmatprep.subr.bf16.mxu1 %v6822_v0 }
0x212e   : > { %6333 = vmatpush3.bf16.xpose.msra.mxu1 %v4674_v32  ;;  %v6514_v32 = vld [vmem:[%s7968_s16 + $0x34] ss:$8 sps:$4 sm:$0xff]  }
0x212f   : > { %6334 = vmatprep.subr.bf16.mxu1 %v6822_v0 }
0x2136   : > { %6335 = vmatpush3.bf16.xpose.msra.mxu1 %v4677_v33  ;;  %v6512_v33 = vld [vmem:[%s7968_s16 + $0x30] ss:$8 sps:$4 sm:$0xff]  }
0x213d   : > { %6337 = vmatmul.mubr.msk.bf16.vlgmr.msra.gmra.mrb[112].mxu1 %vm1417_vm1, %v4655_v16 }
0x21f0   : > { %v4645_v30 = vpop.f32.mrb[108].mxu1 }
0x21f1   : > { %v4652_v35 = vadd.f32 %v4645_v30, %v7803_v53  ;;  %v6326_v36 = vpop.f32.mrb[109].mxu1  ;;  %v6517_v30 = vld [vmem:[%s7968_s16 + $0x44] ss:$8 sps:$4 sm:$0xff]  }
0x21f2   : > { %v4648_v37 = vpop.f32.mrb[110].mxu1  ;;  %v6520_v36 = vld [vmem:[%s7968_s16 + $0x54] ss:$8 sps:$4 sm:$0xff]  }
0x21f3   : > { %v4653_v38 = vadd.f32 %v4648_v37, %v7806_v8  ;;  %v6327_v34 = vpop.f32.mrb[111].mxu1  ;;  %v6518_v37 = vld [vmem:[%s7968_s16 + $0x50] ss:$8 sps:$4 sm:$0xff]  }
0x21f4   : > { %v6521_v34 = vld [vmem:[%s7968_s16 + $0x60] ss:$8 sps:$4 sm:$0xff]  }
0x2210   : > { %v4713_v41 = vpop.f32.mrb[112].mxu1 }
0x2211   : > { %v6338_v47 = vpop.f32.mrb[113].mxu1  ;;  %v4720_v49 = vsel %vm3340_vm2, %v4713_v41, -inf }
0x2212   : > { %4721 = vmax.xlane.f32.xlu1 %v4720_v49  ;;  %v4716_v50 = vpop.f32.mrb[114].mxu1  ;;  %v6524_v47 = vld [vmem:[%s7968_s16 + $0x70] ss:$8 sps:$4 sm:$0xff]   ;;  %v6831_v49 = vmov 0  }
0x2213   : > { %v6339_v51 = vpop.f32.mrb[115].mxu1  ;;  %v4723_v52 = vsel %vm3340_vm2, %v4716_v50, -inf }
0x2214   : > { %4724 = vmax.xlane.f32.xlu0 %v4723_v52  ;;  %v6528_v51 = vld [vmem:[%s7969_s26] sm:$0xff]   ;;  %v6529_v52 = vld [vmem:[%s7969_s26 + $0x48] sm:$0xff]  }
0x2223   : > { %4745 = vrot.lane.b32.xlu1 %v7537_v45, %s7966_s7 }
0x222a   : > { %4747 = vrot.lane.b32.xlu0 %v7543_v48, %s7966_s7 }
0x229f   : > { %v4722_v53 = vpop.xlane.xlu1 %4721 }
0x22a0   : > { %v4726_v54 = vsub.f32 %v4713_v41, %v4722_v53  ;;  %v6526_v41 = vld [vmem:[%s7968_s16 + $0x74] ss:$8 sps:$4 sm:$0xff]   ;;  %v6530_v53 = vld [vmem:[%s7969_s26 + $0x8] sm:$0xff]  }
0x22a1   : > { %v4725_v55 = vpop.xlane.xlu0 %4724 }
0x22a2   : > { %v4728_v8 = vmul.f32 1.442695, %v4726_v54  ;;  %v4727_v56 = vsub.f32 %v4716_v50, %v4725_v55  ;;  %v6527_v50 = vld [vmem:[%s7969_s26 + $0x40] sm:$0xff]   ;;  %v6531_v54 = vld [vmem:[%s7969_s26 + $0x50] sm:$0xff]  }
0x22a3   : > { %v4746_v57 = vpop.permute.xlu1 %4745  ;;  %5824 = vmatprep.subr.bf16.mxu1 %v6527_v50  ;;  %v6532_v55 = vld [vmem:[%s7969_s26 + $0x10] sm:$0xff]  }
0x22a4   : > { %6667 = vpow2.f32 %v4728_v8  ;;  %v4730_v60 = vmul.f32 1.442695, %v4727_v56  ;;  %6345 = vmatpush3.bf16.msra.mxu0 %v4746_v57  ;;  %5825 = vmatpush3.bf16.msra.mxu1 %v6528_v51  ;;  %v6533_v8 = vld [vmem:[%s7969_s26 + $0x58] sm:$0xff]   ;;  %v6535_v57 = vld [vmem:[%s7969_s26 + $0x60] sm:$0xff]  }
0x22a5   : > { %6346 = vmatprep.subr.bf16.mxu0 %v6822_v0  ;;  %v4748_v61 = vpop.permute.xlu0 %4747  ;;  %5826 = vmatprep.subr.bf16.mxu1 %v6529_v52  ;;  %v6534_v56 = vld [vmem:[%s7969_s26 + $0x18] sm:$0xff]  }
0x22a6   : > { %6669 = vpow2.f32 %v4730_v60  ;;  %v6536_v60 = vld [vmem:[%s7969_s26 + $0x20] sm:$0xff]  }
0x22a8   : > { %6347 = vmatpush3.bf16.msra.mxu0 %v4748_v61  ;;  %5827 = vmatpush3.bf16.msra.mxu1 %v6530_v53  ;;  %v6537_v61 = vld [vmem:[%s7969_s26 + $0x68] sm:$0xff]  }
0x22a9   : > { %6352 = vmatprep.subr.bf16.mxu0 %v6822_v0  ;;  %5828 = vmatprep.subr.bf16.mxu1 %v6531_v54 }
0x22ac   : > { %5829 = vmatpush3.bf16.msra.mxu1 %v6532_v55 }
0x22ad   : > { %5830 = vmatprep.subr.bf16.mxu1 %v6533_v8 }
0x22ae   : > { %v6668_v45 = vpop.eup %6667 }
0x22af   : > { %v4732_v62 = vsel %vm3340_vm2, %v6668_v45, 0.0 }
0x22b0   : > { %v6670_v48 = vpop.eup %6669  ;;  %4733 = vadd.xlane.f32.xlu1 %v4732_v62  ;;  %5831 = vmatpush3.bf16.msra.mxu1 %v6534_v56 }
0x22b1   : > { %v4735_v63 = vsel %vm3340_vm2, %v6670_v48, 0.0  ;;  %v4740_v2 = vpack.c.bf16 %v6670_v48, %v6668_v45  ;;  %5832 = vmatprep.subr.bf16.mxu1 %v6535_v57 }
0x22b2   : > { %4736 = vadd.xlane.f32.xlu0 %v4735_v63 }
0x22b3   : > { %6349 = vmatmul.mubr.msk.bf16.vlgmr.msra.gmra.mrb[100].mxu0 %vm3340_vm2, %v4740_v2 }
0x22b4   : > { %6354 = vmatprep.mubr.msk.bf16.mxu0 %vm6823_vm0, %v6822_v0  ;;  %6353 = vmatpush3.bf16.msra.mxu0 %v6502_v9 }
0x22b5   : > { %5012 = vmatprep.subr.bf16.mxu0 %v6505_v5  ;;  %5833 = vmatpush3.bf16.msra.mxu1 %v6536_v60 }
0x22b6   : > { %5834 = vmatprep.subr.bf16.mxu1 %v6537_v61 }
0x233d   : > { %v4734_v58 = vpop.xlane.xlu1 %4733 }
0x233e   : > { %6671 = vrcp.f32 %v4734_v58 }
0x233f   : > { %v4737_v39 = vpop.xlane.xlu0 %4736 }
0x2340   : > { %6673 = vrcp.f32 %v4737_v39  ;;  %v5576_v39 = vld [vmem:[%s7970_s23] ss:$0 sm:$0xff] }
0x2348   : > { %v6672_v59 = vpop.eup %6671 }
0x234a   : > { %v6674_v6 = vpop.eup %6673 }
0x2386   : > { %v4790_v40 = vpop.f32.mrb[100].mxu0 }
0x2387   : > { %v6350_v22 = vpop.f32.mrb[101].mxu0  ;;  %v4797_v7 = vmul.f32 %v6672_v59, %v4790_v40 }
0x2388   : > { %v4793_v11 = vpop.f32.mrb[102].mxu0 }
0x2389   : > { %v4798_v1 = vmul.f32 %v6674_v6, %v4793_v11  ;;  %v6351_v12 = vpop.f32.mrb[103].mxu0  ;;  %v5577_v11 = vld [vmem:[%s7971_s28] ss:$0 sm:$0xff] }
0x238b   : > { %v4799_v13 = vpack.c.bf16 %v4798_v1, %v4797_v7 }
0x238d   : > { %6355 = vmatmul.mubr.msk.bf16.vlgmr.msra.gmra.mrb[104].mxu0 %vm1417_vm1, %v4799_v13 }
0x238e   : > { %5013 = vmatpush1.bf16.msra.mxu0 %v6503_v24  ;;  %5044 = vmatprep.mubr.bf16.mxu0 %v6831_v49 }
0x238f   : > { %5014 = vmatprep.subr.bf16.mxu0 %v6508_v25 }
0x2392   : > { %5015 = vmatpush1.bf16.msra.mxu0 %v6506_v18 }
0x2393   : > { %5016 = vmatprep.subr.bf16.mxu0 %v6511_v29 }
0x2396   : > { %5017 = vmatpush1.bf16.msra.mxu0 %v6509_v31 }
0x2397   : > { %5018 = vmatprep.subr.bf16.mxu0 %v6514_v32 }
0x239a   : > { %5019 = vmatpush1.bf16.msra.mxu0 %v6512_v33 }
0x239b   : > { %5020 = vmatprep.subr.bf16.mxu0 %v6517_v30  ;;  %v5594_v30 = vld [vmem:[%s6975_s20] ss:$0 sm:$0xff] }
0x2460   : > { %v4843_v0 = vpop.f32.mrb[104].mxu0 }
0x2461   : > { %v4850_v46 = vadd.f32 %v4843_v0, %v4652_v35  ;;  %v6356_v3 = vpop.f32.mrb[105].mxu0  ;;  %v6515_v35 = vld [vmem:[%s7968_s16 + $0x40] ss:$8 sps:$4 sm:$0xff]  }
0x2462   : > { %v4846_v4 = vpop.f32.mrb[106].mxu0  ;;  %5021 = vmatpush1.bf16.msra.mxu0 %v6515_v35  ;;  %v6538_v0 = vld [vmem:[%s7969_s26 + $0x28] sm:$0xff]   ;;  %v6541_v3 = vld [vmem:[%s7969_s26 + $0x78] sm:$0xff]  }
0x2463   : > { %v4859_v14 = vadd.f32 %v5575_v42, %v4850_v46  ;;  %v4851_v43 = vadd.f32 %v4846_v4, %v4653_v38  ;;  %v6357_v15 = vpop.f32.mrb[107].mxu0  ;;  %5022 = vmatprep.subr.bf16.mxu0 %v6520_v36  ;;  %v6523_v38 = vld [vmem:[%s7968_s16 + $0x64] ss:$8 sps:$4 sm:$0xff]   ;;  %5835 = vmatpush3.bf16.msra.mxu1 %v6538_v0  ;;  %v6540_v46 = vld [vmem:[%s7969_s26 + $0x30] sm:$0xff]   ;;  %v6542_v4 = vld [vmem:[%s7969_s26 + $0x38] sm:$0xff]  }
0x2465   : > { %v4860_v16 = vadd.f32 %v5575_v42, %v4851_v43  ;;  %v4861_v44 = vadd.f32 %v4859_v14, %v7473_v10  ;;  %v6539_v42 = vld [vmem:[%s7969_s26 + $0x70] sm:$0xff]   ;;  %v4922_v14 = vlaneseq }
0x2466   : > { %5023 = vmatpush1.bf16.msra.mxu0 %v6518_v37  ;;  %5836 = vmatprep.subr.bf16.mxu1 %v6539_v42 }
0x2467   : > { %4863 = vadd.xlane.f32.xlu0 %v4861_v44  ;;  %v4862_v17 = vadd.f32 %v4860_v16, %v7475_v26  ;;  %5024 = vmatprep.subr.bf16.mxu0 %v6523_v38  ;;  %v4923_v43 = vshrl.u32 %v4922_v14, 7  ;;  %v4920_v16 = vld [vmem:[%s7972_s1] sm:$0x3] }
0x2468   : > { %5837 = vmatpush3.bf16.msra.mxu1 %v6540_v46 }
0x2469   : > { %4865 = vadd.xlane.f32.xlu1 %v4862_v17  ;;  %5838 = vmatprep.subr.bf16.mxu1 %v6541_v3  ;;  %v4924_v15 = vsub.s32 0, %v4923_v43 }
0x246a   : > { %5025 = vmatpush1.bf16.msra.mxu0 %v6521_v34 }
0x246b   : > { %5026 = vmatprep.subr.bf16.mxu0 %v6526_v41 }
0x246c   : > { %5839 = vmatpush3.bf16.msra.mxu1 %v6542_v4 }
0x246e   : > { %5027 = vmatpush1.bf16.msra.mxu0 %v6524_v47 }
0x24f4   : > { %v4864_v19 = vpop.xlane.xlu0 %4863 }
0x24f5   : > { %v4867_v20 = vmul.f32 0.0078125, %v4864_v19 }
0x24f6   : > { %v4866_v21 = vpop.xlane.xlu1 %4865 }
0x24f7   : > { %v7872_v10 = vsub.f32 %v4861_v44, %v4867_v20  ;;  %v4868_v26 = vmul.f32 0.0078125, %v4866_v21  ;;  %v4928_v44 = vsub.s32 1, %v4923_v43 }
0x24f9   : > { %v7874_v23 = vsub.f32 %v4862_v17, %v4868_v26  ;;  %v4871_v27 = vmul.f32 %v7872_v10, %v7872_v10  ;;  %v4925_v17 = vrot.slane %v4920_v16, %v4924_v15  ;;  %v4929_v24 = vrot.slane %v4920_v16, %v4928_v44 }
0x24fb   : > { %4873 = vadd.xlane.f32.xlu0 %v4871_v27  ;;  %v4872_v28 = vmul.f32 %v7874_v23, %v7874_v23 }
0x24fd   : > { %4875 = vadd.xlane.f32.xlu1 %v4872_v28 }
0x2588   : > { %v4874_v45 = vpop.xlane.xlu0 %4873 }
0x2589   : > { %v4877_v62 = vmul.f32 0.0078125, %v4874_v45 }
0x258a   : > { %v4876_v48 = vpop.xlane.xlu1 %4875 }
0x258b   : > { %v4879_v63 = vadd.f32 1e-05, %v4877_v62  ;;  %v4878_v2 = vmul.f32 0.0078125, %v4876_v48 }
0x258d   : > { %6675 = vrsqrt.f32 %v4879_v63  ;;  %v4880_v9 = vadd.f32 1e-05, %v4878_v2 }
0x258f   : > { %6677 = vrsqrt.f32 %v4880_v9  ;;  %v5611_v9 = vld [vmem:[%s6980_s17] ss:$0 sm:$0xff] }
0x2597   : > { %v6676_v58 = vpop.eup %6675 }
0x2598   : > { %v4883_v40 = vmul.f32 %v6676_v58, %v7872_v10 }
0x2599   : > { %v6678_v59 = vpop.eup %6677 }
0x259a   : > { %v4884_v22 = vmul.f32 %v6678_v59, %v7874_v23  ;;  %v4892_v6 = vmul.f32 %v5576_v39, %v4883_v40  ;;  %v5612_v40 = vld [vmem:[%s6985_s4] ss:$0 sm:$0xff] }
0x259c   : > { %v4893_v7 = vmul.f32 %v5576_v39, %v4884_v22  ;;  %v4901_v1 = vadd.f32 %v5577_v11, %v4892_v6 }
0x259e   : > { %v4902_v12 = vadd.f32 %v5577_v11, %v4893_v7 }
0x25a0   : > { %v4903_v13 = vpack.c.bf16 %v4902_v12, %v4901_v1 }
0x25a2   : > { %5045 = vmatmul.mubr.bf16.vlgmr.msra.gmra.mrb[108].mxu0 %v4903_v13 }
0x2675   : > { %v5046_v5 = vpop.f32.mrb[108].mxu0 }
0x2676   : > { %v5047_v25 = vadd.f32 %v5046_v5, %v4925_v17  ;;  %v5048_v18 = vpop.f32.mrb[109].mxu0 }
0x2677   : > { %v5049_v19 = vadd.f32 %v5048_v18, %v4929_v24  ;;  %v5050_v20 = vpop.f32.mrb[110].mxu0 }
0x2678   : > { %v5051_v21 = vadd.f32 %v5050_v20, %v4925_v17  ;;  %v5052_v10 = vpop.f32.mrb[111].mxu0  ;;  %v5055_v23 = vmax.f32 %v5047_v25, 0.0 }
0x2679   : > { %v5053_v26 = vadd.f32 %v5052_v10, %v4929_v24  ;;  %v5056_v28 = vmax.f32 %v5049_v19, 0.0 }
0x267a   : > { %v5057_v27 = vmax.f32 %v5051_v21, 0.0 }
0x267b   : > { %v5058_v29 = vmax.f32 %v5053_v26, 0.0 }
0x267c   : > { %v5059_v31 = vpack.c.bf16 %v5057_v27, %v5055_v23 }
0x267d   : > { %v5060_v32 = vpack.c.bf16 %v5058_v29, %v5056_v28 }
0x267f   : > { %5228 = vmatprep.mubr.bf16.mxu1 %v5060_v32 }
0x2680   : > { %5229 = vmatmul.mubr.bf16.vlgmr.msra.gmra.mrb[116].mxu1 %v5059_v31 }
0x2753   : > { %v5840_v33 = vpop.f32.mrb[116].mxu1 }
0x2754   : > { %v5841_v35 = vpop.f32.mrb[117].mxu1 }
0x2755   : > { %v5842_v36 = vadd.f32 %v5841_v35, %v5840_v33  ;;  %v5843_v37 = vpop.f32.mrb[118].mxu1 }
0x2756   : > { %v5844_v38 = vpop.f32.mrb[119].mxu1 }
0x2757   : > { %v5231_v34 = vadd.f32 %v5842_v36, %v5594_v30  ;;  %v5845_v41 = vadd.f32 %v5844_v38, %v5843_v37 }
0x2759   : > { %v5234_v47 = vadd.f32 %v5845_v41, %v5594_v30  ;;  %v5237_v49 = vadd.f32 %v5231_v34, %v4901_v1 }
0x275b   : > { %5239 = vadd.xlane.f32.xlu0 %v5237_v49  ;;  %v5238_v50 = vadd.f32 %v5234_v47, %v4902_v12 }
0x275d   : > { %5241 = vadd.xlane.f32.xlu1 %v5238_v50 }
0x27e8   : > { %v5240_v51 = vpop.xlane.xlu0 %5239 }
0x27e9   : > { %v5243_v52 = vmul.f32 0.0078125, %v5240_v51 }
0x27ea   : > { %v5242_v53 = vpop.xlane.xlu1 %5241 }
0x27eb   : > { %v5245_v54 = vsub.f32 %v5237_v49, %v5243_v52  ;;  %v5244_v55 = vmul.f32 0.0078125, %v5242_v53 }
0x27ed   : > { %v5246_v8 = vsub.f32 %v5238_v50, %v5244_v55  ;;  %v5247_v56 = vmul.f32 %v5245_v54, %v5245_v54 }
0x27ef   : > { %5249 = vadd.xlane.f32.xlu0 %v5247_v56  ;;  %v5248_v57 = vmul.f32 %v5246_v8, %v5246_v8 }
0x27f1   : > { %5251 = vadd.xlane.f32.xlu1 %v5248_v57 }
0x287c   : > { %v5250_v60 = vpop.xlane.xlu0 %5249 }
0x287d   : > { %v5253_v61 = vmul.f32 0.0078125, %v5250_v60 }
0x287e   : > { %v5252_v45 = vpop.xlane.xlu1 %5251 }
0x287f   : > { %v5255_v62 = vadd.f32 1e-05, %v5253_v61  ;;  %v5254_v48 = vmul.f32 0.0078125, %v5252_v45 }
0x2881   : > { %6679 = vrsqrt.f32 %v5255_v62  ;;  %v5256_v63 = vadd.f32 1e-05, %v5254_v48 }
0x2883   : > { %6681 = vrsqrt.f32 %v5256_v63 }
0x288b   : > { %v6680_v2 = vpop.eup %6679 }
0x288c   : > { %v5259_v58 = vmul.f32 %v6680_v2, %v5245_v54 }
0x288d   : > { %v6682_v39 = vpop.eup %6681 }
0x288e   : > { %v5268_v59 = vmul.f32 %v5611_v9, %v5259_v58  ;;  %v5260_v22 = vmul.f32 %v6682_v39, %v5246_v8 }
0x2890   : > { %v5277_v6 = vadd.f32 %v5612_v40, %v5268_v59  ;;  %v5269_v11 = vmul.f32 %v5611_v9, %v5260_v22 }
0x2892   : > { %5279 = vst [vmem:[%s1034_s2] sm:$0xff] %v5277_v6  ;;  %v5278_v7 = vadd.f32 %v5612_v40, %v5269_v11 }
0x2894   : > { %5280 = vst [vmem:[%s1034_s2 + $0x8] sm:$0xff] %v5278_v7 }
0x2895 PF: > { %s73_s15 = sadd.s32 1, %s6785_s15  }
0x2896   : > { %p70_p3 = scmp.ge.s32.totalorder %s73_s15, 4  }
0x2898   :  { %72 = sbr.rel (!%p70_p3) target bundleno = 49 (0x31), region = 222 }
0x289f   :  { %5302 = vsyncpa [#allocation3], 1 }
0x28a0   :  { %5304 = vsyncpa [#allocation3 + $0x1], 1 }
0x28a1   :  { %5305 = vsyncpa [#allocation5], 1 }

</bundles_post_ra>
